<compile_context>
chip_gen: v7x
topology: tpu7x:2x2x1
jax: 0.10.0
libtpu: 0.0.40
codegen_flags: <defaults>
</compile_context>

<pallas_src>
import math
import functools

import jax
import jax.numpy as jnp
from jax import lax
from jax.experimental import pallas as pl
from jax.experimental.pallas import tpu as pltpu


def _layernorm(x, gamma, beta, eps=1e-5):
    # Two-pass variance mean((x - mu)^2): (x - mu) is needed for the output
    # anyway, so this costs the same as E[x^2]-mu^2 but cannot cancel.
    mu = jnp.mean(x, axis=-1, keepdims=True)
    xc = x - mu
    var = jnp.mean(xc * xc, axis=-1, keepdims=True)
    return xc * lax.rsqrt(var + eps) * gamma + beta


def encoder_layer_kernel(nhead, head_dim, apply_final_norm,
                         q_ref, k_ref, v_ref,
                         wq_ref, bq_ref, wk_ref, bk_ref, wv_ref, bv_ref,
                         wo_ref, bo_ref,
                         w1_ref, b1_ref, w2_ref, b2_ref,
                         g1_ref, be1_ref, g2_ref, be2_ref,
                         fg_ref, fb_ref,
                         out_ref,
                         k_cache, v_cache, attn_scratch):
    f32 = jnp.float32
    bf16 = jnp.bfloat16

    # ---- K/V projections: once per batch element (first q-row tile only). ----
    # k_ref / v_ref are already bf16 (cast in HBM); results are cached in
    # persistent bf16 VMEM scratch and reused by every later q-row tile.
    @pl.when(pl.program_id(1) == 0)
    def _():
        K = jnp.dot(k_ref[0], wk_ref[...], preferred_element_type=f32) + bk_ref[0]
        V = jnp.dot(v_ref[0], wv_ref[...], preferred_element_type=f32) + bv_ref[0]
        k_cache[...] = K.astype(bf16)
        v_cache[...] = V.astype(bf16)

    q = q_ref[0]                                   # (tq, D) f32 — residual
    Q = jnp.dot(q.astype(bf16), wq_ref[...], preferred_element_type=f32) + bq_ref[0]
    # Fold 1/sqrt(head_dim) into Q (much smaller than the (tq, S) scores).
    Qb = (Q * (1.0 / math.sqrt(head_dim))).astype(bf16)

    # Per-head attention: dot_general contracts dim 1 of both operands, so no
    # materialized K^T; outputs go straight into the bf16 VMEM scratch.
    dnums = (((1,), (1,)), ((), ()))
    for h in range(nhead):                          # nhead is small; static unroll
        sl = slice(h * head_dim, (h + 1) * head_dim)
        s = lax.dot_general(Qb[:, sl], k_cache[:, sl], dnums,
                            preferred_element_type=f32)            # (tq, S)
        s = s - jnp.max(s, axis=-1, keepdims=True)
        e = jnp.exp(s)
        p = e * pl.reciprocal(jnp.sum(e, axis=-1, keepdims=True), approx=True)
        attn_scratch[:, sl] = jnp.dot(p.astype(bf16), v_cache[:, sl],
                                      preferred_element_type=f32).astype(bf16)

    # Output projection as a single full-width matmul (bf16 operands, f32 acc).
    src2 = jnp.dot(attn_scratch[...], wo_ref[...],
                   preferred_element_type=f32) + bo_ref[0]
    src = _layernorm(q + src2, g1_ref[0], be1_ref[0])

    # FFN (dropout1 / dropout2 are identity at inference time).
    h1 = jnp.maximum(
        jnp.dot(src.astype(bf16), w1_ref[...], preferred_element_type=f32)
        + b1_ref[0], 0.0)
    ff = jnp.dot(h1.astype(bf16), w2_ref[...], preferred_element_type=f32) + b2_ref[0]
    y = _layernorm(src + ff, g2_ref[0], be2_ref[0])

    if apply_final_norm:                            # fused encoder final norm
        y = _layernorm(y, fg_ref[0], fb_ref[0])
    out_ref[0] = y


def _vmem_budget_bytes():
    # Generation-aware scoped-VMEM budget: ~75% of physical VMEM
    # (~96 MiB on v5e/v6e's 128 MiB, ~48 MiB on v7x's 64 MiB) instead of a
    # hardcoded 64 MiB (which is v7x's entire physical VMEM).
    try:
        phys = int(pltpu.get_tpu_info().vmem_capacity_bytes)
    except Exception:
        phys = 64 * 1024 * 1024                     # conservative (v7x-sized)
    return (phys * 3) // 4


def _choose_tq(S, D, F, weight_bytes, budget):
    """Pick the largest q-row tile whose VMEM accounting fits the budget."""
    candidates = [t for t in (512, 256, 128, 64, 32, 16, 8)
                  if t <= S and S % t == 0]
    if not candidates:
        return S                                    # full-extent block always legal
    fixed = weight_bytes                            # resident bf16 weights
    fixed += 2 * S * D * 2                          # persistent projected K/V caches (bf16)
    fixed += 2 * 2 * S * D * 2                      # double-buffered bf16 k/v input blocks
    for tq in candidates:
        per = 2 * 2 * tq * D * 4                    # q-in + out f32 blocks, double-buffered
        per += tq * D * 2                           # attn scratch (bf16)
        per += 2 * tq * max(D, F) * 4               # f32 intermediates (Q proj / FFN hidden)
        per += 2 * tq * S * 4                       # ~two live (tq, S) f32 score tensors
        if fixed + per <= budget:
            return tq
    return candidates[-1]


def run_encoder_layer(q, k, v, p, nhead, final_gamma=None, final_beta=None):
    """One fused encoder layer. Weights in `p` are expected to already be bf16."""
    B, S, D = q.shape
    head_dim = D // nhead
    F = p["w1"].shape[1]

    apply_final = final_gamma is not None
    if not apply_final:                             # dummies keep one signature
        final_gamma = jnp.ones((1, D), jnp.float32)
        final_beta = jnp.zeros((1, D), jnp.float32)

    bf16 = jnp.bfloat16
    # bf16 activations in HBM for k / v (halves DMA + K/V VMEM footprint);
    # q stays f32 because it feeds the residual add + LayerNorm.
    kb = k.astype(bf16)
    vb = v.astype(bf16)

    weight_bytes = 2 * (4 * D * D + 2 * D * F)      # resident bf16 weights
    budget = _vmem_budget_bytes()
    tq = _choose_tq(S, D, F, weight_bytes, budget)
    grid = (B, S // tq)

    act_q = pl.BlockSpec((1, tq, D), lambda b, i: (b, i, 0))
    act_kv = pl.BlockSpec((1, S, D), lambda b, i: (b, 0, 0))

    flops = int(2 * B * S * (4 * D * D + 2 * D * F) + 4 * B * S * S * D)
    transcendentals = int(B * nhead * S * S)
    bytes_accessed = int(2 * 4 * B * S * D          # q in + out (f32)
                         + 2 * 2 * B * S * D        # k, v in (bf16)
                         + weight_bytes             # bf16 weights
                         + 4 * (8 * D + F))         # biases / LN params (f32)

    kernel = functools.partial(encoder_layer_kernel, nhead, head_dim, apply_final)

    def build(single_buffer_weights):
        if single_buffer_weights:
            # Constant-index weights are never re-fetched; single-buffer them so
            # they don't occupy 2x VMEM (matters for v7x's 64 MiB).
            mat = lambda shp: pl.BlockSpec(shp, lambda b, i: (0, 0),
                                           pipeline_mode=pl.Buffered(1))
        else:
            mat = lambda shp: pl.BlockSpec(shp, lambda b, i: (0, 0))
        return pl.pallas_call(
            kernel,
            out_shape=jax.ShapeDtypeStruct((B, S, D), jnp.float32),
            grid_spec=pltpu.PrefetchScalarGridSpec(
                num_scalar_prefetch=0,
                grid=grid,
                in_specs=[
                    act_q, act_kv, act_kv,
                    mat((D, D)), mat((1, D)),       # wq, bq
                    mat((D, D)), mat((1, D)),       # wk, bk
                    mat((D, D)), mat((1, D)),       # wv, bv
                    mat((D, D)), mat((1, D)),       # wo, bo
                    mat((D, F)), mat((1, F)),       # w1, b1
                    mat((F, D)), mat((1, D)),       # w2, b2
                    mat((1, D)), mat((1, D)),       # gamma1, beta1
                    mat((1, D)), mat((1, D)),       # gamma2, beta2
                    mat((1, D)), mat((1, D)),       # final gamma, beta
                ],
                out_specs=act_q,
                scratch_shapes=[
                    pltpu.VMEM((S, D), jnp.bfloat16),   # projected K cache
                    pltpu.VMEM((S, D), jnp.bfloat16),   # projected V cache
                    pltpu.VMEM((tq, D), jnp.bfloat16),  # per-head attention output
                ],
            ),
            compiler_params=pltpu.CompilerParams(
                # q-tile axis must be sequential: K/V caches are written at
                # tile 0 and reused by later tiles of the same batch element.
                dimension_semantics=("parallel", "arbitrary"),
                vmem_limit_bytes=int(budget)),
            cost_estimate=pl.CostEstimate(
                flops=flops, transcendentals=transcendentals,
                bytes_accessed=bytes_accessed),
        )

    args = (q, kb, vb,
            p["wq"], p["bq"], p["wk"], p["bk"], p["wv"], p["bv"],
            p["wo"], p["bo"], p["w1"], p["b1"], p["w2"], p["b2"],
            p["g1"], p["be1"], p["g2"], p["be2"],
            final_gamma, final_beta)

    try:
        return build(True)(*args)
    except Exception:
        # pipeline_mode=pl.Buffered(1) not supported by this jax/libtpu combo;
        # fall back to default (double) buffering for the weight operands.
        return build(False)(*args)


def _prepare_params(p):
    """Cast matmul weights to bf16 exactly once (biases / LN params stay f32)."""
    bf16 = jnp.bfloat16
    out = dict(p)
    for n in ("wq", "wk", "wv", "wo", "w1", "w2"):
        out[n] = p[n].astype(bf16)
    return out


def transformer_encoder(q, k, v, layer_params, final_gamma, final_beta, nhead):
    # Faithful to the PyTorch reference: the loop feeds every layer the ORIGINAL
    # (q, k, v), so only the LAST layer's output reaches the final LayerNorm.
    # The first N-1 layers are dead compute -> execute only the last layer,
    # with the encoder's final LayerNorm fused into its kernel.
    p = _prepare_params(layer_params[-1])
    return run_encoder_layer(q, k, v, p, nhead, final_gamma, final_beta)


# ---------------- pure-JAX f32 reference (for correctness check) ------------
def ref_layer(q, k, v, p, nhead):
    B, S, D = q.shape
    hd = D // nhead
    Q = q @ p["wq"] + p["bq"][0]
    K = k @ p["wk"] + p["bk"][0]
    V = v @ p["wv"] + p["bv"][0]
    Qh = Q.reshape(B, S, nhead, hd).transpose(0, 2, 1, 3)
    Kh = K.reshape(B, S, nhead, hd).transpose(0, 2, 1, 3)
    Vh = V.reshape(B, S, nhead, hd).transpose(0, 2, 1, 3)
    scores = jnp.einsum("bhqd,bhkd->bhqk", Qh, Kh) / math.sqrt(hd)
    attn = jax.nn.softmax(scores, axis=-1)
    out = jnp.einsum("bhqk,bhkd->bhqd", attn, Vh).transpose(0, 2, 1, 3).reshape(B, S, D)
    src2 = out @ p["wo"] + p["bo"][0]
    src = _layernorm(q + src2, p["g1"][0], p["be1"][0])
    ff = jnp.maximum(src @ p["w1"] + p["b1"][0], 0.0) @ p["w2"] + p["b2"][0]
    return _layernorm(src + ff, p["g2"][0], p["be2"][0])


def ref_encoder(q, k, v, layer_params, fg, fb, nhead):
    src = None
    for p in layer_params:          # mirrors the PyTorch loop exactly
        src = ref_layer(q, k, v, p, nhead)
    return _layernorm(src, fg[0], fb[0])


# ---------------------------------------------------------------------------
def init_layer_params(key, d_model, dff):
    ks = jax.random.split(key, 8)
    s = 1.0 / math.sqrt(d_model)
    sf = 1.0 / math.sqrt(dff)
    return {
        "wq": jax.random.uniform(ks[0], (d_model, d_model), jnp.float32, -s, s),
        "bq": jax.random.uniform(ks[1], (1, d_model), jnp.float32, -s, s),
        "wk": jax.random.uniform(ks[2], (d_model, d_model), jnp.float32, -s, s),
        "bk": jax.random.uniform(ks[3], (1, d_model), jnp.float32, -s, s),
        "wv": jax.random.uniform(ks[4], (d_model, d_model), jnp.float32, -s, s),
        "bv": jax.random.uniform(ks[5], (1, d_model), jnp.float32, -s, s),
        "wo": jax.random.uniform(ks[6], (d_model, d_model), jnp.float32, -s, s),
        "bo": jax.random.uniform(ks[7], (1, d_model), jnp.float32, -s, s),
        "w1": jax.random.uniform(ks[0], (d_model, dff), jnp.float32, -s, s),
        "b1": jax.random.uniform(ks[1], (1, dff), jnp.float32, -s, s),
        "w2": jax.random.uniform(ks[2], (dff, d_model), jnp.float32, -sf, sf),
        "b2": jax.random.uniform(ks[3], (1, d_model), jnp.float32, -sf, sf),
        "g1": jnp.ones((1, d_model), jnp.float32),
        "be1": jnp.zeros((1, d_model), jnp.float32),
        "g2": jnp.ones((1, d_model), jnp.float32),
        "be2": jnp.zeros((1, d_model), jnp.float32),
    }


if __name__ == "__main__":
    num_layers, d_model, nhead, dff = 2, 32, 4, 64
    B, S = 2, 8

    key = jax.random.PRNGKey(0)
    kq, kk, kv, kp = jax.random.split(key, 4)
    q = jax.random.normal(kq, (B, S, d_model), jnp.float32)
    k = jax.random.normal(kk, (B, S, d_model), jnp.float32)
    v = jax.random.normal(kv, (B, S, d_model), jnp.float32)

    layer_keys = jax.random.split(kp, num_layers)
    layer_params = [init_layer_params(lk, d_model, dff) for lk in layer_keys]
    final_gamma = jnp.ones((1, d_model), jnp.float32)
    final_beta = jnp.zeros((1, d_model), jnp.float32)

    out = transformer_encoder(q, k, v, layer_params, final_gamma, final_beta, nhead)
    out = jax.block_until_ready(out)

    ref = ref_encoder(q, k, v, layer_params, final_gamma, final_beta, nhead)
    assert out.shape == (B, S, d_model)
    # bf16 MXU operands / bf16 K,V activations + approx reciprocal in the
    # softmax => looser tolerance vs the pure-f32 reference.
    assert jnp.allclose(out, ref, atol=5e-2, rtol=5e-2), "mismatch vs JAX reference"

    print("KERNEL_OK")
</pallas_src>

<mosaic_0001>
module attributes {stable_mosaic.version = 11 : i64} {
  func.func @encoder_layer_kernel(%arg0: i32, %arg1: i32, %arg2: memref<1x8x32xf32, #tpu.memory_space<vmem>>, %arg3: memref<1x8x32xbf16, #tpu.memory_space<vmem>>, %arg4: memref<1x8x32xbf16, #tpu.memory_space<vmem>>, %arg5: memref<32x32xbf16, #tpu.memory_space<vmem>>, %arg6: memref<1x32xf32, #tpu.memory_space<vmem>>, %arg7: memref<32x32xbf16, #tpu.memory_space<vmem>>, %arg8: memref<1x32xf32, #tpu.memory_space<vmem>>, %arg9: memref<32x32xbf16, #tpu.memory_space<vmem>>, %arg10: memref<1x32xf32, #tpu.memory_space<vmem>>, %arg11: memref<32x32xbf16, #tpu.memory_space<vmem>>, %arg12: memref<1x32xf32, #tpu.memory_space<vmem>>, %arg13: memref<32x64xbf16, #tpu.memory_space<vmem>>, %arg14: memref<1x64xf32, #tpu.memory_space<vmem>>, %arg15: memref<64x32xbf16, #tpu.memory_space<vmem>>, %arg16: memref<1x32xf32, #tpu.memory_space<vmem>>, %arg17: memref<1x32xf32, #tpu.memory_space<vmem>>, %arg18: memref<1x32xf32, #tpu.memory_space<vmem>>, %arg19: memref<1x32xf32, #tpu.memory_space<vmem>>, %arg20: memref<1x32xf32, #tpu.memory_space<vmem>>, %arg21: memref<1x32xf32, #tpu.memory_space<vmem>>, %arg22: memref<1x32xf32, #tpu.memory_space<vmem>>, %arg23: memref<1x8x32xf32, #tpu.memory_space<vmem>>, %arg24: memref<8x32xbf16, #tpu.memory_space<vmem>>, %arg25: memref<8x32xbf16, #tpu.memory_space<vmem>>, %arg26: memref<8x32xbf16, #tpu.memory_space<vmem>>) attributes {dimension_semantics = [#tpu.dimension_semantics<parallel>, #tpu.dimension_semantics<arbitrary>], iteration_bounds = array<i64: 2, 1>, scalar_prefetch = 0 : i64, scratch_operands = 3 : i64, tpu.core_type = #tpu.core_type<tc>, window_params = [{transform_indices = @transform_0, window_bounds = array<i64: 1, 8, 32>}, {transform_indices = @transform_1, window_bounds = array<i64: 1, 8, 32>}, {transform_indices = @transform_2, window_bounds = array<i64: 1, 8, 32>}, {pipeline_mode = #tpu.pipeline_mode<synchronous>, transform_indices = @transform_3, window_bounds = array<i64: 32, 32>}, {pipeline_mode = #tpu.pipeline_mode<synchronous>, transform_indices = @transform_4, window_bounds = array<i64: 1, 32>}, {pipeline_mode = #tpu.pipeline_mode<synchronous>, transform_indices = @transform_5, window_bounds = array<i64: 32, 32>}, {pipeline_mode = #tpu.pipeline_mode<synchronous>, transform_indices = @transform_6, window_bounds = array<i64: 1, 32>}, {pipeline_mode = #tpu.pipeline_mode<synchronous>, transform_indices = @transform_7, window_bounds = array<i64: 32, 32>}, {pipeline_mode = #tpu.pipeline_mode<synchronous>, transform_indices = @transform_8, window_bounds = array<i64: 1, 32>}, {pipeline_mode = #tpu.pipeline_mode<synchronous>, transform_indices = @transform_9, window_bounds = array<i64: 32, 32>}, {pipeline_mode = #tpu.pipeline_mode<synchronous>, transform_indices = @transform_10, window_bounds = array<i64: 1, 32>}, {pipeline_mode = #tpu.pipeline_mode<synchronous>, transform_indices = @transform_11, window_bounds = array<i64: 32, 64>}, {pipeline_mode = #tpu.pipeline_mode<synchronous>, transform_indices = @transform_12, window_bounds = array<i64: 1, 64>}, {pipeline_mode = #tpu.pipeline_mode<synchronous>, transform_indices = @transform_13, window_bounds = array<i64: 64, 32>}, {pipeline_mode = #tpu.pipeline_mode<synchronous>, transform_indices = @transform_14, window_bounds = array<i64: 1, 32>}, {pipeline_mode = #tpu.pipeline_mode<synchronous>, transform_indices = @transform_15, window_bounds = array<i64: 1, 32>}, {pipeline_mode = #tpu.pipeline_mode<synchronous>, transform_indices = @transform_16, window_bounds = array<i64: 1, 32>}, {pipeline_mode = #tpu.pipeline_mode<synchronous>, transform_indices = @transform_17, window_bounds = array<i64: 1, 32>}, {pipeline_mode = #tpu.pipeline_mode<synchronous>, transform_indices = @transform_18, window_bounds = array<i64: 1, 32>}, {pipeline_mode = #tpu.pipeline_mode<synchronous>, transform_indices = @transform_19, window_bounds = array<i64: 1, 32>}, {pipeline_mode = #tpu.pipeline_mode<synchronous>, transform_indices = @transform_20, window_bounds = array<i64: 1, 32>}, {transform_indices = @transform_21, window_bounds = array<i64: 1, 8, 32>}]} {
    %c0_i32 = arith.constant 0 : i32
    %0 = arith.cmpi eq, %arg1, %c0_i32 : i32
    %1 = arith.extui %0 : i1 to i32
    %c0_i32_0 = arith.constant 0 : i32
    %2 = arith.cmpi ne, %1, %c0_i32_0 : i32
    scf.if %2 {
      %c0_93 = arith.constant 0 : index
      %c0_94 = arith.constant 0 : index
      %c0_95 = arith.constant 0 : index
      %197 = vector.load %arg3[%c0_93, %c0_94, %c0_95] : memref<1x8x32xbf16, #tpu.memory_space<vmem>>, vector<1x8x32xbf16>
      %198 = vector.shape_cast %197 : vector<1x8x32xbf16> to vector<8x32xbf16>
      %c0_96 = arith.constant 0 : index
      %c0_97 = arith.constant 0 : index
      %199 = vector.load %arg7[%c0_96, %c0_97] : memref<32x32xbf16, #tpu.memory_space<vmem>>, vector<32x32xbf16>
      %cst_98 = arith.constant dense<0.000000e+00> : vector<8x32xf32>
      %200 = tpu.matmul %198, %199, %cst_98 {dimension_numbers = #tpu.dot_dimension_numbers<[1], [0], [0], [1], [0, 0, 1, 1], [], []>} : vector<8x32xbf16>, vector<32x32xbf16>, vector<8x32xf32> -> vector<8x32xf32>
      %c0_99 = arith.constant 0 : index
      %c0_100 = arith.constant 0 : index
      %201 = vector.load %arg8[%c0_99, %c0_100] : memref<1x32xf32, #tpu.memory_space<vmem>>, vector<1x32xf32>
      %202 = vector.shape_cast %201 : vector<1x32xf32> to vector<32xf32>
      %203 = vector.shape_cast %202 : vector<32xf32> to vector<1x32xf32>
      %204 = vector.broadcast %203 : vector<1x32xf32> to vector<8x32xf32>
      %205 = arith.addf %200, %204 : vector<8x32xf32>
      %c0_101 = arith.constant 0 : index
      %c0_102 = arith.constant 0 : index
      %c0_103 = arith.constant 0 : index
      %206 = vector.load %arg4[%c0_101, %c0_102, %c0_103] : memref<1x8x32xbf16, #tpu.memory_space<vmem>>, vector<1x8x32xbf16>
      %207 = vector.shape_cast %206 : vector<1x8x32xbf16> to vector<8x32xbf16>
      %c0_104 = arith.constant 0 : index
      %c0_105 = arith.constant 0 : index
      %208 = vector.load %arg9[%c0_104, %c0_105] : memref<32x32xbf16, #tpu.memory_space<vmem>>, vector<32x32xbf16>
      %cst_106 = arith.constant dense<0.000000e+00> : vector<8x32xf32>
      %209 = tpu.matmul %207, %208, %cst_106 {dimension_numbers = #tpu.dot_dimension_numbers<[1], [0], [0], [1], [0, 0, 1, 1], [], []>} : vector<8x32xbf16>, vector<32x32xbf16>, vector<8x32xf32> -> vector<8x32xf32>
      %c0_107 = arith.constant 0 : index
      %c0_108 = arith.constant 0 : index
      %210 = vector.load %arg10[%c0_107, %c0_108] : memref<1x32xf32, #tpu.memory_space<vmem>>, vector<1x32xf32>
      %211 = vector.shape_cast %210 : vector<1x32xf32> to vector<32xf32>
      %212 = vector.shape_cast %211 : vector<32xf32> to vector<1x32xf32>
      %213 = vector.broadcast %212 : vector<1x32xf32> to vector<8x32xf32>
      %214 = arith.addf %209, %213 : vector<8x32xf32>
      %215 = arith.truncf %205 : vector<8x32xf32> to vector<8x32xbf16>
      %c0_109 = arith.constant 0 : index
      %c0_110 = arith.constant 0 : index
      %216 = vector.load %arg24[%c0_109, %c0_110] : memref<8x32xbf16, #tpu.memory_space<vmem>>, vector<8x32xbf16>
      tpu.vector_store %arg24[%c0_109, %c0_110], %215 {strides = array<i32>} : memref<8x32xbf16, #tpu.memory_space<vmem>>, vector<8x32xbf16>,
      %217 = arith.truncf %214 : vector<8x32xf32> to vector<8x32xbf16>
      %c0_111 = arith.constant 0 : index
      %c0_112 = arith.constant 0 : index
      %218 = vector.load %arg25[%c0_111, %c0_112] : memref<8x32xbf16, #tpu.memory_space<vmem>>, vector<8x32xbf16>
      tpu.vector_store %arg25[%c0_111, %c0_112], %217 {strides = array<i32>} : memref<8x32xbf16, #tpu.memory_space<vmem>>, vector<8x32xbf16>,
    } else {
    }
    %c0 = arith.constant 0 : index
    %c0_1 = arith.constant 0 : index
    %c0_2 = arith.constant 0 : index
    %3 = vector.load %arg2[%c0, %c0_1, %c0_2] : memref<1x8x32xf32, #tpu.memory_space<vmem>>, vector<1x8x32xf32>
    %4 = vector.shape_cast %3 : vector<1x8x32xf32> to vector<8x32xf32>
    %5 = arith.truncf %4 : vector<8x32xf32> to vector<8x32xbf16>
    %c0_3 = arith.constant 0 : index
    %c0_4 = arith.constant 0 : index
    %6 = vector.load %arg5[%c0_3, %c0_4] : memref<32x32xbf16, #tpu.memory_space<vmem>>, vector<32x32xbf16>
    %cst = arith.constant dense<0.000000e+00> : vector<8x32xf32>
    %7 = tpu.matmul %5, %6, %cst {dimension_numbers = #tpu.dot_dimension_numbers<[1], [0], [0], [1], [0, 0, 1, 1], [], []>} : vector<8x32xbf16>, vector<32x32xbf16>, vector<8x32xf32> -> vector<8x32xf32>
    %c0_5 = arith.constant 0 : index
    %c0_6 = arith.constant 0 : index
    %8 = vector.load %arg6[%c0_5, %c0_6] : memref<1x32xf32, #tpu.memory_space<vmem>>, vector<1x32xf32>
    %9 = vector.shape_cast %8 : vector<1x32xf32> to vector<32xf32>
    %10 = vector.shape_cast %9 : vector<32xf32> to vector<1x32xf32>
    %11 = vector.broadcast %10 : vector<1x32xf32> to vector<8x32xf32>
    %12 = arith.addf %7, %11 : vector<8x32xf32>
    %cst_7 = arith.constant 0.353553385 : f32
    %13 = vector.broadcast %cst_7 : f32 to vector<8x32xf32>
    %14 = arith.mulf %12, %13 : vector<8x32xf32>
    %15 = arith.truncf %14 : vector<8x32xf32> to vector<8x32xbf16>
    %16 = vector.extract_strided_slice %15 {offsets = [0, 0], sizes = [8, 8], strides = [1, 1]} : vector<8x32xbf16> to vector<8x8xbf16>
    %c0_8 = arith.constant 0 : index
    %c0_9 = arith.constant 0 : index
    %17 = vector.load %arg24[%c0_8, %c0_9] : memref<8x32xbf16, #tpu.memory_space<vmem>>, vector<8x8xbf16>
    %cst_10 = arith.constant dense<0.000000e+00> : vector<8x8xf32>
    %18 = tpu.matmul %16, %17, %cst_10 {dimension_numbers = #tpu.dot_dimension_numbers<[1], [1], [0], [0], [0, 0, 1, 0], [], []>} : vector<8x8xbf16>, vector<8x8xbf16>, vector<8x8xf32> -> vector<8x8xf32>
    %cst_11 = arith.constant dense<0xFF800000> : vector<8xf32>
    %19 = vector.multi_reduction <maximumf>, %18, %cst_11 [1] : vector<8x8xf32> to vector<8xf32>
    %20 = vector.shape_cast %19 : vector<8xf32> to vector<8x1xf32>
    %21 = vector.broadcast %20 : vector<8x1xf32> to vector<8x8xf32>
    %22 = arith.subf %18, %21 : vector<8x8xf32>
    %23 = math.exp %22 : vector<8x8xf32>
    %cst_12 = arith.constant dense<0.000000e+00> : vector<8xf32>
    %24 = vector.multi_reduction <add>, %23, %cst_12 [1] : vector<8x8xf32> to vector<8xf32>
    %25 = vector.shape_cast %24 : vector<8xf32> to vector<8x1xf32>
    %26 = tpu.reciprocal %25 {approx = true} : vector<8x1xf32> -> vector<8x1xf32>
    %27 = vector.broadcast %26 : vector<8x1xf32> to vector<8x8xf32>
    %28 = arith.mulf %23, %27 : vector<8x8xf32>
    %29 = arith.truncf %28 : vector<8x8xf32> to vector<8x8xbf16>
    %c0_13 = arith.constant 0 : index
    %c0_14 = arith.constant 0 : index
    %30 = vector.load %arg25[%c0_13, %c0_14] : memref<8x32xbf16, #tpu.memory_space<vmem>>, vector<8x8xbf16>
    %cst_15 = arith.constant dense<0.000000e+00> : vector<8x8xf32>
    %31 = tpu.matmul %29, %30, %cst_15 {dimension_numbers = #tpu.dot_dimension_numbers<[1], [0], [0], [1], [0, 0, 1, 1], [], []>} : vector<8x8xbf16>, vector<8x8xbf16>, vector<8x8xf32> -> vector<8x8xf32>
    %32 = arith.truncf %31 : vector<8x8xf32> to vector<8x8xbf16>
    %c0_16 = arith.constant 0 : index
    %c0_17 = arith.constant 0 : index
    %33 = vector.load %arg26[%c0_16, %c0_17] : memref<8x32xbf16, #tpu.memory_space<vmem>>, vector<8x8xbf16>
    tpu.vector_store %arg26[%c0_16, %c0_17], %32 {strides = array<i32>} : memref<8x32xbf16, #tpu.memory_space<vmem>>, vector<8x8xbf16>,
    %34 = vector.extract_strided_slice %15 {offsets = [0, 8], sizes = [8, 8], strides = [1, 1]} : vector<8x32xbf16> to vector<8x8xbf16>
    %c0_18 = arith.constant 0 : index
    %c8 = arith.constant 8 : index
    %35 = vector.load %arg24[%c0_18, %c8] : memref<8x32xbf16, #tpu.memory_space<vmem>>, vector<8x8xbf16>
    %cst_19 = arith.constant dense<0.000000e+00> : vector<8x8xf32>
    %36 = tpu.matmul %34, %35, %cst_19 {dimension_numbers = #tpu.dot_dimension_numbers<[1], [1], [0], [0], [0, 0, 1, 0], [], []>} : vector<8x8xbf16>, vector<8x8xbf16>, vector<8x8xf32> -> vector<8x8xf32>
    %cst_20 = arith.constant dense<0xFF800000> : vector<8xf32>
    %37 = vector.multi_reduction <maximumf>, %36, %cst_20 [1] : vector<8x8xf32> to vector<8xf32>
    %38 = vector.shape_cast %37 : vector<8xf32> to vector<8x1xf32>
    %39 = vector.broadcast %38 : vector<8x1xf32> to vector<8x8xf32>
    %40 = arith.subf %36, %39 : vector<8x8xf32>
    %41 = math.exp %40 : vector<8x8xf32>
    %cst_21 = arith.constant dense<0.000000e+00> : vector<8xf32>
    %42 = vector.multi_reduction <add>, %41, %cst_21 [1] : vector<8x8xf32> to vector<8xf32>
    %43 = vector.shape_cast %42 : vector<8xf32> to vector<8x1xf32>
    %44 = tpu.reciprocal %43 {approx = true} : vector<8x1xf32> -> vector<8x1xf32>
    %45 = vector.broadcast %44 : vector<8x1xf32> to vector<8x8xf32>
    %46 = arith.mulf %41, %45 : vector<8x8xf32>
    %47 = arith.truncf %46 : vector<8x8xf32> to vector<8x8xbf16>
    %c0_22 = arith.constant 0 : index
    %c8_23 = arith.constant 8 : index
    %48 = vector.load %arg25[%c0_22, %c8_23] : memref<8x32xbf16, #tpu.memory_space<vmem>>, vector<8x8xbf16>
    %cst_24 = arith.constant dense<0.000000e+00> : vector<8x8xf32>
    %49 = tpu.matmul %47, %48, %cst_24 {dimension_numbers = #tpu.dot_dimension_numbers<[1], [0], [0], [1], [0, 0, 1, 1], [], []>} : vector<8x8xbf16>, vector<8x8xbf16>, vector<8x8xf32> -> vector<8x8xf32>
    %50 = arith.truncf %49 : vector<8x8xf32> to vector<8x8xbf16>
    %c0_25 = arith.constant 0 : index
    %c8_26 = arith.constant 8 : index
    %51 = vector.load %arg26[%c0_25, %c8_26] : memref<8x32xbf16, #tpu.memory_space<vmem>>, vector<8x8xbf16>
    tpu.vector_store %arg26[%c0_25, %c8_26], %50 {strides = array<i32>} : memref<8x32xbf16, #tpu.memory_space<vmem>>, vector<8x8xbf16>,
    %52 = vector.extract_strided_slice %15 {offsets = [0, 16], sizes = [8, 8], strides = [1, 1]} : vector<8x32xbf16> to vector<8x8xbf16>
    %c0_27 = arith.constant 0 : index
    %c16 = arith.constant 16 : index
    %53 = vector.load %arg24[%c0_27, %c16] : memref<8x32xbf16, #tpu.memory_space<vmem>>, vector<8x8xbf16>
    %cst_28 = arith.constant dense<0.000000e+00> : vector<8x8xf32>
    %54 = tpu.matmul %52, %53, %cst_28 {dimension_numbers = #tpu.dot_dimension_numbers<[1], [1], [0], [0], [0, 0, 1, 0], [], []>} : vector<8x8xbf16>, vector<8x8xbf16>, vector<8x8xf32> -> vector<8x8xf32>
    %cst_29 = arith.constant dense<0xFF800000> : vector<8xf32>
    %55 = vector.multi_reduction <maximumf>, %54, %cst_29 [1] : vector<8x8xf32> to vector<8xf32>
    %56 = vector.shape_cast %55 : vector<8xf32> to vector<8x1xf32>
    %57 = vector.broadcast %56 : vector<8x1xf32> to vector<8x8xf32>
    %58 = arith.subf %54, %57 : vector<8x8xf32>
    %59 = math.exp %58 : vector<8x8xf32>
    %cst_30 = arith.constant dense<0.000000e+00> : vector<8xf32>
    %60 = vector.multi_reduction <add>, %59, %cst_30 [1] : vector<8x8xf32> to vector<8xf32>
    %61 = vector.shape_cast %60 : vector<8xf32> to vector<8x1xf32>
    %62 = tpu.reciprocal %61 {approx = true} : vector<8x1xf32> -> vector<8x1xf32>
    %63 = vector.broadcast %62 : vector<8x1xf32> to vector<8x8xf32>
    %64 = arith.mulf %59, %63 : vector<8x8xf32>
    %65 = arith.truncf %64 : vector<8x8xf32> to vector<8x8xbf16>
    %c0_31 = arith.constant 0 : index
    %c16_32 = arith.constant 16 : index
    %66 = vector.load %arg25[%c0_31, %c16_32] : memref<8x32xbf16, #tpu.memory_space<vmem>>, vector<8x8xbf16>
    %cst_33 = arith.constant dense<0.000000e+00> : vector<8x8xf32>
    %67 = tpu.matmul %65, %66, %cst_33 {dimension_numbers = #tpu.dot_dimension_numbers<[1], [0], [0], [1], [0, 0, 1, 1], [], []>} : vector<8x8xbf16>, vector<8x8xbf16>, vector<8x8xf32> -> vector<8x8xf32>
    %68 = arith.truncf %67 : vector<8x8xf32> to vector<8x8xbf16>
    %c0_34 = arith.constant 0 : index
    %c16_35 = arith.constant 16 : index
    %69 = vector.load %arg26[%c0_34, %c16_35] : memref<8x32xbf16, #tpu.memory_space<vmem>>, vector<8x8xbf16>
    tpu.vector_store %arg26[%c0_34, %c16_35], %68 {strides = array<i32>} : memref<8x32xbf16, #tpu.memory_space<vmem>>, vector<8x8xbf16>,
    %70 = vector.extract_strided_slice %15 {offsets = [0, 24], sizes = [8, 8], strides = [1, 1]} : vector<8x32xbf16> to vector<8x8xbf16>
    %c0_36 = arith.constant 0 : index
    %c24 = arith.constant 24 : index
    %71 = vector.load %arg24[%c0_36, %c24] : memref<8x32xbf16, #tpu.memory_space<vmem>>, vector<8x8xbf16>
    %cst_37 = arith.constant dense<0.000000e+00> : vector<8x8xf32>
    %72 = tpu.matmul %70, %71, %cst_37 {dimension_numbers = #tpu.dot_dimension_numbers<[1], [1], [0], [0], [0, 0, 1, 0], [], []>} : vector<8x8xbf16>, vector<8x8xbf16>, vector<8x8xf32> -> vector<8x8xf32>
    %cst_38 = arith.constant dense<0xFF800000> : vector<8xf32>
    %73 = vector.multi_reduction <maximumf>, %72, %cst_38 [1] : vector<8x8xf32> to vector<8xf32>
    %74 = vector.shape_cast %73 : vector<8xf32> to vector<8x1xf32>
    %75 = vector.broadcast %74 : vector<8x1xf32> to vector<8x8xf32>
    %76 = arith.subf %72, %75 : vector<8x8xf32>
    %77 = math.exp %76 : vector<8x8xf32>
    %cst_39 = arith.constant dense<0.000000e+00> : vector<8xf32>
    %78 = vector.multi_reduction <add>, %77, %cst_39 [1] : vector<8x8xf32> to vector<8xf32>
    %79 = vector.shape_cast %78 : vector<8xf32> to vector<8x1xf32>
    %80 = tpu.reciprocal %79 {approx = true} : vector<8x1xf32> -> vector<8x1xf32>
    %81 = vector.broadcast %80 : vector<8x1xf32> to vector<8x8xf32>
    %82 = arith.mulf %77, %81 : vector<8x8xf32>
    %83 = arith.truncf %82 : vector<8x8xf32> to vector<8x8xbf16>
    %c0_40 = arith.constant 0 : index
    %c24_41 = arith.constant 24 : index
    %84 = vector.load %arg25[%c0_40, %c24_41] : memref<8x32xbf16, #tpu.memory_space<vmem>>, vector<8x8xbf16>
    %cst_42 = arith.constant dense<0.000000e+00> : vector<8x8xf32>
    %85 = tpu.matmul %83, %84, %cst_42 {dimension_numbers = #tpu.dot_dimension_numbers<[1], [0], [0], [1], [0, 0, 1, 1], [], []>} : vector<8x8xbf16>, vector<8x8xbf16>, vector<8x8xf32> -> vector<8x8xf32>
    %86 = arith.truncf %85 : vector<8x8xf32> to vector<8x8xbf16>
    %c0_43 = arith.constant 0 : index
    %c24_44 = arith.constant 24 : index
    %87 = vector.load %arg26[%c0_43, %c24_44] : memref<8x32xbf16, #tpu.memory_space<vmem>>, vector<8x8xbf16>
    tpu.vector_store %arg26[%c0_43, %c24_44], %86 {strides = array<i32>} : memref<8x32xbf16, #tpu.memory_space<vmem>>, vector<8x8xbf16>,
    %c0_45 = arith.constant 0 : index
    %c0_46 = arith.constant 0 : index
    %88 = vector.load %arg26[%c0_45, %c0_46] : memref<8x32xbf16, #tpu.memory_space<vmem>>, vector<8x32xbf16>
    %c0_47 = arith.constant 0 : index
    %c0_48 = arith.constant 0 : index
    %89 = vector.load %arg11[%c0_47, %c0_48] : memref<32x32xbf16, #tpu.memory_space<vmem>>, vector<32x32xbf16>
    %cst_49 = arith.constant dense<0.000000e+00> : vector<8x32xf32>
    %90 = tpu.matmul %88, %89, %cst_49 {dimension_numbers = #tpu.dot_dimension_numbers<[1], [0], [0], [1], [0, 0, 1, 1], [], []>} : vector<8x32xbf16>, vector<32x32xbf16>, vector<8x32xf32> -> vector<8x32xf32>
    %c0_50 = arith.constant 0 : index
    %c0_51 = arith.constant 0 : index
    %91 = vector.load %arg12[%c0_50, %c0_51] : memref<1x32xf32, #tpu.memory_space<vmem>>, vector<1x32xf32>
    %92 = vector.shape_cast %91 : vector<1x32xf32> to vector<32xf32>
    %93 = vector.shape_cast %92 : vector<32xf32> to vector<1x32xf32>
    %94 = vector.broadcast %93 : vector<1x32xf32> to vector<8x32xf32>
    %95 = arith.addf %90, %94 : vector<8x32xf32>
    %96 = arith.addf %4, %95 : vector<8x32xf32>
    %c0_52 = arith.constant 0 : index
    %c0_53 = arith.constant 0 : index
    %97 = vector.load %arg17[%c0_52, %c0_53] : memref<1x32xf32, #tpu.memory_space<vmem>>, vector<1x32xf32>
    %98 = vector.shape_cast %97 : vector<1x32xf32> to vector<32xf32>
    %c0_54 = arith.constant 0 : index
    %c0_55 = arith.constant 0 : index
    %99 = vector.load %arg18[%c0_54, %c0_55] : memref<1x32xf32, #tpu.memory_space<vmem>>, vector<1x32xf32>
    %100 = vector.shape_cast %99 : vector<1x32xf32> to vector<32xf32>
    %cst_56 = arith.constant dense<0.000000e+00> : vector<8xf32>
    %101 = vector.multi_reduction <add>, %96, %cst_56 [1] : vector<8x32xf32> to vector<8xf32>
    %102 = vector.shape_cast %101 : vector<8xf32> to vector<8x1xf32>
    %cst_57 = arith.constant 3.200000e+01 : f32
    %103 = vector.broadcast %cst_57 : f32 to vector<8x1xf32>
    %104 = arith.divf %102, %103 : vector<8x1xf32>
    %105 = vector.broadcast %104 : vector<8x1xf32> to vector<8x32xf32>
    %106 = arith.subf %96, %105 : vector<8x32xf32>
    %107 = arith.mulf %106, %106 : vector<8x32xf32>
    %cst_58 = arith.constant dense<0.000000e+00> : vector<8xf32>
    %108 = vector.multi_reduction <add>, %107, %cst_58 [1] : vector<8x32xf32> to vector<8xf32>
    %109 = vector.shape_cast %108 : vector<8xf32> to vector<8x1xf32>
    %cst_59 = arith.constant 3.200000e+01 : f32
    %110 = vector.broadcast %cst_59 : f32 to vector<8x1xf32>
    %111 = arith.divf %109, %110 : vector<8x1xf32>
    %cst_60 = arith.constant 9.99999974E-6 : f32
    %112 = vector.broadcast %cst_60 : f32 to vector<8x1xf32>
    %113 = arith.addf %111, %112 : vector<8x1xf32>
    %114 = math.rsqrt %113 : vector<8x1xf32>
    %115 = vector.broadcast %114 : vector<8x1xf32> to vector<8x32xf32>
    %116 = arith.mulf %106, %115 : vector<8x32xf32>
    %117 = vector.shape_cast %98 : vector<32xf32> to vector<1x32xf32>
    %118 = vector.broadcast %117 : vector<1x32xf32> to vector<8x32xf32>
    %119 = arith.mulf %116, %118 : vector<8x32xf32>
    %120 = vector.shape_cast %100 : vector<32xf32> to vector<1x32xf32>
    %121 = vector.broadcast %120 : vector<1x32xf32> to vector<8x32xf32>
    %122 = arith.addf %119, %121 : vector<8x32xf32>
    %123 = arith.truncf %122 : vector<8x32xf32> to vector<8x32xbf16>
    %c0_61 = arith.constant 0 : index
    %c0_62 = arith.constant 0 : index
    %124 = vector.load %arg13[%c0_61, %c0_62] : memref<32x64xbf16, #tpu.memory_space<vmem>>, vector<32x64xbf16>
    %cst_63 = arith.constant dense<0.000000e+00> : vector<8x64xf32>
    %125 = tpu.matmul %123, %124, %cst_63 {dimension_numbers = #tpu.dot_dimension_numbers<[1], [0], [0], [1], [0, 0, 1, 1], [], []>} : vector<8x32xbf16>, vector<32x64xbf16>, vector<8x64xf32> -> vector<8x64xf32>
    %c0_64 = arith.constant 0 : index
    %c0_65 = arith.constant 0 : index
    %126 = vector.load %arg14[%c0_64, %c0_65] : memref<1x64xf32, #tpu.memory_space<vmem>>, vector<1x64xf32>
    %127 = vector.shape_cast %126 : vector<1x64xf32> to vector<64xf32>
    %128 = vector.shape_cast %127 : vector<64xf32> to vector<1x64xf32>
    %129 = vector.broadcast %128 : vector<1x64xf32> to vector<8x64xf32>
    %130 = arith.addf %125, %129 : vector<8x64xf32>
    %cst_66 = arith.constant 0.000000e+00 : f32
    %131 = vector.broadcast %cst_66 : f32 to vector<8x64xf32>
    %132 = arith.maximumf %130, %131 : vector<8x64xf32>
    %133 = arith.truncf %132 : vector<8x64xf32> to vector<8x64xbf16>
    %c0_67 = arith.constant 0 : index
    %c0_68 = arith.constant 0 : index
    %134 = vector.load %arg15[%c0_67, %c0_68] : memref<64x32xbf16, #tpu.memory_space<vmem>>, vector<64x32xbf16>
    %cst_69 = arith.constant dense<0.000000e+00> : vector<8x32xf32>
    %135 = tpu.matmul %133, %134, %cst_69 {dimension_numbers = #tpu.dot_dimension_numbers<[1], [0], [0], [1], [0, 0, 1, 1], [], []>} : vector<8x64xbf16>, vector<64x32xbf16>, vector<8x32xf32> -> vector<8x32xf32>
    %c0_70 = arith.constant 0 : index
    %c0_71 = arith.constant 0 : index
    %136 = vector.load %arg16[%c0_70, %c0_71] : memref<1x32xf32, #tpu.memory_space<vmem>>, vector<1x32xf32>
    %137 = vector.shape_cast %136 : vector<1x32xf32> to vector<32xf32>
    %138 = vector.shape_cast %137 : vector<32xf32> to vector<1x32xf32>
    %139 = vector.broadcast %138 : vector<1x32xf32> to vector<8x32xf32>
    %140 = arith.addf %135, %139 : vector<8x32xf32>
    %141 = arith.addf %122, %140 : vector<8x32xf32>
    %c0_72 = arith.constant 0 : index
    %c0_73 = arith.constant 0 : index
    %142 = vector.load %arg19[%c0_72, %c0_73] : memref<1x32xf32, #tpu.memory_space<vmem>>, vector<1x32xf32>
    %143 = vector.shape_cast %142 : vector<1x32xf32> to vector<32xf32>
    %c0_74 = arith.constant 0 : index
    %c0_75 = arith.constant 0 : index
    %144 = vector.load %arg20[%c0_74, %c0_75] : memref<1x32xf32, #tpu.memory_space<vmem>>, vector<1x32xf32>
    %145 = vector.shape_cast %144 : vector<1x32xf32> to vector<32xf32>
    %cst_76 = arith.constant dense<0.000000e+00> : vector<8xf32>
    %146 = vector.multi_reduction <add>, %141, %cst_76 [1] : vector<8x32xf32> to vector<8xf32>
    %147 = vector.shape_cast %146 : vector<8xf32> to vector<8x1xf32>
    %cst_77 = arith.constant 3.200000e+01 : f32
    %148 = vector.broadcast %cst_77 : f32 to vector<8x1xf32>
    %149 = arith.divf %147, %148 : vector<8x1xf32>
    %150 = vector.broadcast %149 : vector<8x1xf32> to vector<8x32xf32>
    %151 = arith.subf %141, %150 : vector<8x32xf32>
    %152 = arith.mulf %151, %151 : vector<8x32xf32>
    %cst_78 = arith.constant dense<0.000000e+00> : vector<8xf32>
    %153 = vector.multi_reduction <add>, %152, %cst_78 [1] : vector<8x32xf32> to vector<8xf32>
    %154 = vector.shape_cast %153 : vector<8xf32> to vector<8x1xf32>
    %cst_79 = arith.constant 3.200000e+01 : f32
    %155 = vector.broadcast %cst_79 : f32 to vector<8x1xf32>
    %156 = arith.divf %154, %155 : vector<8x1xf32>
    %cst_80 = arith.constant 9.99999974E-6 : f32
    %157 = vector.broadcast %cst_80 : f32 to vector<8x1xf32>
    %158 = arith.addf %156, %157 : vector<8x1xf32>
    %159 = math.rsqrt %158 : vector<8x1xf32>
    %160 = vector.broadcast %159 : vector<8x1xf32> to vector<8x32xf32>
    %161 = arith.mulf %151, %160 : vector<8x32xf32>
    %162 = vector.shape_cast %143 : vector<32xf32> to vector<1x32xf32>
    %163 = vector.broadcast %162 : vector<1x32xf32> to vector<8x32xf32>
    %164 = arith.mulf %161, %163 : vector<8x32xf32>
    %165 = vector.shape_cast %145 : vector<32xf32> to vector<1x32xf32>
    %166 = vector.broadcast %165 : vector<1x32xf32> to vector<8x32xf32>
    %167 = arith.addf %164, %166 : vector<8x32xf32>
    %c0_81 = arith.constant 0 : index
    %c0_82 = arith.constant 0 : index
    %168 = vector.load %arg21[%c0_81, %c0_82] : memref<1x32xf32, #tpu.memory_space<vmem>>, vector<1x32xf32>
    %169 = vector.shape_cast %168 : vector<1x32xf32> to vector<32xf32>
    %c0_83 = arith.constant 0 : index
    %c0_84 = arith.constant 0 : index
    %170 = vector.load %arg22[%c0_83, %c0_84] : memref<1x32xf32, #tpu.memory_space<vmem>>, vector<1x32xf32>
    %171 = vector.shape_cast %170 : vector<1x32xf32> to vector<32xf32>
    %cst_85 = arith.constant dense<0.000000e+00> : vector<8xf32>
    %172 = vector.multi_reduction <add>, %167, %cst_85 [1] : vector<8x32xf32> to vector<8xf32>
    %173 = vector.shape_cast %172 : vector<8xf32> to vector<8x1xf32>
    %cst_86 = arith.constant 3.200000e+01 : f32
    %174 = vector.broadcast %cst_86 : f32 to vector<8x1xf32>
    %175 = arith.divf %173, %174 : vector<8x1xf32>
    %176 = vector.broadcast %175 : vector<8x1xf32> to vector<8x32xf32>
    %177 = arith.subf %167, %176 : vector<8x32xf32>
    %178 = arith.mulf %177, %177 : vector<8x32xf32>
    %cst_87 = arith.constant dense<0.000000e+00> : vector<8xf32>
    %179 = vector.multi_reduction <add>, %178, %cst_87 [1] : vector<8x32xf32> to vector<8xf32>
    %180 = vector.shape_cast %179 : vector<8xf32> to vector<8x1xf32>
    %cst_88 = arith.constant 3.200000e+01 : f32
    %181 = vector.broadcast %cst_88 : f32 to vector<8x1xf32>
    %182 = arith.divf %180, %181 : vector<8x1xf32>
    %cst_89 = arith.constant 9.99999974E-6 : f32
    %183 = vector.broadcast %cst_89 : f32 to vector<8x1xf32>
    %184 = arith.addf %182, %183 : vector<8x1xf32>
    %185 = math.rsqrt %184 : vector<8x1xf32>
    %186 = vector.broadcast %185 : vector<8x1xf32> to vector<8x32xf32>
    %187 = arith.mulf %177, %186 : vector<8x32xf32>
    %188 = vector.shape_cast %169 : vector<32xf32> to vector<1x32xf32>
    %189 = vector.broadcast %188 : vector<1x32xf32> to vector<8x32xf32>
    %190 = arith.mulf %187, %189 : vector<8x32xf32>
    %191 = vector.shape_cast %171 : vector<32xf32> to vector<1x32xf32>
    %192 = vector.broadcast %191 : vector<1x32xf32> to vector<8x32xf32>
    %193 = arith.addf %190, %192 : vector<8x32xf32>
    %c0_90 = arith.constant 0 : index
    %c0_91 = arith.constant 0 : index
    %c0_92 = arith.constant 0 : index
    %194 = vector.load %arg23[%c0_90, %c0_91, %c0_92] : memref<1x8x32xf32, #tpu.memory_space<vmem>>, vector<1x8x32xf32>
    %195 = vector.shape_cast %194 : vector<1x8x32xf32> to vector<8x32xf32>
    %196 = vector.shape_cast %193 : vector<8x32xf32> to vector<1x8x32xf32>
    tpu.vector_store %arg23[%c0_90, %c0_91, %c0_92], %196 {strides = array<i32>} : memref<1x8x32xf32, #tpu.memory_space<vmem>>, vector<1x8x32xf32>,
    return
  }
  func.func @transform_0(%arg0: i32, %arg1: i32) -> (i32, i32, i32) {
    %c0_i32 = arith.constant 0 : i32
    %c0_i32_0 = arith.constant 0 : i32
    return %arg0, %arg1, %c0_i32 : i32, i32, i32
  }
  func.func @transform_1(%arg0: i32, %arg1: i32) -> (i32, i32, i32) {
    %c0_i32 = arith.constant 0 : i32
    %c0_i32_0 = arith.constant 0 : i32
    %c0_i32_1 = arith.constant 0 : i32
    return %arg0, %c0_i32, %c0_i32_0 : i32, i32, i32
  }
  func.func @transform_2(%arg0: i32, %arg1: i32) -> (i32, i32, i32) {
    %c0_i32 = arith.constant 0 : i32
    %c0_i32_0 = arith.constant 0 : i32
    %c0_i32_1 = arith.constant 0 : i32
    return %arg0, %c0_i32, %c0_i32_0 : i32, i32, i32
  }
  func.func @transform_3(%arg0: i32, %arg1: i32) -> (i32, i32) {
    %c0_i32 = arith.constant 0 : i32
    %c0_i32_0 = arith.constant 0 : i32
    %c0_i32_1 = arith.constant 0 : i32
    return %c0_i32, %c0_i32_0 : i32, i32
  }
  func.func @transform_4(%arg0: i32, %arg1: i32) -> (i32, i32) {
    %c0_i32 = arith.constant 0 : i32
    %c0_i32_0 = arith.constant 0 : i32
    %c0_i32_1 = arith.constant 0 : i32
    return %c0_i32, %c0_i32_0 : i32, i32
  }
  func.func @transform_5(%arg0: i32, %arg1: i32) -> (i32, i32) {
    %c0_i32 = arith.constant 0 : i32
    %c0_i32_0 = arith.constant 0 : i32
    %c0_i32_1 = arith.constant 0 : i32
    return %c0_i32, %c0_i32_0 : i32, i32
  }
  func.func @transform_6(%arg0: i32, %arg1: i32) -> (i32, i32) {
    %c0_i32 = arith.constant 0 : i32
    %c0_i32_0 = arith.constant 0 : i32
    %c0_i32_1 = arith.constant 0 : i32
    return %c0_i32, %c0_i32_0 : i32, i32
  }
  func.func @transform_7(%arg0: i32, %arg1: i32) -> (i32, i32) {
    %c0_i32 = arith.constant 0 : i32
    %c0_i32_0 = arith.constant 0 : i32
    %c0_i32_1 = arith.constant 0 : i32
    return %c0_i32, %c0_i32_0 : i32, i32
  }
  func.func @transform_8(%arg0: i32, %arg1: i32) -> (i32, i32) {
    %c0_i32 = arith.constant 0 : i32
    %c0_i32_0 = arith.constant 0 : i32
    %c0_i32_1 = arith.constant 0 : i32
    return %c0_i32, %c0_i32_0 : i32, i32
  }
  func.func @transform_9(%arg0: i32, %arg1: i32) -> (i32, i32) {
    %c0_i32 = arith.constant 0 : i32
    %c0_i32_0 = arith.constant 0 : i32
    %c0_i32_1 = arith.constant 0 : i32
    return %c0_i32, %c0_i32_0 : i32, i32
  }
  func.func @transform_10(%arg0: i32, %arg1: i32) -> (i32, i32) {
    %c0_i32 = arith.constant 0 : i32
    %c0_i32_0 = arith.constant 0 : i32
    %c0_i32_1 = arith.constant 0 : i32
    return %c0_i32, %c0_i32_0 : i32, i32
  }
  func.func @transform_11(%arg0: i32, %arg1: i32) -> (i32, i32) {
    %c0_i32 = arith.constant 0 : i32
    %c0_i32_0 = arith.constant 0 : i32
    %c0_i32_1 = arith.constant 0 : i32
    return %c0_i32, %c0_i32_0 : i32, i32
  }
  func.func @transform_12(%arg0: i32, %arg1: i32) -> (i32, i32) {
    %c0_i32 = arith.constant 0 : i32
    %c0_i32_0 = arith.constant 0 : i32
    %c0_i32_1 = arith.constant 0 : i32
    return %c0_i32, %c0_i32_0 : i32, i32
  }
  func.func @transform_13(%arg0: i32, %arg1: i32) -> (i32, i32) {
    %c0_i32 = arith.constant 0 : i32
    %c0_i32_0 = arith.constant 0 : i32
    %c0_i32_1 = arith.constant 0 : i32
    return %c0_i32, %c0_i32_0 : i32, i32
  }
  func.func @transform_14(%arg0: i32, %arg1: i32) -> (i32, i32) {
    %c0_i32 = arith.constant 0 : i32
    %c0_i32_0 = arith.constant 0 : i32
    %c0_i32_1 = arith.constant 0 : i32
    return %c0_i32, %c0_i32_0 : i32, i32
  }
  func.func @transform_15(%arg0: i32, %arg1: i32) -> (i32, i32) {
    %c0_i32 = arith.constant 0 : i32
    %c0_i32_0 = arith.constant 0 : i32
    %c0_i32_1 = arith.constant 0 : i32
    return %c0_i32, %c0_i32_0 : i32, i32
  }
  func.func @transform_16(%arg0: i32, %arg1: i32) -> (i32, i32) {
    %c0_i32 = arith.constant 0 : i32
    %c0_i32_0 = arith.constant 0 : i32
    %c0_i32_1 = arith.constant 0 : i32
    return %c0_i32, %c0_i32_0 : i32, i32
  }
  func.func @transform_17(%arg0: i32, %arg1: i32) -> (i32, i32) {
    %c0_i32 = arith.constant 0 : i32
    %c0_i32_0 = arith.constant 0 : i32
    %c0_i32_1 = arith.constant 0 : i32
    return %c0_i32, %c0_i32_0 : i32, i32
  }
  func.func @transform_18(%arg0: i32, %arg1: i32) -> (i32, i32) {
    %c0_i32 = arith.constant 0 : i32
    %c0_i32_0 = arith.constant 0 : i32
    %c0_i32_1 = arith.constant 0 : i32
    return %c0_i32, %c0_i32_0 : i32, i32
  }
  func.func @transform_19(%arg0: i32, %arg1: i32) -> (i32, i32) {
    %c0_i32 = arith.constant 0 : i32
    %c0_i32_0 = arith.constant 0 : i32
    %c0_i32_1 = arith.constant 0 : i32
    return %c0_i32, %c0_i32_0 : i32, i32
  }
  func.func @transform_20(%arg0: i32, %arg1: i32) -> (i32, i32) {
    %c0_i32 = arith.constant 0 : i32
    %c0_i32_0 = arith.constant 0 : i32
    %c0_i32_1 = arith.constant 0 : i32
    return %c0_i32, %c0_i32_0 : i32, i32
  }
  func.func @transform_21(%arg0: i32, %arg1: i32) -> (i32, i32, i32) {
    %c0_i32 = arith.constant 0 : i32
    %c0_i32_0 = arith.constant 0 : i32
    return %arg0, %arg1, %c0_i32 : i32, i32, i32
  }
}

module attributes {stable_mosaic.version = 11 : i64} {
  func.func @encoder_layer_kernel(%arg0: i32, %arg1: i32, %arg2: memref<1x8x32xf32, #tpu.memory_space<vmem>>, %arg3: memref<1x8x32xbf16, #tpu.memory_space<vmem>>, %arg4: memref<1x8x32xbf16, #tpu.memory_space<vmem>>, %arg5: memref<32x32xbf16, #tpu.memory_space<vmem>>, %arg6: memref<1x32xf32, #tpu.memory_space<vmem>>, %arg7: memref<32x32xbf16, #tpu.memory_space<vmem>>, %arg8: memref<1x32xf32, #tpu.memory_space<vmem>>, %arg9: memref<32x32xbf16, #tpu.memory_space<vmem>>, %arg10: memref<1x32xf32, #tpu.memory_space<vmem>>, %arg11: memref<32x32xbf16, #tpu.memory_space<vmem>>, %arg12: memref<1x32xf32, #tpu.memory_space<vmem>>, %arg13: memref<32x64xbf16, #tpu.memory_space<vmem>>, %arg14: memref<1x64xf32, #tpu.memory_space<vmem>>, %arg15: memref<64x32xbf16, #tpu.memory_space<vmem>>, %arg16: memref<1x32xf32, #tpu.memory_space<vmem>>, %arg17: memref<1x32xf32, #tpu.memory_space<vmem>>, %arg18: memref<1x32xf32, #tpu.memory_space<vmem>>, %arg19: memref<1x32xf32, #tpu.memory_space<vmem>>, %arg20: memref<1x32xf32, #tpu.memory_space<vmem>>, %arg21: memref<1x32xf32, #tpu.memory_space<vmem>>, %arg22: memref<1x32xf32, #tpu.memory_space<vmem>>, %arg23: memref<1x8x32xf32, #tpu.memory_space<vmem>>, %arg24: memref<8x32xbf16, #tpu.memory_space<vmem>>, %arg25: memref<8x32xbf16, #tpu.memory_space<vmem>>, %arg26: memref<8x32xbf16, #tpu.memory_space<vmem>>) attributes {dimension_semantics = [#tpu.dimension_semantics<parallel>, #tpu.dimension_semantics<arbitrary>], iteration_bounds = array<i64: 2, 1>, scalar_prefetch = 0 : i64, scratch_operands = 3 : i64, tpu.core_type = #tpu.core_type<tc>, window_params = [{transform_indices = @transform_0, window_bounds = array<i64: 1, 8, 32>}, {transform_indices = @transform_1, window_bounds = array<i64: 1, 8, 32>}, {transform_indices = @transform_2, window_bounds = array<i64: 1, 8, 32>}, {pipeline_mode = #tpu.pipeline_mode<synchronous>, transform_indices = @transform_3, window_bounds = array<i64: 32, 32>}, {pipeline_mode = #tpu.pipeline_mode<synchronous>, transform_indices = @transform_4, window_bounds = array<i64: 1, 32>}, {pipeline_mode = #tpu.pipeline_mode<synchronous>, transform_indices = @transform_5, window_bounds = array<i64: 32, 32>}, {pipeline_mode = #tpu.pipeline_mode<synchronous>, transform_indices = @transform_6, window_bounds = array<i64: 1, 32>}, {pipeline_mode = #tpu.pipeline_mode<synchronous>, transform_indices = @transform_7, window_bounds = array<i64: 32, 32>}, {pipeline_mode = #tpu.pipeline_mode<synchronous>, transform_indices = @transform_8, window_bounds = array<i64: 1, 32>}, {pipeline_mode = #tpu.pipeline_mode<synchronous>, transform_indices = @transform_9, window_bounds = array<i64: 32, 32>}, {pipeline_mode = #tpu.pipeline_mode<synchronous>, transform_indices = @transform_10, window_bounds = array<i64: 1, 32>}, {pipeline_mode = #tpu.pipeline_mode<synchronous>, transform_indices = @transform_11, window_bounds = array<i64: 32, 64>}, {pipeline_mode = #tpu.pipeline_mode<synchronous>, transform_indices = @transform_12, window_bounds = array<i64: 1, 64>}, {pipeline_mode = #tpu.pipeline_mode<synchronous>, transform_indices = @transform_13, window_bounds = array<i64: 64, 32>}, {pipeline_mode = #tpu.pipeline_mode<synchronous>, transform_indices = @transform_14, window_bounds = array<i64: 1, 32>}, {pipeline_mode = #tpu.pipeline_mode<synchronous>, transform_indices = @transform_15, window_bounds = array<i64: 1, 32>}, {pipeline_mode = #tpu.pipeline_mode<synchronous>, transform_indices = @transform_16, window_bounds = array<i64: 1, 32>}, {pipeline_mode = #tpu.pipeline_mode<synchronous>, transform_indices = @transform_17, window_bounds = array<i64: 1, 32>}, {pipeline_mode = #tpu.pipeline_mode<synchronous>, transform_indices = @transform_18, window_bounds = array<i64: 1, 32>}, {pipeline_mode = #tpu.pipeline_mode<synchronous>, transform_indices = @transform_19, window_bounds = array<i64: 1, 32>}, {pipeline_mode = #tpu.pipeline_mode<synchronous>, transform_indices = @transform_20, window_bounds = array<i64: 1, 32>}, {transform_indices = @transform_21, window_bounds = array<i64: 1, 8, 32>}]} {
    %c0_i32 = arith.constant 0 : i32
    %0 = arith.cmpi eq, %arg1, %c0_i32 : i32
    %1 = arith.extui %0 : i1 to i32
    %c0_i32_0 = arith.constant 0 : i32
    %2 = arith.cmpi ne, %1, %c0_i32_0 : i32
    scf.if %2 {
      %c0_93 = arith.constant 0 : index
      %c0_94 = arith.constant 0 : index
      %c0_95 = arith.constant 0 : index
      %197 = vector.load %arg3[%c0_93, %c0_94, %c0_95] : memref<1x8x32xbf16, #tpu.memory_space<vmem>>, vector<1x8x32xbf16>
      %198 = vector.shape_cast %197 : vector<1x8x32xbf16> to vector<8x32xbf16>
      %c0_96 = arith.constant 0 : index
      %c0_97 = arith.constant 0 : index
      %199 = vector.load %arg7[%c0_96, %c0_97] : memref<32x32xbf16, #tpu.memory_space<vmem>>, vector<32x32xbf16>
      %cst_98 = arith.constant dense<0.000000e+00> : vector<8x32xf32>
      %200 = tpu.matmul %198, %199, %cst_98 {dimension_numbers = #tpu.dot_dimension_numbers<[1], [0], [0], [1], [0, 0, 1, 1], [], []>} : vector<8x32xbf16>, vector<32x32xbf16>, vector<8x32xf32> -> vector<8x32xf32>
      %c0_99 = arith.constant 0 : index
      %c0_100 = arith.constant 0 : index
      %201 = vector.load %arg8[%c0_99, %c0_100] : memref<1x32xf32, #tpu.memory_space<vmem>>, vector<1x32xf32>
      %202 = vector.shape_cast %201 : vector<1x32xf32> to vector<32xf32>
      %203 = vector.shape_cast %202 : vector<32xf32> to vector<1x32xf32>
      %204 = vector.broadcast %203 : vector<1x32xf32> to vector<8x32xf32>
      %205 = arith.addf %200, %204 : vector<8x32xf32>
      %c0_101 = arith.constant 0 : index
      %c0_102 = arith.constant 0 : index
      %c0_103 = arith.constant 0 : index
      %206 = vector.load %arg4[%c0_101, %c0_102, %c0_103] : memref<1x8x32xbf16, #tpu.memory_space<vmem>>, vector<1x8x32xbf16>
      %207 = vector.shape_cast %206 : vector<1x8x32xbf16> to vector<8x32xbf16>
      %c0_104 = arith.constant 0 : index
      %c0_105 = arith.constant 0 : index
      %208 = vector.load %arg9[%c0_104, %c0_105] : memref<32x32xbf16, #tpu.memory_space<vmem>>, vector<32x32xbf16>
      %cst_106 = arith.constant dense<0.000000e+00> : vector<8x32xf32>
      %209 = tpu.matmul %207, %208, %cst_106 {dimension_numbers = #tpu.dot_dimension_numbers<[1], [0], [0], [1], [0, 0, 1, 1], [], []>} : vector<8x32xbf16>, vector<32x32xbf16>, vector<8x32xf32> -> vector<8x32xf32>
      %c0_107 = arith.constant 0 : index
      %c0_108 = arith.constant 0 : index
      %210 = vector.load %arg10[%c0_107, %c0_108] : memref<1x32xf32, #tpu.memory_space<vmem>>, vector<1x32xf32>
      %211 = vector.shape_cast %210 : vector<1x32xf32> to vector<32xf32>
      %212 = vector.shape_cast %211 : vector<32xf32> to vector<1x32xf32>
      %213 = vector.broadcast %212 : vector<1x32xf32> to vector<8x32xf32>
      %214 = arith.addf %209, %213 : vector<8x32xf32>
      %215 = arith.truncf %205 : vector<8x32xf32> to vector<8x32xbf16>
      %c0_109 = arith.constant 0 : index
      %c0_110 = arith.constant 0 : index
      %216 = vector.load %arg24[%c0_109, %c0_110] : memref<8x32xbf16, #tpu.memory_space<vmem>>, vector<8x32xbf16>
      tpu.vector_store %arg24[%c0_109, %c0_110], %215 {strides = array<i32>} : memref<8x32xbf16, #tpu.memory_space<vmem>>, vector<8x32xbf16>,
      %217 = arith.truncf %214 : vector<8x32xf32> to vector<8x32xbf16>
      %c0_111 = arith.constant 0 : index
      %c0_112 = arith.constant 0 : index
      %218 = vector.load %arg25[%c0_111, %c0_112] : memref<8x32xbf16, #tpu.memory_space<vmem>>, vector<8x32xbf16>
      tpu.vector_store %arg25[%c0_111, %c0_112], %217 {strides = array<i32>} : memref<8x32xbf16, #tpu.memory_space<vmem>>, vector<8x32xbf16>,
    } else {
    }
    %c0 = arith.constant 0 : index
    %c0_1 = arith.constant 0 : index
    %c0_2 = arith.constant 0 : index
    %3 = vector.load %arg2[%c0, %c0_1, %c0_2] : memref<1x8x32xf32, #tpu.memory_space<vmem>>, vector<1x8x32xf32>
    %4 = vector.shape_cast %3 : vector<1x8x32xf32> to vector<8x32xf32>
    %5 = arith.truncf %4 : vector<8x32xf32> to vector<8x32xbf16>
    %c0_3 = arith.constant 0 : index
    %c0_4 = arith.constant 0 : index
    %6 = vector.load %arg5[%c0_3, %c0_4] : memref<32x32xbf16, #tpu.memory_space<vmem>>, vector<32x32xbf16>
    %cst = arith.constant dense<0.000000e+00> : vector<8x32xf32>
    %7 = tpu.matmul %5, %6, %cst {dimension_numbers = #tpu.dot_dimension_numbers<[1], [0], [0], [1], [0, 0, 1, 1], [], []>} : vector<8x32xbf16>, vector<32x32xbf16>, vector<8x32xf32> -> vector<8x32xf32>
    %c0_5 = arith.constant 0 : index
    %c0_6 = arith.constant 0 : index
    %8 = vector.load %arg6[%c0_5, %c0_6] : memref<1x32xf32, #tpu.memory_space<vmem>>, vector<1x32xf32>
    %9 = vector.shape_cast %8 : vector<1x32xf32> to vector<32xf32>
    %10 = vector.shape_cast %9 : vector<32xf32> to vector<1x32xf32>
    %11 = vector.broadcast %10 : vector<1x32xf32> to vector<8x32xf32>
    %12 = arith.addf %7, %11 : vector<8x32xf32>
    %cst_7 = arith.constant 0.353553385 : f32
    %13 = vector.broadcast %cst_7 : f32 to vector<8x32xf32>
    %14 = arith.mulf %12, %13 : vector<8x32xf32>
    %15 = arith.truncf %14 : vector<8x32xf32> to vector<8x32xbf16>
    %16 = vector.extract_strided_slice %15 {offsets = [0, 0], sizes = [8, 8], strides = [1, 1]} : vector<8x32xbf16> to vector<8x8xbf16>
    %c0_8 = arith.constant 0 : index
    %c0_9 = arith.constant 0 : index
    %17 = vector.load %arg24[%c0_8, %c0_9] : memref<8x32xbf16, #tpu.memory_space<vmem>>, vector<8x8xbf16>
    %cst_10 = arith.constant dense<0.000000e+00> : vector<8x8xf32>
    %18 = tpu.matmul %16, %17, %cst_10 {dimension_numbers = #tpu.dot_dimension_numbers<[1], [1], [0], [0], [0, 0, 1, 0], [], []>} : vector<8x8xbf16>, vector<8x8xbf16>, vector<8x8xf32> -> vector<8x8xf32>
    %cst_11 = arith.constant dense<0xFF800000> : vector<8xf32>
    %19 = vector.multi_reduction <maximumf>, %18, %cst_11 [1] : vector<8x8xf32> to vector<8xf32>
    %20 = vector.shape_cast %19 : vector<8xf32> to vector<8x1xf32>
    %21 = vector.broadcast %20 : vector<8x1xf32> to vector<8x8xf32>
    %22 = arith.subf %18, %21 : vector<8x8xf32>
    %23 = math.exp %22 : vector<8x8xf32>
    %cst_12 = arith.constant dense<0.000000e+00> : vector<8xf32>
    %24 = vector.multi_reduction <add>, %23, %cst_12 [1] : vector<8x8xf32> to vector<8xf32>
    %25 = vector.shape_cast %24 : vector<8xf32> to vector<8x1xf32>
    %26 = tpu.reciprocal %25 {approx = true} : vector<8x1xf32> -> vector<8x1xf32>
    %27 = vector.broadcast %26 : vector<8x1xf32> to vector<8x8xf32>
    %28 = arith.mulf %23, %27 : vector<8x8xf32>
    %29 = arith.truncf %28 : vector<8x8xf32> to vector<8x8xbf16>
    %c0_13 = arith.constant 0 : index
    %c0_14 = arith.constant 0 : index
    %30 = vector.load %arg25[%c0_13, %c0_14] : memref<8x32xbf16, #tpu.memory_space<vmem>>, vector<8x8xbf16>
    %cst_15 = arith.constant dense<0.000000e+00> : vector<8x8xf32>
    %31 = tpu.matmul %29, %30, %cst_15 {dimension_numbers = #tpu.dot_dimension_numbers<[1], [0], [0], [1], [0, 0, 1, 1], [], []>} : vector<8x8xbf16>, vector<8x8xbf16>, vector<8x8xf32> -> vector<8x8xf32>
    %32 = arith.truncf %31 : vector<8x8xf32> to vector<8x8xbf16>
    %c0_16 = arith.constant 0 : index
    %c0_17 = arith.constant 0 : index
    %33 = vector.load %arg26[%c0_16, %c0_17] : memref<8x32xbf16, #tpu.memory_space<vmem>>, vector<8x8xbf16>
    tpu.vector_store %arg26[%c0_16, %c0_17], %32 {strides = array<i32>} : memref<8x32xbf16, #tpu.memory_space<vmem>>, vector<8x8xbf16>,
    %34 = vector.extract_strided_slice %15 {offsets = [0, 8], sizes = [8, 8], strides = [1, 1]} : vector<8x32xbf16> to vector<8x8xbf16>
    %c0_18 = arith.constant 0 : index
    %c8 = arith.constant 8 : index
    %35 = vector.load %arg24[%c0_18, %c8] : memref<8x32xbf16, #tpu.memory_space<vmem>>, vector<8x8xbf16>
    %cst_19 = arith.constant dense<0.000000e+00> : vector<8x8xf32>
    %36 = tpu.matmul %34, %35, %cst_19 {dimension_numbers = #tpu.dot_dimension_numbers<[1], [1], [0], [0], [0, 0, 1, 0], [], []>} : vector<8x8xbf16>, vector<8x8xbf16>, vector<8x8xf32> -> vector<8x8xf32>
    %cst_20 = arith.constant dense<0xFF800000> : vector<8xf32>
    %37 = vector.multi_reduction <maximumf>, %36, %cst_20 [1] : vector<8x8xf32> to vector<8xf32>
    %38 = vector.shape_cast %37 : vector<8xf32> to vector<8x1xf32>
    %39 = vector.broadcast %38 : vector<8x1xf32> to vector<8x8xf32>
    %40 = arith.subf %36, %39 : vector<8x8xf32>
    %41 = math.exp %40 : vector<8x8xf32>
    %cst_21 = arith.constant dense<0.000000e+00> : vector<8xf32>
    %42 = vector.multi_reduction <add>, %41, %cst_21 [1] : vector<8x8xf32> to vector<8xf32>
    %43 = vector.shape_cast %42 : vector<8xf32> to vector<8x1xf32>
    %44 = tpu.reciprocal %43 {approx = true} : vector<8x1xf32> -> vector<8x1xf32>
    %45 = vector.broadcast %44 : vector<8x1xf32> to vector<8x8xf32>
    %46 = arith.mulf %41, %45 : vector<8x8xf32>
    %47 = arith.truncf %46 : vector<8x8xf32> to vector<8x8xbf16>
    %c0_22 = arith.constant 0 : index
    %c8_23 = arith.constant 8 : index
    %48 = vector.load %arg25[%c0_22, %c8_23] : memref<8x32xbf16, #tpu.memory_space<vmem>>, vector<8x8xbf16>
    %cst_24 = arith.constant dense<0.000000e+00> : vector<8x8xf32>
    %49 = tpu.matmul %47, %48, %cst_24 {dimension_numbers = #tpu.dot_dimension_numbers<[1], [0], [0], [1], [0, 0, 1, 1], [], []>} : vector<8x8xbf16>, vector<8x8xbf16>, vector<8x8xf32> -> vector<8x8xf32>
    %50 = arith.truncf %49 : vector<8x8xf32> to vector<8x8xbf16>
    %c0_25 = arith.constant 0 : index
    %c8_26 = arith.constant 8 : index
    %51 = vector.load %arg26[%c0_25, %c8_26] : memref<8x32xbf16, #tpu.memory_space<vmem>>, vector<8x8xbf16>
    tpu.vector_store %arg26[%c0_25, %c8_26], %50 {strides = array<i32>} : memref<8x32xbf16, #tpu.memory_space<vmem>>, vector<8x8xbf16>,
    %52 = vector.extract_strided_slice %15 {offsets = [0, 16], sizes = [8, 8], strides = [1, 1]} : vector<8x32xbf16> to vector<8x8xbf16>
    %c0_27 = arith.constant 0 : index
    %c16 = arith.constant 16 : index
    %53 = vector.load %arg24[%c0_27, %c16] : memref<8x32xbf16, #tpu.memory_space<vmem>>, vector<8x8xbf16>
    %cst_28 = arith.constant dense<0.000000e+00> : vector<8x8xf32>
    %54 = tpu.matmul %52, %53, %cst_28 {dimension_numbers = #tpu.dot_dimension_numbers<[1], [1], [0], [0], [0, 0, 1, 0], [], []>} : vector<8x8xbf16>, vector<8x8xbf16>, vector<8x8xf32> -> vector<8x8xf32>
    %cst_29 = arith.constant dense<0xFF800000> : vector<8xf32>
    %55 = vector.multi_reduction <maximumf>, %54, %cst_29 [1] : vector<8x8xf32> to vector<8xf32>
    %56 = vector.shape_cast %55 : vector<8xf32> to vector<8x1xf32>
    %57 = vector.broadcast %56 : vector<8x1xf32> to vector<8x8xf32>
    %58 = arith.subf %54, %57 : vector<8x8xf32>
    %59 = math.exp %58 : vector<8x8xf32>
    %cst_30 = arith.constant dense<0.000000e+00> : vector<8xf32>
    %60 = vector.multi_reduction <add>, %59, %cst_30 [1] : vector<8x8xf32> to vector<8xf32>
    %61 = vector.shape_cast %60 : vector<8xf32> to vector<8x1xf32>
    %62 = tpu.reciprocal %61 {approx = true} : vector<8x1xf32> -> vector<8x1xf32>
    %63 = vector.broadcast %62 : vector<8x1xf32> to vector<8x8xf32>
    %64 = arith.mulf %59, %63 : vector<8x8xf32>
    %65 = arith.truncf %64 : vector<8x8xf32> to vector<8x8xbf16>
    %c0_31 = arith.constant 0 : index
    %c16_32 = arith.constant 16 : index
    %66 = vector.load %arg25[%c0_31, %c16_32] : memref<8x32xbf16, #tpu.memory_space<vmem>>, vector<8x8xbf16>
    %cst_33 = arith.constant dense<0.000000e+00> : vector<8x8xf32>
    %67 = tpu.matmul %65, %66, %cst_33 {dimension_numbers = #tpu.dot_dimension_numbers<[1], [0], [0], [1], [0, 0, 1, 1], [], []>} : vector<8x8xbf16>, vector<8x8xbf16>, vector<8x8xf32> -> vector<8x8xf32>
    %68 = arith.truncf %67 : vector<8x8xf32> to vector<8x8xbf16>
    %c0_34 = arith.constant 0 : index
    %c16_35 = arith.constant 16 : index
    %69 = vector.load %arg26[%c0_34, %c16_35] : memref<8x32xbf16, #tpu.memory_space<vmem>>, vector<8x8xbf16>
    tpu.vector_store %arg26[%c0_34, %c16_35], %68 {strides = array<i32>} : memref<8x32xbf16, #tpu.memory_space<vmem>>, vector<8x8xbf16>,
    %70 = vector.extract_strided_slice %15 {offsets = [0, 24], sizes = [8, 8], strides = [1, 1]} : vector<8x32xbf16> to vector<8x8xbf16>
    %c0_36 = arith.constant 0 : index
    %c24 = arith.constant 24 : index
    %71 = vector.load %arg24[%c0_36, %c24] : memref<8x32xbf16, #tpu.memory_space<vmem>>, vector<8x8xbf16>
    %cst_37 = arith.constant dense<0.000000e+00> : vector<8x8xf32>
    %72 = tpu.matmul %70, %71, %cst_37 {dimension_numbers = #tpu.dot_dimension_numbers<[1], [1], [0], [0], [0, 0, 1, 0], [], []>} : vector<8x8xbf16>, vector<8x8xbf16>, vector<8x8xf32> -> vector<8x8xf32>
    %cst_38 = arith.constant dense<0xFF800000> : vector<8xf32>
    %73 = vector.multi_reduction <maximumf>, %72, %cst_38 [1] : vector<8x8xf32> to vector<8xf32>
    %74 = vector.shape_cast %73 : vector<8xf32> to vector<8x1xf32>
    %75 = vector.broadcast %74 : vector<8x1xf32> to vector<8x8xf32>
    %76 = arith.subf %72, %75 : vector<8x8xf32>
    %77 = math.exp %76 : vector<8x8xf32>
    %cst_39 = arith.constant dense<0.000000e+00> : vector<8xf32>
    %78 = vector.multi_reduction <add>, %77, %cst_39 [1] : vector<8x8xf32> to vector<8xf32>
    %79 = vector.shape_cast %78 : vector<8xf32> to vector<8x1xf32>
    %80 = tpu.reciprocal %79 {approx = true} : vector<8x1xf32> -> vector<8x1xf32>
    %81 = vector.broadcast %80 : vector<8x1xf32> to vector<8x8xf32>
    %82 = arith.mulf %77, %81 : vector<8x8xf32>
    %83 = arith.truncf %82 : vector<8x8xf32> to vector<8x8xbf16>
    %c0_40 = arith.constant 0 : index
    %c24_41 = arith.constant 24 : index
    %84 = vector.load %arg25[%c0_40, %c24_41] : memref<8x32xbf16, #tpu.memory_space<vmem>>, vector<8x8xbf16>
    %cst_42 = arith.constant dense<0.000000e+00> : vector<8x8xf32>
    %85 = tpu.matmul %83, %84, %cst_42 {dimension_numbers = #tpu.dot_dimension_numbers<[1], [0], [0], [1], [0, 0, 1, 1], [], []>} : vector<8x8xbf16>, vector<8x8xbf16>, vector<8x8xf32> -> vector<8x8xf32>
    %86 = arith.truncf %85 : vector<8x8xf32> to vector<8x8xbf16>
    %c0_43 = arith.constant 0 : index
    %c24_44 = arith.constant 24 : index
    %87 = vector.load %arg26[%c0_43, %c24_44] : memref<8x32xbf16, #tpu.memory_space<vmem>>, vector<8x8xbf16>
    tpu.vector_store %arg26[%c0_43, %c24_44], %86 {strides = array<i32>} : memref<8x32xbf16, #tpu.memory_space<vmem>>, vector<8x8xbf16>,
    %c0_45 = arith.constant 0 : index
    %c0_46 = arith.constant 0 : index
    %88 = vector.load %arg26[%c0_45, %c0_46] : memref<8x32xbf16, #tpu.memory_space<vmem>>, vector<8x32xbf16>
    %c0_47 = arith.constant 0 : index
    %c0_48 = arith.constant 0 : index
    %89 = vector.load %arg11[%c0_47, %c0_48] : memref<32x32xbf16, #tpu.memory_space<vmem>>, vector<32x32xbf16>
    %cst_49 = arith.constant dense<0.000000e+00> : vector<8x32xf32>
    %90 = tpu.matmul %88, %89, %cst_49 {dimension_numbers = #tpu.dot_dimension_numbers<[1], [0], [0], [1], [0, 0, 1, 1], [], []>} : vector<8x32xbf16>, vector<32x32xbf16>, vector<8x32xf32> -> vector<8x32xf32>
    %c0_50 = arith.constant 0 : index
    %c0_51 = arith.constant 0 : index
    %91 = vector.load %arg12[%c0_50, %c0_51] : memref<1x32xf32, #tpu.memory_space<vmem>>, vector<1x32xf32>
    %92 = vector.shape_cast %91 : vector<1x32xf32> to vector<32xf32>
    %93 = vector.shape_cast %92 : vector<32xf32> to vector<1x32xf32>
    %94 = vector.broadcast %93 : vector<1x32xf32> to vector<8x32xf32>
    %95 = arith.addf %90, %94 : vector<8x32xf32>
    %96 = arith.addf %4, %95 : vector<8x32xf32>
    %c0_52 = arith.constant 0 : index
    %c0_53 = arith.constant 0 : index
    %97 = vector.load %arg17[%c0_52, %c0_53] : memref<1x32xf32, #tpu.memory_space<vmem>>, vector<1x32xf32>
    %98 = vector.shape_cast %97 : vector<1x32xf32> to vector<32xf32>
    %c0_54 = arith.constant 0 : index
    %c0_55 = arith.constant 0 : index
    %99 = vector.load %arg18[%c0_54, %c0_55] : memref<1x32xf32, #tpu.memory_space<vmem>>, vector<1x32xf32>
    %100 = vector.shape_cast %99 : vector<1x32xf32> to vector<32xf32>
    %cst_56 = arith.constant dense<0.000000e+00> : vector<8xf32>
    %101 = vector.multi_reduction <add>, %96, %cst_56 [1] : vector<8x32xf32> to vector<8xf32>
    %102 = vector.shape_cast %101 : vector<8xf32> to vector<8x1xf32>
    %cst_57 = arith.constant 3.200000e+01 : f32
    %103 = vector.broadcast %cst_57 : f32 to vector<8x1xf32>
    %104 = arith.divf %102, %103 : vector<8x1xf32>
    %105 = vector.broadcast %104 : vector<8x1xf32> to vector<8x32xf32>
    %106 = arith.subf %96, %105 : vector<8x32xf32>
    %107 = arith.mulf %106, %106 : vector<8x32xf32>
    %cst_58 = arith.constant dense<0.000000e+00> : vector<8xf32>
    %108 = vector.multi_reduction <add>, %107, %cst_58 [1] : vector<8x32xf32> to vector<8xf32>
    %109 = vector.shape_cast %108 : vector<8xf32> to vector<8x1xf32>
    %cst_59 = arith.constant 3.200000e+01 : f32
    %110 = vector.broadcast %cst_59 : f32 to vector<8x1xf32>
    %111 = arith.divf %109, %110 : vector<8x1xf32>
    %cst_60 = arith.constant 9.99999974E-6 : f32
    %112 = vector.broadcast %cst_60 : f32 to vector<8x1xf32>
    %113 = arith.addf %111, %112 : vector<8x1xf32>
    %114 = math.rsqrt %113 : vector<8x1xf32>
    %115 = vector.broadcast %114 : vector<8x1xf32> to vector<8x32xf32>
    %116 = arith.mulf %106, %115 : vector<8x32xf32>
    %117 = vector.shape_cast %98 : vector<32xf32> to vector<1x32xf32>
    %118 = vector.broadcast %117 : vector<1x32xf32> to vector<8x32xf32>
    %119 = arith.mulf %116, %118 : vector<8x32xf32>
    %120 = vector.shape_cast %100 : vector<32xf32> to vector<1x32xf32>
    %121 = vector.broadcast %120 : vector<1x32xf32> to vector<8x32xf32>
    %122 = arith.addf %119, %121 : vector<8x32xf32>
    %123 = arith.truncf %122 : vector<8x32xf32> to vector<8x32xbf16>
    %c0_61 = arith.constant 0 : index
    %c0_62 = arith.constant 0 : index
    %124 = vector.load %arg13[%c0_61, %c0_62] : memref<32x64xbf16, #tpu.memory_space<vmem>>, vector<32x64xbf16>
    %cst_63 = arith.constant dense<0.000000e+00> : vector<8x64xf32>
    %125 = tpu.matmul %123, %124, %cst_63 {dimension_numbers = #tpu.dot_dimension_numbers<[1], [0], [0], [1], [0, 0, 1, 1], [], []>} : vector<8x32xbf16>, vector<32x64xbf16>, vector<8x64xf32> -> vector<8x64xf32>
    %c0_64 = arith.constant 0 : index
    %c0_65 = arith.constant 0 : index
    %126 = vector.load %arg14[%c0_64, %c0_65] : memref<1x64xf32, #tpu.memory_space<vmem>>, vector<1x64xf32>
    %127 = vector.shape_cast %126 : vector<1x64xf32> to vector<64xf32>
    %128 = vector.shape_cast %127 : vector<64xf32> to vector<1x64xf32>
    %129 = vector.broadcast %128 : vector<1x64xf32> to vector<8x64xf32>
    %130 = arith.addf %125, %129 : vector<8x64xf32>
    %cst_66 = arith.constant 0.000000e+00 : f32
    %131 = vector.broadcast %cst_66 : f32 to vector<8x64xf32>
    %132 = arith.maximumf %130, %131 : vector<8x64xf32>
    %133 = arith.truncf %132 : vector<8x64xf32> to vector<8x64xbf16>
    %c0_67 = arith.constant 0 : index
    %c0_68 = arith.constant 0 : index
    %134 = vector.load %arg15[%c0_67, %c0_68] : memref<64x32xbf16, #tpu.memory_space<vmem>>, vector<64x32xbf16>
    %cst_69 = arith.constant dense<0.000000e+00> : vector<8x32xf32>
    %135 = tpu.matmul %133, %134, %cst_69 {dimension_numbers = #tpu.dot_dimension_numbers<[1], [0], [0], [1], [0, 0, 1, 1], [], []>} : vector<8x64xbf16>, vector<64x32xbf16>, vector<8x32xf32> -> vector<8x32xf32>
    %c0_70 = arith.constant 0 : index
    %c0_71 = arith.constant 0 : index
    %136 = vector.load %arg16[%c0_70, %c0_71] : memref<1x32xf32, #tpu.memory_space<vmem>>, vector<1x32xf32>
    %137 = vector.shape_cast %136 : vector<1x32xf32> to vector<32xf32>
    %138 = vector.shape_cast %137 : vector<32xf32> to vector<1x32xf32>
    %139 = vector.broadcast %138 : vector<1x32xf32> to vector<8x32xf32>
    %140 = arith.addf %135, %139 : vector<8x32xf32>
    %141 = arith.addf %122, %140 : vector<8x32xf32>
    %c0_72 = arith.constant 0 : index
    %c0_73 = arith.constant 0 : index
    %142 = vector.load %arg19[%c0_72, %c0_73] : memref<1x32xf32, #tpu.memory_space<vmem>>, vector<1x32xf32>
    %143 = vector.shape_cast %142 : vector<1x32xf32> to vector<32xf32>
    %c0_74 = arith.constant 0 : index
    %c0_75 = arith.constant 0 : index
    %144 = vector.load %arg20[%c0_74, %c0_75] : memref<1x32xf32, #tpu.memory_space<vmem>>, vector<1x32xf32>
    %145 = vector.shape_cast %144 : vector<1x32xf32> to vector<32xf32>
    %cst_76 = arith.constant dense<0.000000e+00> : vector<8xf32>
    %146 = vector.multi_reduction <add>, %141, %cst_76 [1] : vector<8x32xf32> to vector<8xf32>
    %147 = vector.shape_cast %146 : vector<8xf32> to vector<8x1xf32>
    %cst_77 = arith.constant 3.200000e+01 : f32
    %148 = vector.broadcast %cst_77 : f32 to vector<8x1xf32>
    %149 = arith.divf %147, %148 : vector<8x1xf32>
    %150 = vector.broadcast %149 : vector<8x1xf32> to vector<8x32xf32>
    %151 = arith.subf %141, %150 : vector<8x32xf32>
    %152 = arith.mulf %151, %151 : vector<8x32xf32>
    %cst_78 = arith.constant dense<0.000000e+00> : vector<8xf32>
    %153 = vector.multi_reduction <add>, %152, %cst_78 [1] : vector<8x32xf32> to vector<8xf32>
    %154 = vector.shape_cast %153 : vector<8xf32> to vector<8x1xf32>
    %cst_79 = arith.constant 3.200000e+01 : f32
    %155 = vector.broadcast %cst_79 : f32 to vector<8x1xf32>
    %156 = arith.divf %154, %155 : vector<8x1xf32>
    %cst_80 = arith.constant 9.99999974E-6 : f32
    %157 = vector.broadcast %cst_80 : f32 to vector<8x1xf32>
    %158 = arith.addf %156, %157 : vector<8x1xf32>
    %159 = math.rsqrt %158 : vector<8x1xf32>
    %160 = vector.broadcast %159 : vector<8x1xf32> to vector<8x32xf32>
    %161 = arith.mulf %151, %160 : vector<8x32xf32>
    %162 = vector.shape_cast %143 : vector<32xf32> to vector<1x32xf32>
    %163 = vector.broadcast %162 : vector<1x32xf32> to vector<8x32xf32>
    %164 = arith.mulf %161, %163 : vector<8x32xf32>
    %165 = vector.shape_cast %145 : vector<32xf32> to vector<1x32xf32>
    %166 = vector.broadcast %165 : vector<1x32xf32> to vector<8x32xf32>
    %167 = arith.addf %164, %166 : vector<8x32xf32>
    %c0_81 = arith.constant 0 : index
    %c0_82 = arith.constant 0 : index
    %168 = vector.load %arg21[%c0_81, %c0_82] : memref<1x32xf32, #tpu.memory_space<vmem>>, vector<1x32xf32>
    %169 = vector.shape_cast %168 : vector<1x32xf32> to vector<32xf32>
    %c0_83 = arith.constant 0 : index
    %c0_84 = arith.constant 0 : index
    %170 = vector.load %arg22[%c0_83, %c0_84] : memref<1x32xf32, #tpu.memory_space<vmem>>, vector<1x32xf32>
    %171 = vector.shape_cast %170 : vector<1x32xf32> to vector<32xf32>
    %cst_85 = arith.constant dense<0.000000e+00> : vector<8xf32>
    %172 = vector.multi_reduction <add>, %167, %cst_85 [1] : vector<8x32xf32> to vector<8xf32>
    %173 = vector.shape_cast %172 : vector<8xf32> to vector<8x1xf32>
    %cst_86 = arith.constant 3.200000e+01 : f32
    %174 = vector.broadcast %cst_86 : f32 to vector<8x1xf32>
    %175 = arith.divf %173, %174 : vector<8x1xf32>
    %176 = vector.broadcast %175 : vector<8x1xf32> to vector<8x32xf32>
    %177 = arith.subf %167, %176 : vector<8x32xf32>
    %178 = arith.mulf %177, %177 : vector<8x32xf32>
    %cst_87 = arith.constant dense<0.000000e+00> : vector<8xf32>
    %179 = vector.multi_reduction <add>, %178, %cst_87 [1] : vector<8x32xf32> to vector<8xf32>
    %180 = vector.shape_cast %179 : vector<8xf32> to vector<8x1xf32>
    %cst_88 = arith.constant 3.200000e+01 : f32
    %181 = vector.broadcast %cst_88 : f32 to vector<8x1xf32>
    %182 = arith.divf %180, %181 : vector<8x1xf32>
    %cst_89 = arith.constant 9.99999974E-6 : f32
    %183 = vector.broadcast %cst_89 : f32 to vector<8x1xf32>
    %184 = arith.addf %182, %183 : vector<8x1xf32>
    %185 = math.rsqrt %184 : vector<8x1xf32>
    %186 = vector.broadcast %185 : vector<8x1xf32> to vector<8x32xf32>
    %187 = arith.mulf %177, %186 : vector<8x32xf32>
    %188 = vector.shape_cast %169 : vector<32xf32> to vector<1x32xf32>
    %189 = vector.broadcast %188 : vector<1x32xf32> to vector<8x32xf32>
    %190 = arith.mulf %187, %189 : vector<8x32xf32>
    %191 = vector.shape_cast %171 : vector<32xf32> to vector<1x32xf32>
    %192 = vector.broadcast %191 : vector<1x32xf32> to vector<8x32xf32>
    %193 = arith.addf %190, %192 : vector<8x32xf32>
    %c0_90 = arith.constant 0 : index
    %c0_91 = arith.constant 0 : index
    %c0_92 = arith.constant 0 : index
    %194 = vector.load %arg23[%c0_90, %c0_91, %c0_92] : memref<1x8x32xf32, #tpu.memory_space<vmem>>, vector<1x8x32xf32>
    %195 = vector.shape_cast %194 : vector<1x8x32xf32> to vector<8x32xf32>
    %196 = vector.shape_cast %193 : vector<8x32xf32> to vector<1x8x32xf32>
    tpu.vector_store %arg23[%c0_90, %c0_91, %c0_92], %196 {strides = array<i32>} : memref<1x8x32xf32, #tpu.memory_space<vmem>>, vector<1x8x32xf32>,
    return
  }
  func.func @transform_0(%arg0: i32, %arg1: i32) -> (i32, i32, i32) {
    %c0_i32 = arith.constant 0 : i32
    %c0_i32_0 = arith.constant 0 : i32
    return %arg0, %arg1, %c0_i32 : i32, i32, i32
  }
  func.func @transform_1(%arg0: i32, %arg1: i32) -> (i32, i32, i32) {
    %c0_i32 = arith.constant 0 : i32
    %c0_i32_0 = arith.constant 0 : i32
    %c0_i32_1 = arith.constant 0 : i32
    return %arg0, %c0_i32, %c0_i32_0 : i32, i32, i32
  }
  func.func @transform_2(%arg0: i32, %arg1: i32) -> (i32, i32, i32) {
    %c0_i32 = arith.constant 0 : i32
    %c0_i32_0 = arith.constant 0 : i32
    %c0_i32_1 = arith.constant 0 : i32
    return %arg0, %c0_i32, %c0_i32_0 : i32, i32, i32
  }
  func.func @transform_3(%arg0: i32, %arg1: i32) -> (i32, i32) {
    %c0_i32 = arith.constant 0 : i32
    %c0_i32_0 = arith.constant 0 : i32
    %c0_i32_1 = arith.constant 0 : i32
    return %c0_i32, %c0_i32_0 : i32, i32
  }
  func.func @transform_4(%arg0: i32, %arg1: i32) -> (i32, i32) {
    %c0_i32 = arith.constant 0 : i32
    %c0_i32_0 = arith.constant 0 : i32
    %c0_i32_1 = arith.constant 0 : i32
    return %c0_i32, %c0_i32_0 : i32, i32
  }
  func.func @transform_5(%arg0: i32, %arg1: i32) -> (i32, i32) {
    %c0_i32 = arith.constant 0 : i32
    %c0_i32_0 = arith.constant 0 : i32
    %c0_i32_1 = arith.constant 0 : i32
    return %c0_i32, %c0_i32_0 : i32, i32
  }
  func.func @transform_6(%arg0: i32, %arg1: i32) -> (i32, i32) {
    %c0_i32 = arith.constant 0 : i32
    %c0_i32_0 = arith.constant 0 : i32
    %c0_i32_1 = arith.constant 0 : i32
    return %c0_i32, %c0_i32_0 : i32, i32
  }
  func.func @transform_7(%arg0: i32, %arg1: i32) -> (i32, i32) {
    %c0_i32 = arith.constant 0 : i32
    %c0_i32_0 = arith.constant 0 : i32
    %c0_i32_1 = arith.constant 0 : i32
    return %c0_i32, %c0_i32_0 : i32, i32
  }
  func.func @transform_8(%arg0: i32, %arg1: i32) -> (i32, i32) {
    %c0_i32 = arith.constant 0 : i32
    %c0_i32_0 = arith.constant 0 : i32
    %c0_i32_1 = arith.constant 0 : i32
    return %c0_i32, %c0_i32_0 : i32, i32
  }
  func.func @transform_9(%arg0: i32, %arg1: i32) -> (i32, i32) {
    %c0_i32 = arith.constant 0 : i32
    %c0_i32_0 = arith.constant 0 : i32
    %c0_i32_1 = arith.constant 0 : i32
    return %c0_i32, %c0_i32_0 : i32, i32
  }
  func.func @transform_10(%arg0: i32, %arg1: i32) -> (i32, i32) {
    %c0_i32 = arith.constant 0 : i32
    %c0_i32_0 = arith.constant 0 : i32
    %c0_i32_1 = arith.constant 0 : i32
    return %c0_i32, %c0_i32_0 : i32, i32
  }
  func.func @transform_11(%arg0: i32, %arg1: i32) -> (i32, i32) {
    %c0_i32 = arith.constant 0 : i32
    %c0_i32_0 = arith.constant 0 : i32
    %c0_i32_1 = arith.constant 0 : i32
    return %c0_i32, %c0_i32_0 : i32, i32
  }
  func.func @transform_12(%arg0: i32, %arg1: i32) -> (i32, i32) {
    %c0_i32 = arith.constant 0 : i32
    %c0_i32_0 = arith.constant 0 : i32
    %c0_i32_1 = arith.constant 0 : i32
    return %c0_i32, %c0_i32_0 : i32, i32
  }
  func.func @transform_13(%arg0: i32, %arg1: i32) -> (i32, i32) {
    %c0_i32 = arith.constant 0 : i32
    %c0_i32_0 = arith.constant 0 : i32
    %c0_i32_1 = arith.constant 0 : i32
    return %c0_i32, %c0_i32_0 : i32, i32
  }
  func.func @transform_14(%arg0: i32, %arg1: i32) -> (i32, i32) {
    %c0_i32 = arith.constant 0 : i32
    %c0_i32_0 = arith.constant 0 : i32
    %c0_i32_1 = arith.constant 0 : i32
    return %c0_i32, %c0_i32_0 : i32, i32
  }
  func.func @transform_15(%arg0: i32, %arg1: i32) -> (i32, i32) {
    %c0_i32 = arith.constant 0 : i32
    %c0_i32_0 = arith.constant 0 : i32
    %c0_i32_1 = arith.constant 0 : i32
    return %c0_i32, %c0_i32_0 : i32, i32
  }
  func.func @transform_16(%arg0: i32, %arg1: i32) -> (i32, i32) {
    %c0_i32 = arith.constant 0 : i32
    %c0_i32_0 = arith.constant 0 : i32
    %c0_i32_1 = arith.constant 0 : i32
    return %c0_i32, %c0_i32_0 : i32, i32
  }
  func.func @transform_17(%arg0: i32, %arg1: i32) -> (i32, i32) {
    %c0_i32 = arith.constant 0 : i32
    %c0_i32_0 = arith.constant 0 : i32
    %c0_i32_1 = arith.constant 0 : i32
    return %c0_i32, %c0_i32_0 : i32, i32
  }
  func.func @transform_18(%arg0: i32, %arg1: i32) -> (i32, i32) {
    %c0_i32 = arith.constant 0 : i32
    %c0_i32_0 = arith.constant 0 : i32
    %c0_i32_1 = arith.constant 0 : i32
    return %c0_i32, %c0_i32_0 : i32, i32
  }
  func.func @transform_19(%arg0: i32, %arg1: i32) -> (i32, i32) {
    %c0_i32 = arith.constant 0 : i32
    %c0_i32_0 = arith.constant 0 : i32
    %c0_i32_1 = arith.constant 0 : i32
    return %c0_i32, %c0_i32_0 : i32, i32
  }
  func.func @transform_20(%arg0: i32, %arg1: i32) -> (i32, i32) {
    %c0_i32 = arith.constant 0 : i32
    %c0_i32_0 = arith.constant 0 : i32
    %c0_i32_1 = arith.constant 0 : i32
    return %c0_i32, %c0_i32_0 : i32, i32
  }
  func.func @transform_21(%arg0: i32, %arg1: i32) -> (i32, i32, i32) {
    %c0_i32 = arith.constant 0 : i32
    %c0_i32_0 = arith.constant 0 : i32
    return %arg0, %arg1, %c0_i32 : i32, i32, i32
  }
}

</mosaic_0001>

<bundles_post_ra>
// kernel: tpu_custom_call.1
= control target key start
LH: loop header
LB: loop body
LE: loop exit
PB: predicated region body
PF: predicated region fallthrough
CT: control target
= control target key end

     0   :  { %s3186_s0 = inlined_call_operand.vmem [shape: f32[2,8,32], index: 0, kind: input, shape index: {}]   ;;  %s3187_s1 = inlined_call_operand.hbm [shape: bf16[2,8,32], index: 1, kind: input, shape index: {}]   ;;  %s3188_s2 = inlined_call_operand.hbm [shape: bf16[2,8,32], index: 2, kind: input, shape index: {}]   ;;  %s3189_s3 = inlined_call_operand.vmem [shape: bf16[32,32], index: 3, kind: input, shape index: {}]   ;;  %s3190_s4 = inlined_call_operand.vmem [shape: f32[1,32], index: 4, kind: input, shape index: {}]   ;;  %s3191_s5 = inlined_call_operand.vmem [shape: bf16[32,32], index: 5, kind: input, shape index: {}]   ;;  %s3192_s6 = inlined_call_operand.vmem [shape: f32[1,32], index: 6, kind: input, shape index: {}]   ;;  %s3193_s7 = inlined_call_operand.hbm [shape: bf16[32,32], index: 7, kind: input, shape index: {}]   ;;  %s3194_s8 = inlined_call_operand.hbm [shape: f32[1,32], index: 8, kind: input, shape index: {}]   ;;  %s3195_s9 = inlined_call_operand.vmem [shape: bf16[32,32], index: 9, kind: input, shape index: {}]   ;;  %s3196_s10 = inlined_call_operand.vmem [shape: f32[1,32], index: 10, kind: input, shape index: {}]   ;;  %s3197_s11 = inlined_call_operand.hbm [shape: bf16[32,64], index: 11, kind: input, shape index: {}]   ;;  %s3198_s12 = inlined_call_operand.vmem [shape: f32[1,64], index: 12, kind: input, shape index: {}]   ;;  %s3199_s13 = inlined_call_operand.vmem [shape: bf16[64,32], index: 13, kind: input, shape index: {}]   ;;  %s3200_s14 = inlined_call_operand.vmem [shape: f32[1,32], index: 14, kind: input, shape index: {}]   ;;  %s3201_s15 = inlined_call_operand.vmem [shape: f32[1,32], index: 15, kind: input, shape index: {}]   ;;  %s3202_s16 = inlined_call_operand.vmem [shape: f32[1,32], index: 16, kind: input, shape index: {}]   ;;  %s3203_s17 = inlined_call_operand.vmem [shape: f32[1,32], index: 17, kind: input, shape index: {}]   ;;  %s3204_s18 = inlined_call_operand.vmem [shape: f32[1,32], index: 18, kind: input, shape index: {}]   ;;  %s3205_s19 = inlined_call_operand.vmem [shape: f32[1,32], index: 19, kind: input, shape index: {}]   ;;  %s3206_s20 = inlined_call_operand.vmem [shape: f32[1,32], index: 20, kind: input, shape index: {}]   ;;  %s3207_s21 = inlined_call_operand.hbm [shape: f32[2,8,32], index: 21, kind: output, shape index: {}]  }
   0x1   :  { %3221 = sst [smem:[#allocation24_spill]] %s3186_s0 }
   0x2   :  { %3222 = sst [smem:[#allocation25_spill]] %s3187_s1 }
   0x3   :  { %3223 = sst [smem:[#allocation26_spill]] %s3188_s2 }
   0x4   :  { %3224 = sst [smem:[#allocation27_spill]] %s3189_s3 }
   0x5   :  { %3225 = sst [smem:[#allocation28_spill]] %s3190_s4 }
   0x6   :  { %3226 = sst [smem:[#allocation29_spill]] %s3191_s5 }
   0x7   :  { %3227 = sst [smem:[#allocation30_spill]] %s3193_s7 }
   0x8   :  { %3228 = sst [smem:[#allocation31_spill]] %s3194_s8 }
   0x9   :  { %3229 = sst [smem:[#allocation32_spill]] %s3197_s11 }
   0xa   :  { %3230 = sst [smem:[#allocation33_spill]] %s3198_s12 }
   0xb   :  { %3231 = sst [smem:[#allocation34_spill]] %s3200_s14 }
   0xc   :  { %3232 = sst [smem:[#allocation35_spill]] %s3201_s15 }
   0xd   :  { %3233 = sst [smem:[#allocation36_spill]] %s3202_s16 }
   0xe   :  { %3234 = sst [smem:[#allocation37_spill]] %s3203_s17 }
   0xf   :  { %3235 = sst [smem:[#allocation38_spill]] %s3204_s18 }
  0x10   :  { %3236 = sst [smem:[#allocation39_spill]] %s3205_s19 }
  0x11   :  { %3237 = sst [smem:[#allocation40_spill]] %s3206_s20 }
  0x12   :  { %3238 = sst [smem:[#allocation41_spill]] %s3207_s21 }
  0x13   :  { %26 = vsyncpa [#allocation6], 0 }
  0x14   :  { %28 = vsyncpa [#allocation6 + $0x1], 0 }
  0x15   :  { %29 = vsyncpa [#allocation9], 0 }
  0x16   :  { %31 = vsyncpa [#allocation9 + $0x1], 0 }
  0x17   :  { %32 = vsyncpa [#allocation12], 0 }
  0x18   :  { %33 = vsyncpa [#allocation7], 0 }
  0x19   :  { %35 = vsyncpa [#allocation7 + $0x1], 0  ;;  %s2698_s2 = smov 0   ;;  %s2700_s25 = smov 0  }
  0x1a   :  { %s2702_s26 = smov 0   ;;  %s2704_s27 = smov 0  }
  0x1b   :  { %s2706_s3 = smov 0   ;;  %s2708_s28 = smov 0  }
  0x1c LB: > { %3239 = sst [smem:[#allocation20_spill]] %s2550_s2  ;;  %s2729_s29 = sadd.s32 4294967295, %s2570_s28   ;;  %s2570_s28 = sphi %s2708_s28, %s41_s28   ;;  %s2566_s3 = sphi %s2706_s3, %s3283_s3   ;;  %s2562_s27 = sphi %s2704_s27, %s3282_s27   ;;  %s2558_s26 = sphi %s2702_s26, %s3286_s26   ;;  %s2554_s25 = sphi %s2700_s25, %s3285_s25   ;;  %s2550_s2 = sphi %s2698_s2, %s3284_s2  }
  0x1d   : > { %3240 = sst [smem:[#allocation21_spill]] %s2566_s3  ;;  %s1972_s0 = sadd.s32 4294967294, %s2570_s28  }
  0x1e   : > { %p101_p0 = scmp.ne.s32.totalorder %s2554_s25, %s2550_s2  ;;  %p3215_p1 = scmp.eq.s32.totalorder %s2729_s29, 0 }
  0x1f   : > { %p537_p3 = scmp.eq.s32.totalorder %s1972_s0, 1  ;;  %p1973_p5 = scmp.ge.s32.totalorder %s2570_s28, 1 }
  0x20   : > { %p2738_p4 = por %p3215_p1, %p101_p0  ;;  %p544_p7 = scmp.lt.s32.totalorder %s2570_s28, 3 }
  0x21   : > { %p2743_p6 = por %p537_p3, %p101_p0  ;;  %s2572_s22 = smov [#allocation10]  }
  0x22   : > { %s3241_s4 = scalar_select %p2738_p4, 1, 0 }
  0x23   : > { %s3242_s30 = scalar_select %p2743_p6, 1, 0 }
  0x24   : > { %p2748_p8 = pnand %p1973_p5, %p544_p7  ;;  %s568_s23 = sshll.u32 %s2572_s22, 4  ;;  %s2752_s23 = int_to_ptr.vmem [resolvable:$true] %s568_s23 }
  0x25   : > { %3243 = sst [smem:[#allocation22_spill]] %s3242_s30  ;;  %s2573_s24 = smov [#allocation11]  }
  0x26   : > { %s3244_s5 = scalar_select %p2748_p8, 1, 0 }
  0x27   : > { %p2200_p9 = pneg %p2748_p8  ;;  %s582_s0 = sshll.u32 %s2573_s24, 4  ;;  %s2763_s0 = int_to_ptr.vmem [resolvable:$true] %s582_s0 }
  0x28   : > { %s2574_s30 = smov [#allocation13]   ;;  %s3246_s7 = sld [smem:[#allocation30_spill]] }
  0x29   : > { %p2759_p11 = pnand %p2200_p9, %p3215_p1  ;;  %s2765_s2 = sshll.u32 %s2574_s30, 4  ;;  %s599_s2 = int_to_ptr.vmem [resolvable:$true] %s2765_s2 }
  0x2b   : > { %p2775_p13 = pneg %p2759_p11 }
  0x2e   : > { %s2332_s20 = scalar_lea.hbm %s3246_s7, 256 }
  0x2f   : > { %p2333_p12 = scmp.ne.s32.totalorder %s3246_s7, %s2332_s20  ;;  %p2339_p5 = scmp.lt.u32.totalorder %s2332_s20, %s3246_s7 }
  0x31   : > { %p2335_p0 = pnand %p2775_p13, %p2333_p12 }
  0x33   : > { %p2336_p3 = pneg %p2335_p0 }
  0x35   : > { %p2341_p7 = pnand %p2339_p5, %p2336_p3 }
  0x37   : > { %2344 = shalt.err (!%p2341_p7)
}
  0x38   : > { %s2345_s18 = scalar_lea.vmem %s2752_s23, 256  ;;  %p2353_p2 = scmp.lt.s32.totalorder %s2752_s23, %s2752_s23 }
  0x39   : > { %p2346_p9 = scmp.ne.s32.totalorder %s2752_s23, %s2345_s18  ;;  %p2354_p6 = scmp.lt.s32.totalorder %s2345_s18, %s2345_s18 }
  0x3b   : > { %p2348_p10 = pnand %p2346_p9, %p2775_p13  ;;  %p2355_p12 = por %p2354_p6, %p2353_p2 }
  0x3d   : > { %p2349_p1 = pneg %p2348_p10 }
  0x3f   : > { %p2356_p0 = pnand %p2355_p12, %p2349_p1 }
  0x41   : > { %2359 = shalt.err (!%p2356_p0)
}
  0x42   : > { %s2575_s19 = smov 64   ;;  %s2576_s20 = smov 4  }
  0x43   : > { %2203 = dma.hbm_to_vmem [thread:$0]  (!%p2759_p11), %s3246_s7, 256, %s2752_s23, [#allocation9], %s2575_s19, %s2575_s19, %s2576_s20  }
  0x44   : > { %s3248_s8 = sld [smem:[#allocation31_spill]] }
  0x4a   : > { %s2360_s18 = scalar_lea.hbm %s3248_s8, 16 }
  0x4b   : > { %p2361_p1 = scmp.ne.s32.totalorder %s3248_s8, %s2360_s18  ;;  %p2367_p10 = scmp.lt.u32.totalorder %s2360_s18, %s3248_s8 }
  0x4d   : > { %p2363_p2 = pnand %p2361_p1, %p2775_p13 }
  0x4f   : > { %p2364_p6 = pneg %p2363_p2 }
  0x51   : > { %p2369_p3 = pnand %p2367_p10, %p2364_p6 }
  0x53   : > { %2372 = shalt.err (!%p2369_p3)
}
  0x54   : > { %s2373_s23 = scalar_lea.vmem %s2763_s0, 16  ;;  %s2380_s12 = scalar_lea.vmem %s2763_s0, 32 }
  0x55   : > { %p2374_p5 = scmp.ne.s32.totalorder %s2763_s0, %s2373_s23  ;;  %p2381_p12 = scmp.lt.s32.totalorder %s2763_s0, %s2763_s0 }
  0x56   : > { %p2382_p0 = scmp.lt.s32.totalorder %s2380_s12, %s2373_s23 }
  0x57   : > { %p2376_p7 = pnand %p2374_p5, %p2775_p13 }
  0x58   : > { %p2383_p1 = por %p2382_p0, %p2381_p12 }
  0x59   : > { %p2377_p9 = pneg %p2376_p7 }
  0x5b   : > { %p2384_p2 = pnand %p2383_p1, %p2377_p9 }
  0x5d   : > { %2387 = shalt.err (!%p2384_p2)
}
  0x5e   : > { %2206 = dma.hbm_to_vmem [thread:$0]  (!%p2759_p11), %s3248_s8, 16, %s2763_s0, [#allocation12]  }
  0x5f   : > { %s3249_s11 = sld [smem:[#allocation32_spill]] }
  0x65   : > { %s2388_s22 = scalar_lea.hbm %s3249_s11, 256 }
  0x66   : > { %p2389_p6 = scmp.ne.s32.totalorder %s3249_s11, %s2388_s22  ;;  %p2395_p5 = scmp.lt.u32.totalorder %s2388_s22, %s3249_s11 }
  0x68   : > { %p2391_p10 = pnand %p2389_p6, %p2775_p13 }
  0x6a   : > { %p2392_p3 = pneg %p2391_p10 }
  0x6c   : > { %p2397_p7 = pnand %p2395_p5, %p2392_p3 }
  0x6e   : > { %2400 = shalt.err (!%p2397_p7)
}
  0x6f   : > { %s2401_s12 = scalar_lea.vmem %s599_s2, 256  ;;  %p2409_p1 = scmp.lt.s32.totalorder %s599_s2, %s599_s2 }
  0x70   : > { %p2402_p9 = scmp.ne.s32.totalorder %s599_s2, %s2401_s12  ;;  %p2410_p2 = scmp.lt.s32.totalorder %s2401_s12, %s2401_s12 }
  0x72   : > { %p2404_p12 = pnand %p2402_p9, %p2775_p13  ;;  %p2411_p4 = por %p2410_p2, %p2409_p1 }
  0x74   : > { %p2405_p0 = pneg %p2404_p12 }
  0x76   : > { %p2412_p8 = pnand %p2411_p4, %p2405_p0 }
  0x78   : > { %2415 = shalt.err (!%p2412_p8)
}
  0x79   : > { %2209 = dma.hbm_to_vmem [thread:$0]  (!%p2759_p11), %s3249_s11, 256, %s599_s2, [#allocation12], %s2575_s19, %s2575_s19, %s2576_s20  }
  0x7a   : > { %s88_s17 = sadd.s32 1, %s2558_s26  ;;  %s53_s1 = sadd.s32 1, %s2566_s3 }
  0x7b   : > { %p95_p4 = scmp.ne.s32.totalorder %s2558_s26, %s2554_s25  ;;  %p55_p8 = scmp.ge.s32.totalorder %s53_s1, 2 }
  0x7c   : > { %p96_p13 = scmp.eq.s32.totalorder %s2570_s28, 0  ;;  %p3250_p6 = scmp.eq.s32.totalorder %s2729_s29, 1 }
  0x7d   : > { %p2224_p3 = scmp.lt.s32.totalorder %s2570_s28, 2  ;;  %s3288_s1 = smov (%p55_p8, %s53_s1), 0 }
  0x7e   : > { %p2852_p10 = por %p3250_p6, %p95_p4  ;;  %3252 = sst [smem:[#allocation23_spill]] %s3288_s1 }
  0x7f   : > { %p97_p5 = por %p96_p13, %p95_p4  ;;  %s649_s16 = sand.u32 1, %s2558_s26  }
  0x80   : > { %s3251_s15 = scalar_select %p2852_p10, 1, 0 }
  0x81   : > { %s85_s21 = ssub.s32 %s2566_s3, %s3288_s1  ;;  %s2862_s2 = sshll.u32 %s649_s16, 2 }
  0x82   : > { %p86_p11 = scmp.eq.s32.totalorder %s85_s21, 0  ;;  %s1979_s19 = sshll.u32 %s2566_s3, 6 }
  0x83   : > { %s3253_s30 = sld [smem:[#allocation25_spill]]  ;;  %s653_s23 = scalar_lea.vmem [#allocation5], %s2862_s2 }
  0x84   : > { %s2866_s20 = scalar_select %p86_p11, %s2558_s26, %s88_s17  }
  0x85   : > { %s660_s12 = sshll.u32 %s653_s23, 4  ;;  %p2878_p7 = pnand %p2224_p3, %p97_p5  ;;  %s2874_s12 = int_to_ptr.vmem [resolvable:$true] %s660_s12 }
  0x86   : > { %s3255_s21 = sld [smem:[#allocation26_spill]]  ;;  %s667_s24 = sand.u32 1, %s2570_s28  }
  0x87   : > { %s650_s7 = scalar_lea.sflag [#allocation6], %s649_s16  ;;  %p2418_p12 = pneg %p2878_p7 }
  0x89   : > { %s2871_s18 = scalar_lea.hbm %s3253_s30, %s1979_s19  ;;  %s2421_s1 = scalar_lea.hbm %s3253_s30, 128 }
  0x8a   : > { %s2416_s8 = scalar_lea.hbm %s2871_s18, 64  ;;  %p2422_p2 = scmp.lt.u32.totalorder %s2871_s18, %s3253_s30 }
  0x8b   : > { %p2417_p9 = scmp.ne.s32.totalorder %s2871_s18, %s2416_s8  ;;  %p2423_p4 = scmp.lt.u32.totalorder %s2421_s1, %s2416_s8 }
  0x8c   : > { %s2885_s22 = scalar_lea.hbm %s3255_s21, %s1979_s19  ;;  %p2425_p13 = scmp.lt.u32.totalorder %s2416_s8, %s2871_s18 }
  0x8d   : > { %p2419_p0 = pnand %p2418_p12, %p2417_p9  ;;  %p2424_p8 = por %p2423_p4, %p2422_p2 }
  0x8f   : > { %p2420_p1 = pneg %p2419_p0  ;;  %p2426_p6 = por %p2425_p13, %p2424_p8 }
  0x91   : > { %p2427_p3 = pnand %p2426_p6, %p2420_p1 }
  0x93   : > { %2430 = shalt.err (!%p2427_p3)
}
  0x94   : > { %s2431_s16 = scalar_lea.vmem %s2874_s12, 64  ;;  %s2577_s11 = smov [#allocation5]  }
  0x95   : > { %p2432_p5 = scmp.ne.s32.totalorder %s2874_s12, %s2431_s16  ;;  %s2436_s19 = sshll.u32 %s2577_s11, 4  ;;  %s2437_s19 = int_to_ptr.vmem [resolvable:$false] %s2436_s19 }
  0x96   : > { %s2438_s3 = scalar_lea.vmem %s2437_s19, 128  ;;  %p2439_p0 = scmp.lt.s32.totalorder %s2874_s12, %s2437_s19 }
  0x97   : > { %p2434_p11 = pnand %p2432_p5, %p2418_p12  ;;  %p2440_p2 = scmp.lt.s32.totalorder %s2438_s3, %s2431_s16 }
  0x99   : > { %p2435_p9 = pneg %p2434_p11  ;;  %p2441_p4 = por %p2440_p2, %p2439_p0 }
  0x9b   : > { %p2442_p8 = pnand %p2441_p4, %p2435_p9 }
  0x9d   : > { %2445 = shalt.err (!%p2442_p8)
}
  0x9e   : > { %2213 = dma.hbm_to_vmem [thread:$0]  (!%p2878_p7), %s2871_s18, 64, %s2874_s12, %s650_s7  }
  0x9f   : > { %s671_s8 = scalar_lea.vmem [#allocation8], %s2862_s2  ;;  %s668_s17 = scalar_lea.sflag [#allocation9], %s667_s24 }
  0xa0   : > { %s678_s1 = sshll.u32 %s671_s8, 4  ;;  %s2446_s23 = scalar_lea.hbm %s2885_s22, 64  ;;  %s679_s1 = int_to_ptr.vmem [resolvable:$true] %s678_s1 }
  0xa1   : > { %p2447_p1 = scmp.ne.s32.totalorder %s2885_s22, %s2446_s23  ;;  %s2451_s11 = scalar_lea.hbm %s3255_s21, 128 }
  0xa2   : > { %p2452_p3 = scmp.lt.u32.totalorder %s2885_s22, %s3255_s21  ;;  %p2453_p5 = scmp.lt.u32.totalorder %s2451_s11, %s2446_s23 }
  0xa3   : > { %p2449_p13 = pnand %p2447_p1, %p2418_p12  ;;  %p2455_p9 = scmp.lt.u32.totalorder %s2446_s23, %s2885_s22 }
  0xa4   : > { %p2454_p11 = por %p2453_p5, %p2452_p3 }
  0xa5   : > { %p2450_p6 = pneg %p2449_p13 }
  0xa6   : > { %p2456_p0 = por %p2455_p9, %p2454_p11 }
  0xa8   : > { %p2457_p2 = pnand %p2456_p0, %p2450_p6 }
  0xaa   : > { %2460 = shalt.err (!%p2457_p2)
}
  0xab   : > { %s2461_s7 = scalar_lea.vmem %s679_s1, 64  ;;  %s2578_s2 = smov [#allocation8]  }
  0xac   : > { %p2462_p4 = scmp.ne.s32.totalorder %s679_s1, %s2461_s7  ;;  %s2466_s18 = sshll.u32 %s2578_s2, 4  ;;  %s2467_s18 = int_to_ptr.vmem [resolvable:$false] %s2466_s18 }
  0xad   : > { %s2468_s12 = scalar_lea.vmem %s2467_s18, 128  ;;  %p2469_p13 = scmp.lt.s32.totalorder %s679_s1, %s2467_s18 }
  0xae   : > { %p2464_p8 = pnand %p2462_p4, %p2418_p12  ;;  %p2470_p10 = scmp.lt.s32.totalorder %s2468_s12, %s2461_s7 }
  0xb0   : > { %p2465_p1 = pneg %p2464_p8  ;;  %p2471_p3 = por %p2470_p10, %p2469_p13 }
  0xb2   : > { %p2472_p5 = pnand %p2471_p3, %p2465_p1 }
  0xb4   : > { %2475 = shalt.err (!%p2472_p5)
}
  0xb5   : > { %2216 = dma.hbm_to_vmem [thread:$0]  (!%p2878_p7), %s2885_s22, 64, %s679_s1, %s668_s17  }
  0xb6   : > { %p3256_p6 = scmp.ne.s32.totalorder %s3244_s5, 0 }
  0xb7   : > { %s2938_s24 = sand.u32 (!%p3256_p6), 1, %s2554_s25   ;;  %p3257_p12 = scmp.ne.s32.totalorder (!%p3256_p6), %s3241_s4, 0 }
  0xb8   : > { %687 = sbr.rel (%p3256_p6) target bundleno = 3052 (0xbec), region = 104  ;;  %s1983_s8 = sshll.u32 (!%p3256_p6), %s2938_s24, 2 }
  0xb9   : > { %s690_s23 = scalar_lea.sflag (!%p3256_p6), [#allocation6], %s2938_s24  ;;  %s693_s14 = scalar_lea.vmem (!%p3256_p6), [#allocation5], %s1983_s8 }
  0xbf   : > { %2529 = dma.done.wait (%p3257_p12), %s690_s23, 64  }
  0xc0   : > { %2531 = vsyncadd (%p3257_p12), %s690_s23, 4294967232  ;;  %s698_s0 = sand.u32 1, %s2729_s29   ;;  %s2947_s5 = scalar_lea.vmem [#allocation8], %s1983_s8 }
  0xc1   : > { %s699_s22 = scalar_lea.sflag [#allocation9], %s698_s0 }
  0xc2   : > { %2533 = dma.done.wait (%p3257_p12), %s699_s22, 64  }
  0xc3   : > { %2535 = vsyncadd (%p3257_p12), %s699_s22, 4294967232  ;;  %p3258_p10 = scmp.eq.s32.totalorder %s2729_s29, 0 }
  0xc5   : > { %2537 = dma.done.wait (%p3258_p10), [#allocation9], 256   ;;  %p3259_p7 = pmov %p3258_p10 }
  0xc7   : > { %2539 = vsyncadd (%p3259_p7), [#allocation9], 4294967040  ;;  %p3260_p11 = pmov %p3259_p7 }
  0xc8   : > { %p3261_p9 = pmov %p3259_p7 }
  0xc9   : > { %2541 = dma.done.wait (%p3260_p11), [#allocation12], 272  }
  0xca   : > { %2543 = vsyncadd (%p3261_p9), [#allocation12], 4294967024  ;;  %v2579_v0 = vmov 0.0   ;;  %vm2580_vm0 = vmmov 0   ;;  %p785_p0 = scmp.lt.s32.totalorder %s2562_s27, 1  ;;  %s3262_s29 = sld [smem:[#allocation29_spill]] }
  0xcb   : > { %2082 = vmatprep.subr.bf16.mxu0 %v2579_v0  ;;  %2086 = vmatprep.mubr.msk.bf16.mxu0 %vm2580_vm0, %v2579_v0  ;;  %v797_v3 = vld [vmem:[%s693_s14] sm:$0xf]  ;;  %vm821_vm1 = vcmask 261120   ;;  %s3263_s2 = sld [smem:[#allocation27_spill]]  ;;  %s3265_s23 = sld [smem:[#allocation24_spill]]  ;;  %v2294_v8 = vld [vmem:[#allocation10] sm:$0xff]  }
  0xcc   : > { %2090 = vmatprep.subr.bf16.mxu1 %v2579_v0  ;;  %2094 = vmatprep.mubr.msk.bf16.mxu1 %vm2580_vm0, %v2579_v0  ;;  %s786_s4 = scalar_select %p785_p0, %s2562_s27, 1  ;;  %v2295_v9 = vld [vmem:[#allocation10 + $0x8] sm:$0xff]   ;;  %v865_v10 = vld [vmem:[%s2947_s5] sm:$0xf]  ;;  %v1990_v11 = vld [vmem:[%s3192_s6] ss:$0 sm:$0xff] }
  0xcd   : > { %2091 = vmatpush3.bf16.msra.mxu1 %v2294_v8  ;;  %vm933_vm2 = vcmask 257024   ;;  %s3266_s16 = sld [smem:[#allocation28_spill]]  ;;  %vm1009_vm3 = vcmask 64512   ;;  %s2581_s11 = smov 112   ;;  %v1994_v31 = vld [vmem:[#allocation11] ss:$0 sm:$0xff] }
  0xce   : > { %s1989_s19 = sshll.u32 %s786_s4, 3  ;;  %2092 = vmatprep.subr.bf16.mxu1 %v2579_v0  ;;  %s2583_s3 = smov 104   ;;  %vm1072_vm4 = vcmask 1043456   ;;  %vm1117_vm5 = vcmask 60416   ;;  %vm1245_vm6 = vcmask 126016   ;;  %vm1372_vm7 = vcmask 191616  }
  0xcf   : > { %s2584_s7 = smov 8   ;;  %s2586_s22 = smov 24   ;;  %vm1499_vm8 = vcmask 257216   ;;  %vm1707_vm9 = vcmask 523264  }
  0xd0   : > { %v2290_v1 = vld [vmem:[%s3262_s29] sm:$0xff]   ;;  %v2291_v2 = vld [vmem:[%s3262_s29 + $0x8] sm:$0xff]   ;;  %s3268_s12 = sld [smem:[#allocation36_spill]]  ;;  %s3269_s4 = sld [smem:[#allocation33_spill]] }
  0xd1   : > { %2083 = vmatpush3.bf16.msra.mxu0 %v2290_v1  ;;  %s3264_s18 = smov %s3263_s2  ;;  %v2292_v4 = vld [vmem:[%s3263_s2] sm:$0xff]   ;;  %s791_s0 = scalar_lea.vmem %s3265_s23, %s1989_s19  ;;  %2093 = vmatpush3.bf16.msra.mxu1 %v2295_v9 }
  0xd2   : > { %2084 = vmatprep.subr.bf16.mxu0 %v2579_v0  ;;  %v2293_v5 = vld [vmem:[%s3264_s18 + $0x8] sm:$0xff]   ;;  %v2986_v6 = vld [vmem:[%s791_s0] sm:$0xff]  ;;  %2106 = vmatprep.subr.bf16.mxu1 %v2579_v0  ;;  %s2582_s19 = smov 120   ;;  %s2585_s0 = smov 16  }
  0xd3   : > { %v938_v7 = vpack.c.bf16 %v2986_v6, %v2986_v6  ;;  %v1998_v18 = vld [vmem:[%s3266_s16] ss:$0 sm:$0xff]  ;;  %s3270_s16 = sld [smem:[#allocation34_spill]]  ;;  %s1988_s8 = sshll.u32 %s2938_s24, 3 }
  0xd4   : > { %2095 = vmatmul.mubr.msk.bf16.vlgmr.msra.gmra.mrb[0].mxu1 %vm821_vm1, %v865_v10  ;;  %s2040_s17 = sshll.u32 %s2562_s27, 7  ;;  %s784_s5 = scalar_lea.vmem [#allocation14], %s1988_s8 }
  0xd5   : > { %2085 = vmatpush3.bf16.msra.mxu0 %v2291_v2  ;;  %2108 = vmatprep.mubr.msk.bf16.mxu1 %vm2580_vm0, %v2579_v0  ;;  %p3277_p4 = scmp.ne.s32.totalorder %s3251_s15, 0  ;;  %s2587_s27 = smov [#allocation14]  }
  0xd6   : > { %2098 = vmatprep.subr.bf16.mxu0 %v2579_v0  ;;  %s2480_s8 = sshll.u32 %s2587_s27, 4  ;;  %s2481_s8 = int_to_ptr.vmem [resolvable:$false] %s2480_s8 }
  0xd8   : > { %2087 = vmatmul.mubr.msk.bf16.vlgmr.msra.gmra.mrb[0].mxu0 %vm821_vm1, %v797_v3 }
  0xd9   : > { %2099 = vmatpush3.bf16.msra.mxu0 %v2292_v4  ;;  %2102 = vmatprep.mubr.msk.bf16.mxu0 %vm2580_vm0, %v2579_v0 }
  0xda   : > { %2100 = vmatprep.subr.bf16.mxu0 %v2579_v0 }
  0xdd   : > { %2101 = vmatpush3.bf16.msra.mxu0 %v2293_v5 }
  0xde   : > { %2112 = vmatprep.subr.bf16.mxu0 %v2579_v0 }
  0xe0   : > { %2103 = vmatmul.mubr.msk.bf16.vlgmr.msra.gmra.mrb[4].mxu0 %vm821_vm1, %v938_v7 }
  0xe1   : > { %2114 = vmatprep.mubr.msk.bf16.mxu0 %vm2580_vm0, %v2579_v0 }
 0x1a7   : > { %v926_v32 = vpop.f32.mrb[0].mxu1 }
 0x1a8   : > { %v927_v33 = vadd.f32 %v1994_v31, %v926_v32  ;;  %v2096_v34 = vpop.f32.mrb[1].mxu1 }
 0x1a9   : > { %v929_v35 = vpop.f32.mrb[2].mxu1 }
 0x1aa   : > { %v935_v36 = vpack.c.bf16 %v927_v33, %v927_v33  ;;  %v2097_v37 = vpop.f32.mrb[3].mxu1 }
 0x1ab   : > { %v859_v12 = vpop.f32.mrb[0].mxu0 }
 0x1ac   : > { %v860_v13 = vadd.f32 %v1990_v11, %v859_v12  ;;  %v2088_v14 = vpop.f32.mrb[1].mxu0  ;;  %936 = vst.msk [vmem:[#allocation3] sm:$0xf] %vm933_vm2, %v935_v36 }
 0x1ad   : > { %v862_v15 = vpop.f32.mrb[2].mxu0 }
 0x1ae   : > { %v932_v16 = vpack.c.bf16 %v860_v13, %v860_v13  ;;  %v2089_v17 = vpop.f32.mrb[3].mxu0 }
 0x1b0   : > { %934 = vst.msk [vmem:[#allocation2] sm:$0xf] %vm933_vm2, %v932_v16 }
 0x1b3   : > { %v1000_v19 = vpop.f32.mrb[4].mxu0  ;;  %v1068_v38 = vld [vmem:[#allocation3] sm:$0xf] }
 0x1b4   : > { %v1001_v20 = vadd.f32 %v1998_v18, %v1000_v19  ;;  %v2104_v21 = vpop.f32.mrb[5].mxu0  ;;  %v1074_v39 = vsel %vm1072_vm4, %v1068_v38, 0  ;;  %v2299_v12 = vld [vmem:[#allocation3] ss:$0 sps:$4 sm:$0xff]  }
 0x1b5   : > { %v1003_v22 = vpop.f32.mrb[6].mxu0  ;;  %2113 = vmatpush3.bf16.msra.mxu0 %v1074_v39  ;;  %v2301_v32 = vld [vmem:[#allocation3] ss:$0 sps:$4 sm:$0xff]  }
 0x1b6   : > { %v1006_v23 = vmul.f32 0.35355338, %v1001_v20  ;;  %v2105_v24 = vpop.f32.mrb[7].mxu0  ;;  %2124 = vmatprep.subr.bf16.mxu0 %v2579_v0 }
 0x1b7   : > { %v1008_v25 = vld [vmem:[#allocation2] sm:$0xf] }
 0x1b8   : > { %v2296_v26 = vld [vmem:[#allocation2] ss:$0 sps:$4 sm:$0xff]   ;;  %v1014_v27 = vsel %vm1009_vm3, %v1008_v25, 0  ;;  %v1007_v29 = vpack.c.bf16 %v1006_v23, %v1006_v23 }
 0x1b9   : > { %v2297_v28 = vld [vmem:[#allocation2] ss:$0 sps:$4 sm:$0xff]   ;;  %2107 = vmatpush3.bf16.xpose.msra.mxu1 %v1014_v27  ;;  %1253 = vrot.lane.b32.xlu1 %v2296_v26, %s2581_s11 }
 0x1ba   : > { %1126 = vrot.lane.b32.xlu0 %v2297_v28, %s2582_s19  ;;  %2118 = vmatprep.subr.bf16.mxu1 %v2579_v0  ;;  %v2298_v30 = vld [vmem:[#allocation2] ss:$0 sps:$4 sm:$0xff]   ;;  %v2300_v28 = vld [vmem:[#allocation3] ss:$0 sps:$4 sm:$0xff]  }
 0x1bd   : > { %1248 = vrot.lane.b32.xlu1 %v1007_v29, %s2581_s11 }
 0x1be   : > { %1121 = vrot.lane.b32.xlu0 %v1007_v29, %s2582_s19 }
 0x1c0   : > { %2109 = vmatmul.mubr.msk.bf16.vlgmr.msra.gmra.mrb[4].mxu1 %vm1009_vm3, %v1007_v29 }
 0x1c1   : > { %1375 = vrot.lane.b32.xlu1 %v1007_v29, %s2583_s3  ;;  %2120 = vmatprep.mubr.msk.bf16.mxu1 %vm2580_vm0, %v2579_v0 }
 0x1c2   : > { %1380 = vrot.lane.b32.xlu0 %v2298_v30, %s2583_s3 }
 0x22b   : > { %v1254_v42 = vpop.permute.xlu1 %1253 }
 0x22c   : > { %v1127_v40 = vpop.permute.xlu0 %1126  ;;  %v1259_v44 = vsel %vm1009_vm3, %v1254_v42, 0 }
 0x22d   : > { %v1132_v41 = vsel %vm1009_vm3, %v1127_v40, 0 }
 0x22e   : > { %2119 = vmatpush3.bf16.xpose.msra.mxu1 %v1132_v41 }
 0x22f   : > { %2130 = vmatprep.subr.bf16.mxu1 %v2579_v0  ;;  %v1249_v46 = vpop.permute.xlu1 %1248 }
 0x230   : > { %v1122_v43 = vpop.permute.xlu0 %1121 }
 0x233   : > { %v1376_v48 = vpop.permute.xlu1 %1375 }
 0x234   : > { %v1381_v45 = vpop.permute.xlu0 %1380 }
 0x235   : > { %2121 = vmatmul.mubr.msk.bf16.vlgmr.msra.gmra.mrb[8].mxu1 %vm1009_vm3, %v1122_v43  ;;  %v1386_v47 = vsel %vm1009_vm3, %v1381_v45, 0 }
 0x236   : > { %2131 = vmatpush3.bf16.xpose.msra.mxu1 %v1259_v44  ;;  %2132 = vmatprep.mubr.msk.bf16.mxu1 %vm2580_vm0, %v2579_v0 }
 0x237   : > { %2142 = vmatprep.subr.bf16.mxu1 %v2579_v0 }
 0x23d   : > { %2133 = vmatmul.mubr.msk.bf16.vlgmr.msra.gmra.mrb[12].mxu1 %vm1009_vm3, %v1249_v46 }
 0x23e   : > { %2143 = vmatpush3.bf16.xpose.msra.mxu1 %v1386_v47  ;;  %2144 = vmatprep.mubr.msk.bf16.mxu1 %vm2580_vm0, %v2579_v0 }
 0x23f   : > { %2154 = vmatprep.subr.bf16.mxu1 %v2579_v0 }
 0x245   : > { %2145 = vmatmul.mubr.msk.bf16.vlgmr.msra.gmra.mrb[16].mxu1 %vm1009_vm3, %v1376_v48 }
 0x246   : > { %2158 = vmatprep.mubr.msk.bf16.mxu1 %vm2580_vm0, %v2579_v0 }
 0x293   : > { %v1050_v49 = vpop.f32.mrb[4].mxu1 }
 0x294   : > { %v2110_v50 = vpop.f32.mrb[5].mxu1  ;;  %v1056_v51 = vsel %vm1009_vm3, %v1050_v49, -inf }
 0x295   : > { %1057 = vmax.xlane.f32.xlu0 %v1056_v51  ;;  %v1053_v52 = vpop.f32.mrb[6].mxu1 }
 0x296   : > { %v2111_v53 = vpop.f32.mrb[7].mxu1 }
 0x308   : > { %v1168_v54 = vpop.f32.mrb[8].mxu1 }
 0x309   : > { %v2122_v55 = vpop.f32.mrb[9].mxu1  ;;  %v1174_v56 = vsel %vm1009_vm3, %v1168_v54, -inf }
 0x30a   : > { %1175 = vmax.xlane.f32.xlu1 %v1174_v56  ;;  %v1171_v57 = vpop.f32.mrb[10].mxu1 }
 0x30b   : > { %v2123_v58 = vpop.f32.mrb[11].mxu1 }
 0x310   : > { %v1295_v59 = vpop.f32.mrb[12].mxu1 }
 0x311   : > { %v2134_v60 = vpop.f32.mrb[13].mxu1  ;;  %v1301_v61 = vsel %vm1009_vm3, %v1295_v59, -inf }
 0x312   : > { %1302 = vmax.xlane.f32.xlu0 %v1301_v61  ;;  %v1298_v62 = vpop.f32.mrb[14].mxu1 }
 0x313   : > { %v2135_v63 = vpop.f32.mrb[15].mxu1  ;;  %v2302_v62 = vld [vmem:[%s3195_s9] sm:$0xff]  }
 0x314   : > { %2155 = vmatpush3.bf16.msra.mxu1 %v2302_v62 }
 0x315   : > { %2156 = vmatprep.subr.bf16.mxu1 %v2579_v0 }
 0x318   : > { %v1422_v1 = vpop.f32.mrb[16].mxu1 }
 0x319   : > { %v2146_v2 = vpop.f32.mrb[17].mxu1  ;;  %v1428_v3 = vsel %vm1009_vm3, %v1422_v1, -inf }
 0x31a   : > { %1429 = vmax.xlane.f32.xlu0 %v1428_v3  ;;  %v1425_v4 = vpop.f32.mrb[18].mxu1 }
 0x31b   : > { %v2147_v5 = vpop.f32.mrb[19].mxu1 }
 0x322   : > { %v1058_v7 = vpop.xlane.xlu0 %1057 }
 0x323   : > { %v1059_v8 = vsub.f32 %v1050_v49, %v1058_v7 }
 0x325   : > { %v1060_v9 = vmul.f32 1.442695, %v1059_v8 }
 0x327   : > { %2310 = vpow2.f32 %v1060_v9 }
 0x331   : > { %v2311_v10 = vpop.eup %2310 }
 0x332   : > { %v1062_v11 = vsel %vm1009_vm3, %v2311_v10, 0.0 }
 0x333   : > { %1063 = vadd.xlane.f32.xlu1 %v1062_v11 }
 0x344   : > { %1190 = vrot.lane.b32.xlu1 %v2299_v12, %s2582_s19 }
 0x397   : > { %v1176_v13 = vpop.xlane.xlu1 %1175 }
 0x398   : > { %v1177_v14 = vsub.f32 %v1168_v54, %v1176_v13 }
 0x39a   : > { %v1178_v15 = vmul.f32 1.442695, %v1177_v14 }
 0x39c   : > { %2312 = vpow2.f32 %v1178_v15 }
 0x39f   : > { %v1303_v16 = vpop.xlane.xlu0 %1302 }
 0x3a0   : > { %v1304_v17 = vsub.f32 %v1295_v59, %v1303_v16  ;;  %v2019_v16 = vld [vmem:[%s3196_s10] ss:$0 sm:$0xff] }
 0x3a2   : > { %v1305_v18 = vmul.f32 1.442695, %v1304_v17 }
 0x3a4   : > { %2314 = vpow2.f32 %v1305_v18 }
 0x3a6   : > { %v2313_v19 = vpop.eup %2312 }
 0x3a7   : > { %v1430_v20 = vpop.xlane.xlu0 %1429  ;;  %v1180_v21 = vsel %vm1009_vm3, %v2313_v19, 0.0 }
 0x3a8   : > { %v1431_v22 = vsub.f32 %v1422_v1, %v1430_v20  ;;  %1181 = vadd.xlane.f32.xlu0 %v1180_v21  ;;  %v2303_v1 = vld [vmem:[%s3195_s9 + $0x8] sm:$0xff]  }
 0x3a9   : > { %2157 = vmatpush3.bf16.msra.mxu1 %v2303_v1 }
 0x3aa   : > { %v1432_v23 = vmul.f32 1.442695, %v1431_v22  ;;  %2170 = vmatprep.subr.bf16.mxu1 %v2579_v0 }
 0x3ac   : > { %2316 = vpow2.f32 %v1432_v23 }
 0x3ae   : > { %v2315_v24 = vpop.eup %2314 }
 0x3af   : > { %v1307_v25 = vsel %vm1009_vm3, %v2315_v24, 0.0 }
 0x3b0   : > { %1308 = vadd.xlane.f32.xlu1 %v1307_v25 }
 0x3b6   : > { %v2317_v26 = vpop.eup %2316 }
 0x3b7   : > { %v1434_v27 = vsel %vm1009_vm3, %v2317_v26, 0.0 }
 0x3b8   : > { %1435 = vadd.xlane.f32.xlu0 %v1434_v27 }
 0x3c0   : > { %v1064_v29 = vpop.xlane.xlu1 %1063 }
 0x3c1   : > { %2318 = vrcp.f32 %v1064_v29  ;;  %1444 = vrot.lane.b32.xlu1 %v2300_v28, %s2583_s3  ;;  %v2304_v29 = vld [vmem:[#allocation13] sm:$0xff]   ;;  %s3267_s3 = sld [smem:[#allocation35_spill]] }
 0x3c4   : > { %v1191_v33 = vpop.permute.xlu1 %1190 }
 0x3c5   : > { %v1196_v35 = vsel %vm1072_vm4, %v1191_v33, 0 }
 0x3cb   : > { %v2319_v30 = vpop.eup %2318 }
 0x3cc   : > { %v1066_v31 = vmul.f32 %v2319_v30, %v2311_v10  ;;  %v2305_v30 = vld [vmem:[#allocation13 + $0x8] sm:$0xff]  }
 0x3ce   : > { %1317 = vrot.lane.b32.xlu0 %v2301_v32, %s2581_s11  ;;  %v1067_v34 = vpack.c.bf16 %v1066_v31, %v1066_v31  ;;  %v2307_v31 = vld [vmem:[%s3199_s13 + $0x8] sm:$0xff]  }
 0x3d0   : > { %2115 = vmatmul.mubr.msk.bf16.vlgmr.msra.gmra.mrb[8].mxu0 %vm1009_vm3, %v1067_v34 }
 0x3d1   : > { %2125 = vmatpush3.bf16.msra.mxu0 %v1196_v35  ;;  %2126 = vmatprep.mubr.msk.bf16.mxu0 %vm2580_vm0, %v2579_v0 }
 0x3d2   : > { %2136 = vmatprep.subr.bf16.mxu0 %v2579_v0 }
 0x435   : > { %v1182_v36 = vpop.xlane.xlu0 %1181 }
 0x436   : > { %2320 = vrcp.f32 %v1182_v36  ;;  %v2023_v36 = vld [vmem:[%s3267_s3] ss:$0 sm:$0xff]  ;;  %s3271_s3 = sld [smem:[#allocation37_spill]] }
 0x43d   : > { %v1309_v37 = vpop.xlane.xlu1 %1308 }
 0x43e   : > { %2322 = vrcp.f32 %v1309_v37 }
 0x440   : > { %v2321_v38 = vpop.eup %2320 }
 0x441   : > { %v1184_v39 = vmul.f32 %v2321_v38, %v2313_v19  ;;  %v1445_v46 = vpop.permute.xlu1 %1444  ;;  %v2024_v38 = vld [vmem:[%s3268_s12] ss:$0 sm:$0xff]  ;;  %s3272_s12 = sld [smem:[#allocation38_spill]] }
 0x442   : > { %v1450_v48 = vsel %vm1072_vm4, %v1445_v46, 0 }
 0x443   : > { %v1185_v40 = vpack.c.bf16 %v1184_v39, %v1184_v39 }
 0x445   : > { %2127 = vmatmul.mubr.msk.bf16.vlgmr.msra.gmra.mrb[12].mxu0 %vm1009_vm3, %v1185_v40  ;;  %v1436_v41 = vpop.xlane.xlu0 %1435 }
 0x446   : > { %2324 = vrcp.f32 %v1436_v41  ;;  %2138 = vmatprep.mubr.msk.bf16.mxu0 %vm2580_vm0, %v2579_v0 }
 0x448   : > { %v2323_v42 = vpop.eup %2322 }
 0x449   : > { %v1311_v43 = vmul.f32 %v2323_v42, %v2315_v24  ;;  %v1318_v44 = vpop.permute.xlu0 %1317  ;;  %v2308_v42 = vld [vmem:[%s3199_s13 + $0x10] sm:$0xff]  }
 0x44a   : > { %v1323_v45 = vsel %vm1072_vm4, %v1318_v44, 0  ;;  %v2025_v44 = vld [vmem:[%s3269_s4] ss:$0 sm:$0xff]  ;;  %s3274_s4 = sld [smem:[#allocation40_spill]] }
 0x44b   : > { %2137 = vmatpush3.bf16.msra.mxu0 %v1323_v45  ;;  %v1312_v47 = vpack.c.bf16 %v1311_v43, %v1311_v43  ;;  %v2309_v43 = vld [vmem:[%s3199_s13 + $0x18] sm:$0xff]  }
 0x44c   : > { %2148 = vmatprep.subr.bf16.mxu0 %v2579_v0 }
 0x44e   : > { %2139 = vmatmul.mubr.msk.bf16.vlgmr.msra.gmra.mrb[16].mxu0 %vm1009_vm3, %v1312_v47 }
 0x44f   : > { %2149 = vmatpush3.bf16.msra.mxu0 %v1450_v48  ;;  %2150 = vmatprep.mubr.msk.bf16.mxu0 %vm2580_vm0, %v2579_v0 }
 0x450   : > { %v2325_v49 = vpop.eup %2324  ;;  %2162 = vmatprep.subr.bf16.mxu0 %v2579_v0 }
 0x451   : > { %v1438_v50 = vmul.f32 %v2325_v49, %v2317_v26 }
 0x453   : > { %v1439_v51 = vpack.c.bf16 %v1438_v50, %v1438_v50 }
 0x456   : > { %2151 = vmatmul.mubr.msk.bf16.vlgmr.msra.gmra.mrb[20].mxu0 %vm1009_vm3, %v1439_v51 }
 0x457   : > { %2166 = vmatprep.mubr.msk.bf16.mxu0 %vm2580_vm0, %v2579_v0  ;;  %2163 = vmatpush3.bf16.msra.mxu0 %v2304_v29 }
 0x458   : > { %2164 = vmatprep.subr.bf16.mxu0 %v2579_v0 }
 0x45b   : > { %2165 = vmatpush3.bf16.msra.mxu0 %v2305_v30 }
 0x4a3   : > { %v1110_v52 = vpop.f32.mrb[8].mxu0 }
 0x4a4   : > { %v1116_v53 = vpack.c.bf16 %v1110_v52, %v1110_v52  ;;  %v2116_v54 = vpop.f32.mrb[9].mxu0 }
 0x4a5   : > { %v1113_v55 = vpop.f32.mrb[10].mxu0 }
 0x4a6   : > { %1118 = vst.msk [vmem:[#allocation4] sm:$0xf] %vm1117_vm5, %v1116_v53  ;;  %v2117_v56 = vpop.f32.mrb[11].mxu0 }
 0x518   : > { %v1232_v57 = vpop.f32.mrb[12].mxu0 }
 0x519   : > { %v2043_v58 = vpack.c.bf16 %v1232_v57, %v1232_v57  ;;  %v2128_v59 = vpop.f32.mrb[13].mxu0 }
 0x51a   : > { %v1235_v60 = vpop.f32.mrb[14].mxu0 }
 0x51b   : > { %1242 = vrot.lane.b32.xlu1 %v2043_v58, %s2584_s7  ;;  %v2129_v61 = vpop.f32.mrb[15].mxu0 }
 0x521   : > { %v1359_v63 = vpop.f32.mrb[16].mxu0 }
 0x522   : > { %v2044_v2 = vpack.c.bf16 %v1359_v63, %v1359_v63  ;;  %v2140_v3 = vpop.f32.mrb[17].mxu0 }
 0x523   : > { %v1362_v4 = vpop.f32.mrb[18].mxu0 }
 0x524   : > { %1369 = vrot.lane.b32.xlu0 %v2044_v2, %s2585_s0  ;;  %v2141_v5 = vpop.f32.mrb[19].mxu0  ;;  %s2482_s0 = scalar_lea.vmem %s2481_s8, 256 }
 0x525   : > { %v2035_v5 = vld [vmem:[%s3271_s3] ss:$0 sm:$0xff]  ;;  %s3275_s3 = sld [smem:[#allocation41_spill]] }
 0x529   : > { %v1486_v7 = vpop.f32.mrb[20].mxu0 }
 0x52a   : > { %v2045_v8 = vpack.c.bf16 %v1486_v7, %v1486_v7  ;;  %v2152_v9 = vpop.f32.mrb[21].mxu0 }
 0x52b   : > { %v1489_v10 = vpop.f32.mrb[22].mxu0  ;;  %s3276_s7 = smov %s3275_s3  ;;  %s3136_s2 = scalar_lea.hbm %s3275_s3, %s2040_s17 }
 0x52c   : > { %1496 = vrot.lane.b32.xlu1 %v2045_v8, %s2586_s22  ;;  %v2153_v11 = vpop.f32.mrb[23].mxu0  ;;  %v2036_v8 = vld [vmem:[%s3272_s12] ss:$0 sm:$0xff]  ;;  %s3273_s22 = sld [smem:[#allocation39_spill]]  ;;  %s1812_s12 = scalar_lea.sflag [#allocation7], %s2938_s24 }
 0x58d   : > { %v1243_v12 = vpop.permute.xlu1 %1242 }
 0x58e   : > { %1246 = vst.msk [vmem:[#allocation4] sm:$0xf] %vm1245_vm6, %v1243_v12 }
 0x596   : > { %v1370_v13 = vpop.permute.xlu0 %1369 }
 0x597   : > { %1373 = vst.msk [vmem:[#allocation4] sm:$0xf] %vm1372_vm7, %v1370_v13 }
 0x59e   : > { %v1497_v14 = vpop.permute.xlu1 %1496 }
 0x59f   : > { %1500 = vst.msk [vmem:[#allocation4] sm:$0xf] %vm1499_vm8, %v1497_v14 }
 0x5a6   : > { %v1501_v15 = vld [vmem:[#allocation4] sm:$0xf] }
 0x5a7   : > { %2159 = vmatmul.mubr.msk.bf16.vlgmr.msra.gmra.mrb[20].mxu1 %vm821_vm1, %v1501_v15 }
 0x5a8   : > { %2178 = vmatprep.mubr.msk.bf16.mxu1 %vm2580_vm0, %v2579_v0 }
 0x67a   : > { %v1562_v17 = vpop.f32.mrb[20].mxu1 }
 0x67b   : > { %v1563_v18 = vadd.f32 %v2019_v16, %v1562_v17  ;;  %v2160_v19 = vpop.f32.mrb[21].mxu1 }
 0x67c   : > { %v1565_v20 = vpop.f32.mrb[22].mxu1 }
 0x67d   : > { %v2161_v21 = vpop.f32.mrb[23].mxu1  ;;  %v1568_v22 = vadd.f32 %v1563_v18, %v2986_v6  ;;  %v2306_v6 = vld [vmem:[%s3199_s13] sm:$0xff]  }
 0x67e   : > { %2171 = vmatpush3.bf16.msra.mxu1 %v2306_v6  ;;  %v2037_v21 = vld [vmem:[%s3273_s22] ss:$0 sm:$0xff] }
 0x67f   : > { %v1571_v23 = vsel %vm821_vm1, %v1568_v22, 0.0  ;;  %2172 = vmatprep.subr.bf16.mxu1 %v2579_v0 }
 0x680   : > { %1572 = vadd.xlane.f32.xlu0 %v1571_v23  ;;  %v2038_v23 = vld [vmem:[%s3274_s4] ss:$0 sm:$0xff] }
 0x682   : > { %2173 = vmatpush3.bf16.msra.mxu1 %v2307_v31 }
 0x683   : > { %2174 = vmatprep.subr.bf16.mxu1 %v2579_v0 }
 0x686   : > { %2175 = vmatpush3.bf16.msra.mxu1 %v2308_v42 }
 0x687   : > { %2176 = vmatprep.subr.bf16.mxu1 %v2579_v0  ;;  %v2029_v0 = vld [vmem:[%s3270_s16] ss:$0 sm:$0xff]  ;;  %s1826_s16 = sshll.u32 %s784_s5, 4  ;;  %s3138_s16 = int_to_ptr.vmem [resolvable:$true] %s1826_s16 }
 0x688   : > { %s2476_s23 = scalar_lea.vmem %s3138_s16, 128  ;;  %p2483_p13 = scmp.lt.s32.totalorder %s3138_s16, %s2481_s8 }
 0x689   : > { %p2477_p2 = scmp.ne.s32.totalorder %s3138_s16, %s2476_s23  ;;  %p2484_p3 = scmp.lt.s32.totalorder %s2482_s0, %s2476_s23 }
 0x68a   : > { %2177 = vmatpush3.bf16.msra.mxu1 %v2309_v43 }
 0x68b   : > { %p2478_p8 = pnand %p2477_p2, %p3277_p4  ;;  %p2485_p5 = por %p2484_p3, %p2483_p13 }
 0x68d   : > { %p2479_p1 = pneg %p2478_p8 }
 0x68f   : > { %p2486_p6 = pnand %p2485_p5, %p2479_p1 }
 0x70d   : > { %v1573_v24 = vpop.xlane.xlu0 %1572 }
 0x70e   : > { %v1575_v25 = vmul.f32 0.03125, %v1573_v24 }
 0x710   : > { %v1576_v26 = vsub.f32 %v1568_v22, %v1575_v25 }
 0x712   : > { %v1577_v27 = vmul.f32 %v1576_v26, %v1576_v26 }
 0x714   : > { %v1578_v28 = vsel %vm821_vm1, %v1577_v27, 0.0 }
 0x715   : > { %1579 = vadd.xlane.f32.xlu1 %v1578_v28 }
 0x7a2   : > { %v1580_v32 = vpop.xlane.xlu1 %1579 }
 0x7a3   : > { %v1581_v33 = vmul.f32 0.03125, %v1580_v32 }
 0x7a5   : > { %v1582_v34 = vadd.f32 1e-05, %v1581_v33 }
 0x7a7   : > { %2326 = vrsqrt.f32 %v1582_v34 }
 0x7b1   : > { %v2327_v35 = vpop.eup %2326 }
 0x7b2   : > { %v1584_v37 = vmul.f32 %v2327_v35, %v1576_v26 }
 0x7b4   : > { %v1591_v39 = vmul.f32 %v2023_v36, %v1584_v37 }
 0x7b6   : > { %v1598_v40 = vadd.f32 %v2024_v38, %v1591_v39 }
 0x7b8   : > { %v1599_v41 = vpack.c.bf16 %v1598_v40, %v1598_v40 }
 0x7ba   : > { %2167 = vmatmul.mubr.msk.bf16.vlgmr.msra.gmra.mrb[24].mxu0 %vm821_vm1, %v1599_v41 }
 0x88d   : > { %v1660_v45 = vpop.f32.mrb[24].mxu0 }
 0x88e   : > { %v1661_v46 = vadd.f32 %v2025_v44, %v1660_v45  ;;  %v2168_v47 = vpop.f32.mrb[25].mxu0 }
 0x88f   : > { %v1663_v48 = vpop.f32.mrb[26].mxu0 }
 0x890   : > { %v1666_v49 = vmax.f32 %v1661_v46, 0.0  ;;  %v2169_v50 = vpop.f32.mrb[27].mxu0 }
 0x892   : > { %v1667_v51 = vpack.c.bf16 %v1666_v49, %v1666_v49 }
 0x894   : > { %2179 = vmatmul.mubr.msk.bf16.vlgmr.msra.gmra.mrb[24].mxu1 %vm1707_vm9, %v1667_v51 }
 0x967   : > { %v1745_v52 = vpop.f32.mrb[24].mxu1 }
 0x968   : > { %v1746_v53 = vadd.f32 %v2029_v0, %v1745_v52  ;;  %v2180_v54 = vpop.f32.mrb[25].mxu1 }
 0x969   : > { %v1748_v55 = vpop.f32.mrb[26].mxu1 }
 0x96a   : > { %v2181_v56 = vpop.f32.mrb[27].mxu1  ;;  %v1751_v57 = vadd.f32 %v1746_v53, %v1598_v40 }
 0x96c   : > { %v1754_v58 = vsel %vm821_vm1, %v1751_v57, 0.0 }
 0x96d   : > { %1755 = vadd.xlane.f32.xlu0 %v1754_v58 }
 0x9fa   : > { %v1756_v59 = vpop.xlane.xlu0 %1755 }
 0x9fb   : > { %v1757_v60 = vmul.f32 0.03125, %v1756_v59 }
 0x9fd   : > { %v1758_v61 = vsub.f32 %v1751_v57, %v1757_v60 }
 0x9ff   : > { %v1759_v62 = vmul.f32 %v1758_v61, %v1758_v61 }
 0xa01   : > { %v1760_v63 = vsel %vm821_vm1, %v1759_v62, 0.0 }
 0xa02   : > { %1761 = vadd.xlane.f32.xlu0 %v1760_v63 }
 0xa8f   : > { %v1762_v1 = vpop.xlane.xlu0 %1761 }
 0xa90   : > { %v1763_v2 = vmul.f32 0.03125, %v1762_v1 }
 0xa92   : > { %v1764_v3 = vadd.f32 1e-05, %v1763_v2 }
 0xa94   : > { %2328 = vrsqrt.f32 %v1764_v3 }
 0xa9e   : > { %v2329_v4 = vpop.eup %2328 }
 0xa9f   : > { %v1766_v7 = vmul.f32 %v2329_v4, %v1758_v61 }
 0xaa1   : > { %v1773_v9 = vmul.f32 %v2035_v5, %v1766_v7 }
 0xaa3   : > { %v1780_v10 = vadd.f32 %v2036_v8, %v1773_v9 }
 0xaa5   : > { %v1783_v11 = vsel %vm821_vm1, %v1780_v10, 0.0 }
 0xaa6   : > { %1784 = vadd.xlane.f32.xlu1 %v1783_v11 }
 0xb33   : > { %v1785_v12 = vpop.xlane.xlu1 %1784 }
 0xb34   : > { %v1786_v13 = vmul.f32 0.03125, %v1785_v12 }
 0xb36   : > { %v1787_v14 = vsub.f32 %v1780_v10, %v1786_v13 }
 0xb38   : > { %v1788_v15 = vmul.f32 %v1787_v14, %v1787_v14 }
 0xb3a   : > { %v1789_v16 = vsel %vm821_vm1, %v1788_v15, 0.0 }
 0xb3b   : > { %1790 = vadd.xlane.f32.xlu0 %v1789_v16 }
 0xbc8   : > { %v1791_v17 = vpop.xlane.xlu0 %1790 }
 0xbc9   : > { %v1792_v18 = vmul.f32 0.03125, %v1791_v17 }
 0xbcb   : > { %v1793_v19 = vadd.f32 1e-05, %v1792_v18 }
 0xbcd   : > { %2330 = vrsqrt.f32 %v1793_v19 }
 0xbd7   : > { %v2331_v20 = vpop.eup %2330 }
 0xbd8   : > { %v1795_v22 = vmul.f32 %v2331_v20, %v1787_v14 }
 0xbda   : > { %v1802_v24 = vmul.f32 %v2037_v21, %v1795_v22 }
 0xbdc   : > { %v1809_v25 = vadd.f32 %v2038_v23, %v1802_v24 }
 0xbde   : > { %1810 = vst.msk [vmem:[%s784_s5] sm:$0xff] %vm821_vm1, %v1809_v25 }
 0xbdf   : > { %2489 = shalt.err (!%p2486_p6)
}
 0xbe0   : > { %s2490_s24 = scalar_lea.hbm %s3136_s2, 128  ;;  %s2494_s14 = scalar_lea.hbm %s3276_s7, 256 }
 0xbe1   : > { %p2491_p12 = scmp.ne.s32.totalorder %s3136_s2, %s2490_s24  ;;  %p2495_p11 = scmp.lt.u32.totalorder %s3136_s2, %s3276_s7 }
 0xbe2   : > { %p2496_p9 = scmp.lt.u32.totalorder %s2494_s14, %s2490_s24  ;;  %p2498_p2 = scmp.lt.u32.totalorder %s2490_s24, %s3136_s2 }
 0xbe3   : > { %p2492_p10 = pnand %p2491_p12, %p3277_p4 }
 0xbe4   : > { %p2497_p0 = por %p2496_p9, %p2495_p11 }
 0xbe5   : > { %p2493_p7 = pneg %p2492_p10 }
 0xbe6   : > { %p2499_p8 = por %p2498_p2, %p2497_p0 }
 0xbe8   : > { %p2500_p1 = pnand %p2499_p8, %p2493_p7 }
 0xbea   : > { %2503 = shalt.err (!%p2500_p1)
}
 0xbeb   : > { %2198 = dma.vmem_to_hbm [thread:$0]  (%p3277_p4), %s3138_s16, 128, %s3136_s2, %s1812_s12  }
 0xbec PF: > { %s3278_s5 = sld [smem:[#allocation20_spill]]  ;;  %s3279_s11 = sld [smem:[#allocation22_spill]] }
 0xbed   : > { %p3281_p3 = scmp.ge.s32.totalorder %s2570_s28, 2 }
 0xbf2   : > { %s1838_s19 = sand.u32 1, %s3278_s5   ;;  %p3280_p13 = scmp.ne.s32.totalorder %s3279_s11, 0 }
 0xbf3   : > { %s1839_s3 = scalar_lea.sflag [#allocation7], %s1838_s19 }
 0xbf4   : > { %p2218_p5 = pnand %p3281_p3, %p3280_p13 }
 0xbf6   : > { %2545 = dma.done.wait (!%p2218_p5), %s1839_s3, 128  }
 0xbf7   : > { %2547 = vsyncadd (!%p2218_p5), %s1839_s3, 4294967168  ;;  %s41_s28 = sadd.s32 1, %s2570_s28   ;;  %s3282_s27 = sld [smem:[#allocation21_spill]] }
 0xbf8   : > { %p38_p6 = scmp.ge.s32.totalorder %s41_s28, 4   ;;  %s3283_s3 = sld [smem:[#allocation23_spill]] }
 0xbf9   : > { %s3284_s2 = smov %s2554_s25  ;;  %s3285_s25 = smov %s2558_s26 }
 0xbfa   : > { %s3286_s26 = smov %s2866_s20  ;;  %40 = sbr.rel (!%p38_p6) target bundleno = 28 (0x1c), region = 181 }
 0xc01   :  { %1844 = vsyncpa [#allocation6], 1 }
 0xc02   :  { %1846 = vsyncpa [#allocation6 + $0x1], 1 }
 0xc03   :  { %1847 = vsyncpa [#allocation9], 1 }
 0xc04   :  { %1849 = vsyncpa [#allocation9 + $0x1], 1 }
 0xc05   :  { %1850 = vsyncpa [#allocation12], 1 }
 0xc06   :  { %1851 = vsyncpa [#allocation7], 1 }
 0xc07   :  { %1853 = vsyncpa [#allocation7 + $0x1], 1 }

// kernel: tpu_custom_call.1
= control target key start
LH: loop header
LB: loop body
LE: loop exit
PB: predicated region body
PF: predicated region fallthrough
CT: control target
= control target key end

     0   :  { %s3186_s0 = inlined_call_operand.vmem [shape: f32[2,8,32], index: 0, kind: input, shape index: {}]   ;;  %s3187_s1 = inlined_call_operand.hbm [shape: bf16[2,8,32], index: 1, kind: input, shape index: {}]   ;;  %s3188_s2 = inlined_call_operand.hbm [shape: bf16[2,8,32], index: 2, kind: input, shape index: {}]   ;;  %s3189_s3 = inlined_call_operand.vmem [shape: bf16[32,32], index: 3, kind: input, shape index: {}]   ;;  %s3190_s4 = inlined_call_operand.vmem [shape: f32[1,32], index: 4, kind: input, shape index: {}]   ;;  %s3191_s5 = inlined_call_operand.vmem [shape: bf16[32,32], index: 5, kind: input, shape index: {}]   ;;  %s3192_s6 = inlined_call_operand.vmem [shape: f32[1,32], index: 6, kind: input, shape index: {}]   ;;  %s3193_s7 = inlined_call_operand.hbm [shape: bf16[32,32], index: 7, kind: input, shape index: {}]   ;;  %s3194_s8 = inlined_call_operand.hbm [shape: f32[1,32], index: 8, kind: input, shape index: {}]   ;;  %s3195_s9 = inlined_call_operand.vmem [shape: bf16[32,32], index: 9, kind: input, shape index: {}]   ;;  %s3196_s10 = inlined_call_operand.vmem [shape: f32[1,32], index: 10, kind: input, shape index: {}]   ;;  %s3197_s11 = inlined_call_operand.hbm [shape: bf16[32,64], index: 11, kind: input, shape index: {}]   ;;  %s3198_s12 = inlined_call_operand.vmem [shape: f32[1,64], index: 12, kind: input, shape index: {}]   ;;  %s3199_s13 = inlined_call_operand.vmem [shape: bf16[64,32], index: 13, kind: input, shape index: {}]   ;;  %s3200_s14 = inlined_call_operand.vmem [shape: f32[1,32], index: 14, kind: input, shape index: {}]   ;;  %s3201_s15 = inlined_call_operand.vmem [shape: f32[1,32], index: 15, kind: input, shape index: {}]   ;;  %s3202_s16 = inlined_call_operand.vmem [shape: f32[1,32], index: 16, kind: input, shape index: {}]   ;;  %s3203_s17 = inlined_call_operand.vmem [shape: f32[1,32], index: 17, kind: input, shape index: {}]   ;;  %s3204_s18 = inlined_call_operand.vmem [shape: f32[1,32], index: 18, kind: input, shape index: {}]   ;;  %s3205_s19 = inlined_call_operand.vmem [shape: f32[1,32], index: 19, kind: input, shape index: {}]   ;;  %s3206_s20 = inlined_call_operand.vmem [shape: f32[1,32], index: 20, kind: input, shape index: {}]   ;;  %s3207_s21 = inlined_call_operand.hbm [shape: f32[2,8,32], index: 21, kind: output, shape index: {}]  }
   0x1   :  { %3221 = sst [smem:[#allocation24_spill]] %s3186_s0 }
   0x2   :  { %3222 = sst [smem:[#allocation25_spill]] %s3187_s1 }
   0x3   :  { %3223 = sst [smem:[#allocation26_spill]] %s3188_s2 }
   0x4   :  { %3224 = sst [smem:[#allocation27_spill]] %s3189_s3 }
   0x5   :  { %3225 = sst [smem:[#allocation28_spill]] %s3190_s4 }
   0x6   :  { %3226 = sst [smem:[#allocation29_spill]] %s3191_s5 }
   0x7   :  { %3227 = sst [smem:[#allocation30_spill]] %s3193_s7 }
   0x8   :  { %3228 = sst [smem:[#allocation31_spill]] %s3194_s8 }
   0x9   :  { %3229 = sst [smem:[#allocation32_spill]] %s3197_s11 }
   0xa   :  { %3230 = sst [smem:[#allocation33_spill]] %s3198_s12 }
   0xb   :  { %3231 = sst [smem:[#allocation34_spill]] %s3200_s14 }
   0xc   :  { %3232 = sst [smem:[#allocation35_spill]] %s3201_s15 }
   0xd   :  { %3233 = sst [smem:[#allocation36_spill]] %s3202_s16 }
   0xe   :  { %3234 = sst [smem:[#allocation37_spill]] %s3203_s17 }
   0xf   :  { %3235 = sst [smem:[#allocation38_spill]] %s3204_s18 }
  0x10   :  { %3236 = sst [smem:[#allocation39_spill]] %s3205_s19 }
  0x11   :  { %3237 = sst [smem:[#allocation40_spill]] %s3206_s20 }
  0x12   :  { %3238 = sst [smem:[#allocation41_spill]] %s3207_s21 }
  0x13   :  { %26 = vsyncpa [#allocation6], 0 }
  0x14   :  { %28 = vsyncpa [#allocation6 + $0x1], 0 }
  0x15   :  { %29 = vsyncpa [#allocation9], 0 }
  0x16   :  { %31 = vsyncpa [#allocation9 + $0x1], 0 }
  0x17   :  { %32 = vsyncpa [#allocation12], 0 }
  0x18   :  { %33 = vsyncpa [#allocation7], 0 }
  0x19   :  { %35 = vsyncpa [#allocation7 + $0x1], 0  ;;  %s2698_s2 = smov 0   ;;  %s2700_s25 = smov 0  }
  0x1a   :  { %s2702_s26 = smov 0   ;;  %s2704_s27 = smov 0  }
  0x1b   :  { %s2706_s3 = smov 0   ;;  %s2708_s28 = smov 0  }
  0x1c LB: > { %3239 = sst [smem:[#allocation20_spill]] %s2550_s2  ;;  %s2729_s29 = sadd.s32 4294967295, %s2570_s28   ;;  %s2570_s28 = sphi %s2708_s28, %s41_s28   ;;  %s2566_s3 = sphi %s2706_s3, %s3283_s3   ;;  %s2562_s27 = sphi %s2704_s27, %s3282_s27   ;;  %s2558_s26 = sphi %s2702_s26, %s3286_s26   ;;  %s2554_s25 = sphi %s2700_s25, %s3285_s25   ;;  %s2550_s2 = sphi %s2698_s2, %s3284_s2  }
  0x1d   : > { %3240 = sst [smem:[#allocation21_spill]] %s2566_s3  ;;  %s1972_s0 = sadd.s32 4294967294, %s2570_s28  }
  0x1e   : > { %p101_p0 = scmp.ne.s32.totalorder %s2554_s25, %s2550_s2  ;;  %p3215_p1 = scmp.eq.s32.totalorder %s2729_s29, 0 }
  0x1f   : > { %p537_p3 = scmp.eq.s32.totalorder %s1972_s0, 1  ;;  %p1973_p5 = scmp.ge.s32.totalorder %s2570_s28, 1 }
  0x20   : > { %p2738_p4 = por %p3215_p1, %p101_p0  ;;  %p544_p7 = scmp.lt.s32.totalorder %s2570_s28, 3 }
  0x21   : > { %p2743_p6 = por %p537_p3, %p101_p0  ;;  %s2572_s22 = smov [#allocation10]  }
  0x22   : > { %s3241_s4 = scalar_select %p2738_p4, 1, 0 }
  0x23   : > { %s3242_s30 = scalar_select %p2743_p6, 1, 0 }
  0x24   : > { %p2748_p8 = pnand %p1973_p5, %p544_p7  ;;  %s568_s23 = sshll.u32 %s2572_s22, 4  ;;  %s2752_s23 = int_to_ptr.vmem [resolvable:$true] %s568_s23 }
  0x25   : > { %3243 = sst [smem:[#allocation22_spill]] %s3242_s30  ;;  %s2573_s24 = smov [#allocation11]  }
  0x26   : > { %s3244_s5 = scalar_select %p2748_p8, 1, 0 }
  0x27   : > { %p2200_p9 = pneg %p2748_p8  ;;  %s582_s0 = sshll.u32 %s2573_s24, 4  ;;  %s2763_s0 = int_to_ptr.vmem [resolvable:$true] %s582_s0 }
  0x28   : > { %s2574_s30 = smov [#allocation13]   ;;  %s3246_s7 = sld [smem:[#allocation30_spill]] }
  0x29   : > { %p2759_p11 = pnand %p2200_p9, %p3215_p1  ;;  %s2765_s2 = sshll.u32 %s2574_s30, 4  ;;  %s599_s2 = int_to_ptr.vmem [resolvable:$true] %s2765_s2 }
  0x2b   : > { %p2775_p13 = pneg %p2759_p11 }
  0x2e   : > { %s2332_s20 = scalar_lea.hbm %s3246_s7, 256 }
  0x2f   : > { %p2333_p12 = scmp.ne.s32.totalorder %s3246_s7, %s2332_s20  ;;  %p2339_p5 = scmp.lt.u32.totalorder %s2332_s20, %s3246_s7 }
  0x31   : > { %p2335_p0 = pnand %p2775_p13, %p2333_p12 }
  0x33   : > { %p2336_p3 = pneg %p2335_p0 }
  0x35   : > { %p2341_p7 = pnand %p2339_p5, %p2336_p3 }
  0x37   : > { %2344 = shalt.err (!%p2341_p7)
}
  0x38   : > { %s2345_s18 = scalar_lea.vmem %s2752_s23, 256  ;;  %p2353_p2 = scmp.lt.s32.totalorder %s2752_s23, %s2752_s23 }
  0x39   : > { %p2346_p9 = scmp.ne.s32.totalorder %s2752_s23, %s2345_s18  ;;  %p2354_p6 = scmp.lt.s32.totalorder %s2345_s18, %s2345_s18 }
  0x3b   : > { %p2348_p10 = pnand %p2346_p9, %p2775_p13  ;;  %p2355_p12 = por %p2354_p6, %p2353_p2 }
  0x3d   : > { %p2349_p1 = pneg %p2348_p10 }
  0x3f   : > { %p2356_p0 = pnand %p2355_p12, %p2349_p1 }
  0x41   : > { %2359 = shalt.err (!%p2356_p0)
}
  0x42   : > { %s2575_s19 = smov 64   ;;  %s2576_s20 = smov 4  }
  0x43   : > { %2203 = dma.hbm_to_vmem [thread:$0]  (!%p2759_p11), %s3246_s7, 256, %s2752_s23, [#allocation9], %s2575_s19, %s2575_s19, %s2576_s20  }
  0x44   : > { %s3248_s8 = sld [smem:[#allocation31_spill]] }
  0x4a   : > { %s2360_s18 = scalar_lea.hbm %s3248_s8, 16 }
  0x4b   : > { %p2361_p1 = scmp.ne.s32.totalorder %s3248_s8, %s2360_s18  ;;  %p2367_p10 = scmp.lt.u32.totalorder %s2360_s18, %s3248_s8 }
  0x4d   : > { %p2363_p2 = pnand %p2361_p1, %p2775_p13 }
  0x4f   : > { %p2364_p6 = pneg %p2363_p2 }
  0x51   : > { %p2369_p3 = pnand %p2367_p10, %p2364_p6 }
  0x53   : > { %2372 = shalt.err (!%p2369_p3)
}
  0x54   : > { %s2373_s23 = scalar_lea.vmem %s2763_s0, 16  ;;  %s2380_s12 = scalar_lea.vmem %s2763_s0, 32 }
  0x55   : > { %p2374_p5 = scmp.ne.s32.totalorder %s2763_s0, %s2373_s23  ;;  %p2381_p12 = scmp.lt.s32.totalorder %s2763_s0, %s2763_s0 }
  0x56   : > { %p2382_p0 = scmp.lt.s32.totalorder %s2380_s12, %s2373_s23 }
  0x57   : > { %p2376_p7 = pnand %p2374_p5, %p2775_p13 }
  0x58   : > { %p2383_p1 = por %p2382_p0, %p2381_p12 }
  0x59   : > { %p2377_p9 = pneg %p2376_p7 }
  0x5b   : > { %p2384_p2 = pnand %p2383_p1, %p2377_p9 }
  0x5d   : > { %2387 = shalt.err (!%p2384_p2)
}
  0x5e   : > { %2206 = dma.hbm_to_vmem [thread:$0]  (!%p2759_p11), %s3248_s8, 16, %s2763_s0, [#allocation12]  }
  0x5f   : > { %s3249_s11 = sld [smem:[#allocation32_spill]] }
  0x65   : > { %s2388_s22 = scalar_lea.hbm %s3249_s11, 256 }
  0x66   : > { %p2389_p6 = scmp.ne.s32.totalorder %s3249_s11, %s2388_s22  ;;  %p2395_p5 = scmp.lt.u32.totalorder %s2388_s22, %s3249_s11 }
  0x68   : > { %p2391_p10 = pnand %p2389_p6, %p2775_p13 }
  0x6a   : > { %p2392_p3 = pneg %p2391_p10 }
  0x6c   : > { %p2397_p7 = pnand %p2395_p5, %p2392_p3 }
  0x6e   : > { %2400 = shalt.err (!%p2397_p7)
}
  0x6f   : > { %s2401_s12 = scalar_lea.vmem %s599_s2, 256  ;;  %p2409_p1 = scmp.lt.s32.totalorder %s599_s2, %s599_s2 }
  0x70   : > { %p2402_p9 = scmp.ne.s32.totalorder %s599_s2, %s2401_s12  ;;  %p2410_p2 = scmp.lt.s32.totalorder %s2401_s12, %s2401_s12 }
  0x72   : > { %p2404_p12 = pnand %p2402_p9, %p2775_p13  ;;  %p2411_p4 = por %p2410_p2, %p2409_p1 }
  0x74   : > { %p2405_p0 = pneg %p2404_p12 }
  0x76   : > { %p2412_p8 = pnand %p2411_p4, %p2405_p0 }
  0x78   : > { %2415 = shalt.err (!%p2412_p8)
}
  0x79   : > { %2209 = dma.hbm_to_vmem [thread:$0]  (!%p2759_p11), %s3249_s11, 256, %s599_s2, [#allocation12], %s2575_s19, %s2575_s19, %s2576_s20  }
  0x7a   : > { %s88_s17 = sadd.s32 1, %s2558_s26  ;;  %s53_s1 = sadd.s32 1, %s2566_s3 }
  0x7b   : > { %p95_p4 = scmp.ne.s32.totalorder %s2558_s26, %s2554_s25  ;;  %p55_p8 = scmp.ge.s32.totalorder %s53_s1, 2 }
  0x7c   : > { %p96_p13 = scmp.eq.s32.totalorder %s2570_s28, 0  ;;  %p3250_p6 = scmp.eq.s32.totalorder %s2729_s29, 1 }
  0x7d   : > { %p2224_p3 = scmp.lt.s32.totalorder %s2570_s28, 2  ;;  %s3288_s1 = smov (%p55_p8, %s53_s1), 0 }
  0x7e   : > { %p2852_p10 = por %p3250_p6, %p95_p4  ;;  %3252 = sst [smem:[#allocation23_spill]] %s3288_s1 }
  0x7f   : > { %p97_p5 = por %p96_p13, %p95_p4  ;;  %s649_s16 = sand.u32 1, %s2558_s26  }
  0x80   : > { %s3251_s15 = scalar_select %p2852_p10, 1, 0 }
  0x81   : > { %s85_s21 = ssub.s32 %s2566_s3, %s3288_s1  ;;  %s2862_s2 = sshll.u32 %s649_s16, 2 }
  0x82   : > { %p86_p11 = scmp.eq.s32.totalorder %s85_s21, 0  ;;  %s1979_s19 = sshll.u32 %s2566_s3, 6 }
  0x83   : > { %s3253_s30 = sld [smem:[#allocation25_spill]]  ;;  %s653_s23 = scalar_lea.vmem [#allocation5], %s2862_s2 }
  0x84   : > { %s2866_s20 = scalar_select %p86_p11, %s2558_s26, %s88_s17  }
  0x85   : > { %s660_s12 = sshll.u32 %s653_s23, 4  ;;  %p2878_p7 = pnand %p2224_p3, %p97_p5  ;;  %s2874_s12 = int_to_ptr.vmem [resolvable:$true] %s660_s12 }
  0x86   : > { %s3255_s21 = sld [smem:[#allocation26_spill]]  ;;  %s667_s24 = sand.u32 1, %s2570_s28  }
  0x87   : > { %s650_s7 = scalar_lea.sflag [#allocation6], %s649_s16  ;;  %p2418_p12 = pneg %p2878_p7 }
  0x89   : > { %s2871_s18 = scalar_lea.hbm %s3253_s30, %s1979_s19  ;;  %s2421_s1 = scalar_lea.hbm %s3253_s30, 128 }
  0x8a   : > { %s2416_s8 = scalar_lea.hbm %s2871_s18, 64  ;;  %p2422_p2 = scmp.lt.u32.totalorder %s2871_s18, %s3253_s30 }
  0x8b   : > { %p2417_p9 = scmp.ne.s32.totalorder %s2871_s18, %s2416_s8  ;;  %p2423_p4 = scmp.lt.u32.totalorder %s2421_s1, %s2416_s8 }
  0x8c   : > { %s2885_s22 = scalar_lea.hbm %s3255_s21, %s1979_s19  ;;  %p2425_p13 = scmp.lt.u32.totalorder %s2416_s8, %s2871_s18 }
  0x8d   : > { %p2419_p0 = pnand %p2418_p12, %p2417_p9  ;;  %p2424_p8 = por %p2423_p4, %p2422_p2 }
  0x8f   : > { %p2420_p1 = pneg %p2419_p0  ;;  %p2426_p6 = por %p2425_p13, %p2424_p8 }
  0x91   : > { %p2427_p3 = pnand %p2426_p6, %p2420_p1 }
  0x93   : > { %2430 = shalt.err (!%p2427_p3)
}
  0x94   : > { %s2431_s16 = scalar_lea.vmem %s2874_s12, 64  ;;  %s2577_s11 = smov [#allocation5]  }
  0x95   : > { %p2432_p5 = scmp.ne.s32.totalorder %s2874_s12, %s2431_s16  ;;  %s2436_s19 = sshll.u32 %s2577_s11, 4  ;;  %s2437_s19 = int_to_ptr.vmem [resolvable:$false] %s2436_s19 }
  0x96   : > { %s2438_s3 = scalar_lea.vmem %s2437_s19, 128  ;;  %p2439_p0 = scmp.lt.s32.totalorder %s2874_s12, %s2437_s19 }
  0x97   : > { %p2434_p11 = pnand %p2432_p5, %p2418_p12  ;;  %p2440_p2 = scmp.lt.s32.totalorder %s2438_s3, %s2431_s16 }
  0x99   : > { %p2435_p9 = pneg %p2434_p11  ;;  %p2441_p4 = por %p2440_p2, %p2439_p0 }
  0x9b   : > { %p2442_p8 = pnand %p2441_p4, %p2435_p9 }
  0x9d   : > { %2445 = shalt.err (!%p2442_p8)
}
  0x9e   : > { %2213 = dma.hbm_to_vmem [thread:$0]  (!%p2878_p7), %s2871_s18, 64, %s2874_s12, %s650_s7  }
  0x9f   : > { %s671_s8 = scalar_lea.vmem [#allocation8], %s2862_s2  ;;  %s668_s17 = scalar_lea.sflag [#allocation9], %s667_s24 }
  0xa0   : > { %s678_s1 = sshll.u32 %s671_s8, 4  ;;  %s2446_s23 = scalar_lea.hbm %s2885_s22, 64  ;;  %s679_s1 = int_to_ptr.vmem [resolvable:$true] %s678_s1 }
  0xa1   : > { %p2447_p1 = scmp.ne.s32.totalorder %s2885_s22, %s2446_s23  ;;  %s2451_s11 = scalar_lea.hbm %s3255_s21, 128 }
  0xa2   : > { %p2452_p3 = scmp.lt.u32.totalorder %s2885_s22, %s3255_s21  ;;  %p2453_p5 = scmp.lt.u32.totalorder %s2451_s11, %s2446_s23 }
  0xa3   : > { %p2449_p13 = pnand %p2447_p1, %p2418_p12  ;;  %p2455_p9 = scmp.lt.u32.totalorder %s2446_s23, %s2885_s22 }
  0xa4   : > { %p2454_p11 = por %p2453_p5, %p2452_p3 }
  0xa5   : > { %p2450_p6 = pneg %p2449_p13 }
  0xa6   : > { %p2456_p0 = por %p2455_p9, %p2454_p11 }
  0xa8   : > { %p2457_p2 = pnand %p2456_p0, %p2450_p6 }
  0xaa   : > { %2460 = shalt.err (!%p2457_p2)
}
  0xab   : > { %s2461_s7 = scalar_lea.vmem %s679_s1, 64  ;;  %s2578_s2 = smov [#allocation8]  }
  0xac   : > { %p2462_p4 = scmp.ne.s32.totalorder %s679_s1, %s2461_s7  ;;  %s2466_s18 = sshll.u32 %s2578_s2, 4  ;;  %s2467_s18 = int_to_ptr.vmem [resolvable:$false] %s2466_s18 }
  0xad   : > { %s2468_s12 = scalar_lea.vmem %s2467_s18, 128  ;;  %p2469_p13 = scmp.lt.s32.totalorder %s679_s1, %s2467_s18 }
  0xae   : > { %p2464_p8 = pnand %p2462_p4, %p2418_p12  ;;  %p2470_p10 = scmp.lt.s32.totalorder %s2468_s12, %s2461_s7 }
  0xb0   : > { %p2465_p1 = pneg %p2464_p8  ;;  %p2471_p3 = por %p2470_p10, %p2469_p13 }
  0xb2   : > { %p2472_p5 = pnand %p2471_p3, %p2465_p1 }
  0xb4   : > { %2475 = shalt.err (!%p2472_p5)
}
  0xb5   : > { %2216 = dma.hbm_to_vmem [thread:$0]  (!%p2878_p7), %s2885_s22, 64, %s679_s1, %s668_s17  }
  0xb6   : > { %p3256_p6 = scmp.ne.s32.totalorder %s3244_s5, 0 }
  0xb7   : > { %s2938_s24 = sand.u32 (!%p3256_p6), 1, %s2554_s25   ;;  %p3257_p12 = scmp.ne.s32.totalorder (!%p3256_p6), %s3241_s4, 0 }
  0xb8   : > { %687 = sbr.rel (%p3256_p6) target bundleno = 3052 (0xbec), region = 104  ;;  %s1983_s8 = sshll.u32 (!%p3256_p6), %s2938_s24, 2 }
  0xb9   : > { %s690_s23 = scalar_lea.sflag (!%p3256_p6), [#allocation6], %s2938_s24  ;;  %s693_s14 = scalar_lea.vmem (!%p3256_p6), [#allocation5], %s1983_s8 }
  0xbf   : > { %2529 = dma.done.wait (%p3257_p12), %s690_s23, 64  }
  0xc0   : > { %2531 = vsyncadd (%p3257_p12), %s690_s23, 4294967232  ;;  %s698_s0 = sand.u32 1, %s2729_s29   ;;  %s2947_s5 = scalar_lea.vmem [#allocation8], %s1983_s8 }
  0xc1   : > { %s699_s22 = scalar_lea.sflag [#allocation9], %s698_s0 }
  0xc2   : > { %2533 = dma.done.wait (%p3257_p12), %s699_s22, 64  }
  0xc3   : > { %2535 = vsyncadd (%p3257_p12), %s699_s22, 4294967232  ;;  %p3258_p10 = scmp.eq.s32.totalorder %s2729_s29, 0 }
  0xc5   : > { %2537 = dma.done.wait (%p3258_p10), [#allocation9], 256   ;;  %p3259_p7 = pmov %p3258_p10 }
  0xc7   : > { %2539 = vsyncadd (%p3259_p7), [#allocation9], 4294967040  ;;  %p3260_p11 = pmov %p3259_p7 }
  0xc8   : > { %p3261_p9 = pmov %p3259_p7 }
  0xc9   : > { %2541 = dma.done.wait (%p3260_p11), [#allocation12], 272  }
  0xca   : > { %2543 = vsyncadd (%p3261_p9), [#allocation12], 4294967024  ;;  %v2579_v0 = vmov 0.0   ;;  %vm2580_vm0 = vmmov 0   ;;  %p785_p0 = scmp.lt.s32.totalorder %s2562_s27, 1  ;;  %s3262_s29 = sld [smem:[#allocation29_spill]] }
  0xcb   : > { %2082 = vmatprep.subr.bf16.mxu0 %v2579_v0  ;;  %2086 = vmatprep.mubr.msk.bf16.mxu0 %vm2580_vm0, %v2579_v0  ;;  %v797_v3 = vld [vmem:[%s693_s14] sm:$0xf]  ;;  %vm821_vm1 = vcmask 261120   ;;  %s3263_s2 = sld [smem:[#allocation27_spill]]  ;;  %s3265_s23 = sld [smem:[#allocation24_spill]]  ;;  %v2294_v8 = vld [vmem:[#allocation10] sm:$0xff]  }
  0xcc   : > { %2090 = vmatprep.subr.bf16.mxu1 %v2579_v0  ;;  %2094 = vmatprep.mubr.msk.bf16.mxu1 %vm2580_vm0, %v2579_v0  ;;  %s786_s4 = scalar_select %p785_p0, %s2562_s27, 1  ;;  %v2295_v9 = vld [vmem:[#allocation10 + $0x8] sm:$0xff]   ;;  %v865_v10 = vld [vmem:[%s2947_s5] sm:$0xf]  ;;  %v1990_v11 = vld [vmem:[%s3192_s6] ss:$0 sm:$0xff] }
  0xcd   : > { %2091 = vmatpush3.bf16.msra.mxu1 %v2294_v8  ;;  %vm933_vm2 = vcmask 257024   ;;  %s3266_s16 = sld [smem:[#allocation28_spill]]  ;;  %vm1009_vm3 = vcmask 64512   ;;  %s2581_s11 = smov 112   ;;  %v1994_v31 = vld [vmem:[#allocation11] ss:$0 sm:$0xff] }
  0xce   : > { %s1989_s19 = sshll.u32 %s786_s4, 3  ;;  %2092 = vmatprep.subr.bf16.mxu1 %v2579_v0  ;;  %s2583_s3 = smov 104   ;;  %vm1072_vm4 = vcmask 1043456   ;;  %vm1117_vm5 = vcmask 60416   ;;  %vm1245_vm6 = vcmask 126016   ;;  %vm1372_vm7 = vcmask 191616  }
  0xcf   : > { %s2584_s7 = smov 8   ;;  %s2586_s22 = smov 24   ;;  %vm1499_vm8 = vcmask 257216   ;;  %vm1707_vm9 = vcmask 523264  }
  0xd0   : > { %v2290_v1 = vld [vmem:[%s3262_s29] sm:$0xff]   ;;  %v2291_v2 = vld [vmem:[%s3262_s29 + $0x8] sm:$0xff]   ;;  %s3268_s12 = sld [smem:[#allocation36_spill]]  ;;  %s3269_s4 = sld [smem:[#allocation33_spill]] }
  0xd1   : > { %2083 = vmatpush3.bf16.msra.mxu0 %v2290_v1  ;;  %s3264_s18 = smov %s3263_s2  ;;  %v2292_v4 = vld [vmem:[%s3263_s2] sm:$0xff]   ;;  %s791_s0 = scalar_lea.vmem %s3265_s23, %s1989_s19  ;;  %2093 = vmatpush3.bf16.msra.mxu1 %v2295_v9 }
  0xd2   : > { %2084 = vmatprep.subr.bf16.mxu0 %v2579_v0  ;;  %v2293_v5 = vld [vmem:[%s3264_s18 + $0x8] sm:$0xff]   ;;  %v2986_v6 = vld [vmem:[%s791_s0] sm:$0xff]  ;;  %2106 = vmatprep.subr.bf16.mxu1 %v2579_v0  ;;  %s2582_s19 = smov 120   ;;  %s2585_s0 = smov 16  }
  0xd3   : > { %v938_v7 = vpack.c.bf16 %v2986_v6, %v2986_v6  ;;  %v1998_v18 = vld [vmem:[%s3266_s16] ss:$0 sm:$0xff]  ;;  %s3270_s16 = sld [smem:[#allocation34_spill]]  ;;  %s1988_s8 = sshll.u32 %s2938_s24, 3 }
  0xd4   : > { %2095 = vmatmul.mubr.msk.bf16.vlgmr.msra.gmra.mrb[0].mxu1 %vm821_vm1, %v865_v10  ;;  %s2040_s17 = sshll.u32 %s2562_s27, 7  ;;  %s784_s5 = scalar_lea.vmem [#allocation14], %s1988_s8 }
  0xd5   : > { %2085 = vmatpush3.bf16.msra.mxu0 %v2291_v2  ;;  %2108 = vmatprep.mubr.msk.bf16.mxu1 %vm2580_vm0, %v2579_v0  ;;  %p3277_p4 = scmp.ne.s32.totalorder %s3251_s15, 0  ;;  %s2587_s27 = smov [#allocation14]  }
  0xd6   : > { %2098 = vmatprep.subr.bf16.mxu0 %v2579_v0  ;;  %s2480_s8 = sshll.u32 %s2587_s27, 4  ;;  %s2481_s8 = int_to_ptr.vmem [resolvable:$false] %s2480_s8 }
  0xd8   : > { %2087 = vmatmul.mubr.msk.bf16.vlgmr.msra.gmra.mrb[0].mxu0 %vm821_vm1, %v797_v3 }
  0xd9   : > { %2099 = vmatpush3.bf16.msra.mxu0 %v2292_v4  ;;  %2102 = vmatprep.mubr.msk.bf16.mxu0 %vm2580_vm0, %v2579_v0 }
  0xda   : > { %2100 = vmatprep.subr.bf16.mxu0 %v2579_v0 }
  0xdd   : > { %2101 = vmatpush3.bf16.msra.mxu0 %v2293_v5 }
  0xde   : > { %2112 = vmatprep.subr.bf16.mxu0 %v2579_v0 }
  0xe0   : > { %2103 = vmatmul.mubr.msk.bf16.vlgmr.msra.gmra.mrb[4].mxu0 %vm821_vm1, %v938_v7 }
  0xe1   : > { %2114 = vmatprep.mubr.msk.bf16.mxu0 %vm2580_vm0, %v2579_v0 }
 0x1a7   : > { %v926_v32 = vpop.f32.mrb[0].mxu1 }
 0x1a8   : > { %v927_v33 = vadd.f32 %v1994_v31, %v926_v32  ;;  %v2096_v34 = vpop.f32.mrb[1].mxu1 }
 0x1a9   : > { %v929_v35 = vpop.f32.mrb[2].mxu1 }
 0x1aa   : > { %v935_v36 = vpack.c.bf16 %v927_v33, %v927_v33  ;;  %v2097_v37 = vpop.f32.mrb[3].mxu1 }
 0x1ab   : > { %v859_v12 = vpop.f32.mrb[0].mxu0 }
 0x1ac   : > { %v860_v13 = vadd.f32 %v1990_v11, %v859_v12  ;;  %v2088_v14 = vpop.f32.mrb[1].mxu0  ;;  %936 = vst.msk [vmem:[#allocation3] sm:$0xf] %vm933_vm2, %v935_v36 }
 0x1ad   : > { %v862_v15 = vpop.f32.mrb[2].mxu0 }
 0x1ae   : > { %v932_v16 = vpack.c.bf16 %v860_v13, %v860_v13  ;;  %v2089_v17 = vpop.f32.mrb[3].mxu0 }
 0x1b0   : > { %934 = vst.msk [vmem:[#allocation2] sm:$0xf] %vm933_vm2, %v932_v16 }
 0x1b3   : > { %v1000_v19 = vpop.f32.mrb[4].mxu0  ;;  %v1068_v38 = vld [vmem:[#allocation3] sm:$0xf] }
 0x1b4   : > { %v1001_v20 = vadd.f32 %v1998_v18, %v1000_v19  ;;  %v2104_v21 = vpop.f32.mrb[5].mxu0  ;;  %v1074_v39 = vsel %vm1072_vm4, %v1068_v38, 0  ;;  %v2299_v12 = vld [vmem:[#allocation3] ss:$0 sps:$4 sm:$0xff]  }
 0x1b5   : > { %v1003_v22 = vpop.f32.mrb[6].mxu0  ;;  %2113 = vmatpush3.bf16.msra.mxu0 %v1074_v39  ;;  %v2301_v32 = vld [vmem:[#allocation3] ss:$0 sps:$4 sm:$0xff]  }
 0x1b6   : > { %v1006_v23 = vmul.f32 0.35355338, %v1001_v20  ;;  %v2105_v24 = vpop.f32.mrb[7].mxu0  ;;  %2124 = vmatprep.subr.bf16.mxu0 %v2579_v0 }
 0x1b7   : > { %v1008_v25 = vld [vmem:[#allocation2] sm:$0xf] }
 0x1b8   : > { %v2296_v26 = vld [vmem:[#allocation2] ss:$0 sps:$4 sm:$0xff]   ;;  %v1014_v27 = vsel %vm1009_vm3, %v1008_v25, 0  ;;  %v1007_v29 = vpack.c.bf16 %v1006_v23, %v1006_v23 }
 0x1b9   : > { %v2297_v28 = vld [vmem:[#allocation2] ss:$0 sps:$4 sm:$0xff]   ;;  %2107 = vmatpush3.bf16.xpose.msra.mxu1 %v1014_v27  ;;  %1253 = vrot.lane.b32.xlu1 %v2296_v26, %s2581_s11 }
 0x1ba   : > { %1126 = vrot.lane.b32.xlu0 %v2297_v28, %s2582_s19  ;;  %2118 = vmatprep.subr.bf16.mxu1 %v2579_v0  ;;  %v2298_v30 = vld [vmem:[#allocation2] ss:$0 sps:$4 sm:$0xff]   ;;  %v2300_v28 = vld [vmem:[#allocation3] ss:$0 sps:$4 sm:$0xff]  }
 0x1bd   : > { %1248 = vrot.lane.b32.xlu1 %v1007_v29, %s2581_s11 }
 0x1be   : > { %1121 = vrot.lane.b32.xlu0 %v1007_v29, %s2582_s19 }
 0x1c0   : > { %2109 = vmatmul.mubr.msk.bf16.vlgmr.msra.gmra.mrb[4].mxu1 %vm1009_vm3, %v1007_v29 }
 0x1c1   : > { %1375 = vrot.lane.b32.xlu1 %v1007_v29, %s2583_s3  ;;  %2120 = vmatprep.mubr.msk.bf16.mxu1 %vm2580_vm0, %v2579_v0 }
 0x1c2   : > { %1380 = vrot.lane.b32.xlu0 %v2298_v30, %s2583_s3 }
 0x22b   : > { %v1254_v42 = vpop.permute.xlu1 %1253 }
 0x22c   : > { %v1127_v40 = vpop.permute.xlu0 %1126  ;;  %v1259_v44 = vsel %vm1009_vm3, %v1254_v42, 0 }
 0x22d   : > { %v1132_v41 = vsel %vm1009_vm3, %v1127_v40, 0 }
 0x22e   : > { %2119 = vmatpush3.bf16.xpose.msra.mxu1 %v1132_v41 }
 0x22f   : > { %2130 = vmatprep.subr.bf16.mxu1 %v2579_v0  ;;  %v1249_v46 = vpop.permute.xlu1 %1248 }
 0x230   : > { %v1122_v43 = vpop.permute.xlu0 %1121 }
 0x233   : > { %v1376_v48 = vpop.permute.xlu1 %1375 }
 0x234   : > { %v1381_v45 = vpop.permute.xlu0 %1380 }
 0x235   : > { %2121 = vmatmul.mubr.msk.bf16.vlgmr.msra.gmra.mrb[8].mxu1 %vm1009_vm3, %v1122_v43  ;;  %v1386_v47 = vsel %vm1009_vm3, %v1381_v45, 0 }
 0x236   : > { %2131 = vmatpush3.bf16.xpose.msra.mxu1 %v1259_v44  ;;  %2132 = vmatprep.mubr.msk.bf16.mxu1 %vm2580_vm0, %v2579_v0 }
 0x237   : > { %2142 = vmatprep.subr.bf16.mxu1 %v2579_v0 }
 0x23d   : > { %2133 = vmatmul.mubr.msk.bf16.vlgmr.msra.gmra.mrb[12].mxu1 %vm1009_vm3, %v1249_v46 }
 0x23e   : > { %2143 = vmatpush3.bf16.xpose.msra.mxu1 %v1386_v47  ;;  %2144 = vmatprep.mubr.msk.bf16.mxu1 %vm2580_vm0, %v2579_v0 }
 0x23f   : > { %2154 = vmatprep.subr.bf16.mxu1 %v2579_v0 }
 0x245   : > { %2145 = vmatmul.mubr.msk.bf16.vlgmr.msra.gmra.mrb[16].mxu1 %vm1009_vm3, %v1376_v48 }
 0x246   : > { %2158 = vmatprep.mubr.msk.bf16.mxu1 %vm2580_vm0, %v2579_v0 }
 0x293   : > { %v1050_v49 = vpop.f32.mrb[4].mxu1 }
 0x294   : > { %v2110_v50 = vpop.f32.mrb[5].mxu1  ;;  %v1056_v51 = vsel %vm1009_vm3, %v1050_v49, -inf }
 0x295   : > { %1057 = vmax.xlane.f32.xlu0 %v1056_v51  ;;  %v1053_v52 = vpop.f32.mrb[6].mxu1 }
 0x296   : > { %v2111_v53 = vpop.f32.mrb[7].mxu1 }
 0x308   : > { %v1168_v54 = vpop.f32.mrb[8].mxu1 }
 0x309   : > { %v2122_v55 = vpop.f32.mrb[9].mxu1  ;;  %v1174_v56 = vsel %vm1009_vm3, %v1168_v54, -inf }
 0x30a   : > { %1175 = vmax.xlane.f32.xlu1 %v1174_v56  ;;  %v1171_v57 = vpop.f32.mrb[10].mxu1 }
 0x30b   : > { %v2123_v58 = vpop.f32.mrb[11].mxu1 }
 0x310   : > { %v1295_v59 = vpop.f32.mrb[12].mxu1 }
 0x311   : > { %v2134_v60 = vpop.f32.mrb[13].mxu1  ;;  %v1301_v61 = vsel %vm1009_vm3, %v1295_v59, -inf }
 0x312   : > { %1302 = vmax.xlane.f32.xlu0 %v1301_v61  ;;  %v1298_v62 = vpop.f32.mrb[14].mxu1 }
 0x313   : > { %v2135_v63 = vpop.f32.mrb[15].mxu1  ;;  %v2302_v62 = vld [vmem:[%s3195_s9] sm:$0xff]  }
 0x314   : > { %2155 = vmatpush3.bf16.msra.mxu1 %v2302_v62 }
 0x315   : > { %2156 = vmatprep.subr.bf16.mxu1 %v2579_v0 }
 0x318   : > { %v1422_v1 = vpop.f32.mrb[16].mxu1 }
 0x319   : > { %v2146_v2 = vpop.f32.mrb[17].mxu1  ;;  %v1428_v3 = vsel %vm1009_vm3, %v1422_v1, -inf }
 0x31a   : > { %1429 = vmax.xlane.f32.xlu0 %v1428_v3  ;;  %v1425_v4 = vpop.f32.mrb[18].mxu1 }
 0x31b   : > { %v2147_v5 = vpop.f32.mrb[19].mxu1 }
 0x322   : > { %v1058_v7 = vpop.xlane.xlu0 %1057 }
 0x323   : > { %v1059_v8 = vsub.f32 %v1050_v49, %v1058_v7 }
 0x325   : > { %v1060_v9 = vmul.f32 1.442695, %v1059_v8 }
 0x327   : > { %2310 = vpow2.f32 %v1060_v9 }
 0x331   : > { %v2311_v10 = vpop.eup %2310 }
 0x332   : > { %v1062_v11 = vsel %vm1009_vm3, %v2311_v10, 0.0 }
 0x333   : > { %1063 = vadd.xlane.f32.xlu1 %v1062_v11 }
 0x344   : > { %1190 = vrot.lane.b32.xlu1 %v2299_v12, %s2582_s19 }
 0x397   : > { %v1176_v13 = vpop.xlane.xlu1 %1175 }
 0x398   : > { %v1177_v14 = vsub.f32 %v1168_v54, %v1176_v13 }
 0x39a   : > { %v1178_v15 = vmul.f32 1.442695, %v1177_v14 }
 0x39c   : > { %2312 = vpow2.f32 %v1178_v15 }
 0x39f   : > { %v1303_v16 = vpop.xlane.xlu0 %1302 }
 0x3a0   : > { %v1304_v17 = vsub.f32 %v1295_v59, %v1303_v16  ;;  %v2019_v16 = vld [vmem:[%s3196_s10] ss:$0 sm:$0xff] }
 0x3a2   : > { %v1305_v18 = vmul.f32 1.442695, %v1304_v17 }
 0x3a4   : > { %2314 = vpow2.f32 %v1305_v18 }
 0x3a6   : > { %v2313_v19 = vpop.eup %2312 }
 0x3a7   : > { %v1430_v20 = vpop.xlane.xlu0 %1429  ;;  %v1180_v21 = vsel %vm1009_vm3, %v2313_v19, 0.0 }
 0x3a8   : > { %v1431_v22 = vsub.f32 %v1422_v1, %v1430_v20  ;;  %1181 = vadd.xlane.f32.xlu0 %v1180_v21  ;;  %v2303_v1 = vld [vmem:[%s3195_s9 + $0x8] sm:$0xff]  }
 0x3a9   : > { %2157 = vmatpush3.bf16.msra.mxu1 %v2303_v1 }
 0x3aa   : > { %v1432_v23 = vmul.f32 1.442695, %v1431_v22  ;;  %2170 = vmatprep.subr.bf16.mxu1 %v2579_v0 }
 0x3ac   : > { %2316 = vpow2.f32 %v1432_v23 }
 0x3ae   : > { %v2315_v24 = vpop.eup %2314 }
 0x3af   : > { %v1307_v25 = vsel %vm1009_vm3, %v2315_v24, 0.0 }
 0x3b0   : > { %1308 = vadd.xlane.f32.xlu1 %v1307_v25 }
 0x3b6   : > { %v2317_v26 = vpop.eup %2316 }
 0x3b7   : > { %v1434_v27 = vsel %vm1009_vm3, %v2317_v26, 0.0 }
 0x3b8   : > { %1435 = vadd.xlane.f32.xlu0 %v1434_v27 }
 0x3c0   : > { %v1064_v29 = vpop.xlane.xlu1 %1063 }
 0x3c1   : > { %2318 = vrcp.f32 %v1064_v29  ;;  %1444 = vrot.lane.b32.xlu1 %v2300_v28, %s2583_s3  ;;  %v2304_v29 = vld [vmem:[#allocation13] sm:$0xff]   ;;  %s3267_s3 = sld [smem:[#allocation35_spill]] }
 0x3c4   : > { %v1191_v33 = vpop.permute.xlu1 %1190 }
 0x3c5   : > { %v1196_v35 = vsel %vm1072_vm4, %v1191_v33, 0 }
 0x3cb   : > { %v2319_v30 = vpop.eup %2318 }
 0x3cc   : > { %v1066_v31 = vmul.f32 %v2319_v30, %v2311_v10  ;;  %v2305_v30 = vld [vmem:[#allocation13 + $0x8] sm:$0xff]  }
 0x3ce   : > { %1317 = vrot.lane.b32.xlu0 %v2301_v32, %s2581_s11  ;;  %v1067_v34 = vpack.c.bf16 %v1066_v31, %v1066_v31  ;;  %v2307_v31 = vld [vmem:[%s3199_s13 + $0x8] sm:$0xff]  }
 0x3d0   : > { %2115 = vmatmul.mubr.msk.bf16.vlgmr.msra.gmra.mrb[8].mxu0 %vm1009_vm3, %v1067_v34 }
 0x3d1   : > { %2125 = vmatpush3.bf16.msra.mxu0 %v1196_v35  ;;  %2126 = vmatprep.mubr.msk.bf16.mxu0 %vm2580_vm0, %v2579_v0 }
 0x3d2   : > { %2136 = vmatprep.subr.bf16.mxu0 %v2579_v0 }
 0x435   : > { %v1182_v36 = vpop.xlane.xlu0 %1181 }
 0x436   : > { %2320 = vrcp.f32 %v1182_v36  ;;  %v2023_v36 = vld [vmem:[%s3267_s3] ss:$0 sm:$0xff]  ;;  %s3271_s3 = sld [smem:[#allocation37_spill]] }
 0x43d   : > { %v1309_v37 = vpop.xlane.xlu1 %1308 }
 0x43e   : > { %2322 = vrcp.f32 %v1309_v37 }
 0x440   : > { %v2321_v38 = vpop.eup %2320 }
 0x441   : > { %v1184_v39 = vmul.f32 %v2321_v38, %v2313_v19  ;;  %v1445_v46 = vpop.permute.xlu1 %1444  ;;  %v2024_v38 = vld [vmem:[%s3268_s12] ss:$0 sm:$0xff]  ;;  %s3272_s12 = sld [smem:[#allocation38_spill]] }
 0x442   : > { %v1450_v48 = vsel %vm1072_vm4, %v1445_v46, 0 }
 0x443   : > { %v1185_v40 = vpack.c.bf16 %v1184_v39, %v1184_v39 }
 0x445   : > { %2127 = vmatmul.mubr.msk.bf16.vlgmr.msra.gmra.mrb[12].mxu0 %vm1009_vm3, %v1185_v40  ;;  %v1436_v41 = vpop.xlane.xlu0 %1435 }
 0x446   : > { %2324 = vrcp.f32 %v1436_v41  ;;  %2138 = vmatprep.mubr.msk.bf16.mxu0 %vm2580_vm0, %v2579_v0 }
 0x448   : > { %v2323_v42 = vpop.eup %2322 }
 0x449   : > { %v1311_v43 = vmul.f32 %v2323_v42, %v2315_v24  ;;  %v1318_v44 = vpop.permute.xlu0 %1317  ;;  %v2308_v42 = vld [vmem:[%s3199_s13 + $0x10] sm:$0xff]  }
 0x44a   : > { %v1323_v45 = vsel %vm1072_vm4, %v1318_v44, 0  ;;  %v2025_v44 = vld [vmem:[%s3269_s4] ss:$0 sm:$0xff]  ;;  %s3274_s4 = sld [smem:[#allocation40_spill]] }
 0x44b   : > { %2137 = vmatpush3.bf16.msra.mxu0 %v1323_v45  ;;  %v1312_v47 = vpack.c.bf16 %v1311_v43, %v1311_v43  ;;  %v2309_v43 = vld [vmem:[%s3199_s13 + $0x18] sm:$0xff]  }
 0x44c   : > { %2148 = vmatprep.subr.bf16.mxu0 %v2579_v0 }
 0x44e   : > { %2139 = vmatmul.mubr.msk.bf16.vlgmr.msra.gmra.mrb[16].mxu0 %vm1009_vm3, %v1312_v47 }
 0x44f   : > { %2149 = vmatpush3.bf16.msra.mxu0 %v1450_v48  ;;  %2150 = vmatprep.mubr.msk.bf16.mxu0 %vm2580_vm0, %v2579_v0 }
 0x450   : > { %v2325_v49 = vpop.eup %2324  ;;  %2162 = vmatprep.subr.bf16.mxu0 %v2579_v0 }
 0x451   : > { %v1438_v50 = vmul.f32 %v2325_v49, %v2317_v26 }
 0x453   : > { %v1439_v51 = vpack.c.bf16 %v1438_v50, %v1438_v50 }
 0x456   : > { %2151 = vmatmul.mubr.msk.bf16.vlgmr.msra.gmra.mrb[20].mxu0 %vm1009_vm3, %v1439_v51 }
 0x457   : > { %2166 = vmatprep.mubr.msk.bf16.mxu0 %vm2580_vm0, %v2579_v0  ;;  %2163 = vmatpush3.bf16.msra.mxu0 %v2304_v29 }
 0x458   : > { %2164 = vmatprep.subr.bf16.mxu0 %v2579_v0 }
 0x45b   : > { %2165 = vmatpush3.bf16.msra.mxu0 %v2305_v30 }
 0x4a3   : > { %v1110_v52 = vpop.f32.mrb[8].mxu0 }
 0x4a4   : > { %v1116_v53 = vpack.c.bf16 %v1110_v52, %v1110_v52  ;;  %v2116_v54 = vpop.f32.mrb[9].mxu0 }
 0x4a5   : > { %v1113_v55 = vpop.f32.mrb[10].mxu0 }
 0x4a6   : > { %1118 = vst.msk [vmem:[#allocation4] sm:$0xf] %vm1117_vm5, %v1116_v53  ;;  %v2117_v56 = vpop.f32.mrb[11].mxu0 }
 0x518   : > { %v1232_v57 = vpop.f32.mrb[12].mxu0 }
 0x519   : > { %v2043_v58 = vpack.c.bf16 %v1232_v57, %v1232_v57  ;;  %v2128_v59 = vpop.f32.mrb[13].mxu0 }
 0x51a   : > { %v1235_v60 = vpop.f32.mrb[14].mxu0 }
 0x51b   : > { %1242 = vrot.lane.b32.xlu1 %v2043_v58, %s2584_s7  ;;  %v2129_v61 = vpop.f32.mrb[15].mxu0 }
 0x521   : > { %v1359_v63 = vpop.f32.mrb[16].mxu0 }
 0x522   : > { %v2044_v2 = vpack.c.bf16 %v1359_v63, %v1359_v63  ;;  %v2140_v3 = vpop.f32.mrb[17].mxu0 }
 0x523   : > { %v1362_v4 = vpop.f32.mrb[18].mxu0 }
 0x524   : > { %1369 = vrot.lane.b32.xlu0 %v2044_v2, %s2585_s0  ;;  %v2141_v5 = vpop.f32.mrb[19].mxu0  ;;  %s2482_s0 = scalar_lea.vmem %s2481_s8, 256 }
 0x525   : > { %v2035_v5 = vld [vmem:[%s3271_s3] ss:$0 sm:$0xff]  ;;  %s3275_s3 = sld [smem:[#allocation41_spill]] }
 0x529   : > { %v1486_v7 = vpop.f32.mrb[20].mxu0 }
 0x52a   : > { %v2045_v8 = vpack.c.bf16 %v1486_v7, %v1486_v7  ;;  %v2152_v9 = vpop.f32.mrb[21].mxu0 }
 0x52b   : > { %v1489_v10 = vpop.f32.mrb[22].mxu0  ;;  %s3276_s7 = smov %s3275_s3  ;;  %s3136_s2 = scalar_lea.hbm %s3275_s3, %s2040_s17 }
 0x52c   : > { %1496 = vrot.lane.b32.xlu1 %v2045_v8, %s2586_s22  ;;  %v2153_v11 = vpop.f32.mrb[23].mxu0  ;;  %v2036_v8 = vld [vmem:[%s3272_s12] ss:$0 sm:$0xff]  ;;  %s3273_s22 = sld [smem:[#allocation39_spill]]  ;;  %s1812_s12 = scalar_lea.sflag [#allocation7], %s2938_s24 }
 0x58d   : > { %v1243_v12 = vpop.permute.xlu1 %1242 }
 0x58e   : > { %1246 = vst.msk [vmem:[#allocation4] sm:$0xf] %vm1245_vm6, %v1243_v12 }
 0x596   : > { %v1370_v13 = vpop.permute.xlu0 %1369 }
 0x597   : > { %1373 = vst.msk [vmem:[#allocation4] sm:$0xf] %vm1372_vm7, %v1370_v13 }
 0x59e   : > { %v1497_v14 = vpop.permute.xlu1 %1496 }
 0x59f   : > { %1500 = vst.msk [vmem:[#allocation4] sm:$0xf] %vm1499_vm8, %v1497_v14 }
 0x5a6   : > { %v1501_v15 = vld [vmem:[#allocation4] sm:$0xf] }
 0x5a7   : > { %2159 = vmatmul.mubr.msk.bf16.vlgmr.msra.gmra.mrb[20].mxu1 %vm821_vm1, %v1501_v15 }
 0x5a8   : > { %2178 = vmatprep.mubr.msk.bf16.mxu1 %vm2580_vm0, %v2579_v0 }
 0x67a   : > { %v1562_v17 = vpop.f32.mrb[20].mxu1 }
 0x67b   : > { %v1563_v18 = vadd.f32 %v2019_v16, %v1562_v17  ;;  %v2160_v19 = vpop.f32.mrb[21].mxu1 }
 0x67c   : > { %v1565_v20 = vpop.f32.mrb[22].mxu1 }
 0x67d   : > { %v2161_v21 = vpop.f32.mrb[23].mxu1  ;;  %v1568_v22 = vadd.f32 %v1563_v18, %v2986_v6  ;;  %v2306_v6 = vld [vmem:[%s3199_s13] sm:$0xff]  }
 0x67e   : > { %2171 = vmatpush3.bf16.msra.mxu1 %v2306_v6  ;;  %v2037_v21 = vld [vmem:[%s3273_s22] ss:$0 sm:$0xff] }
 0x67f   : > { %v1571_v23 = vsel %vm821_vm1, %v1568_v22, 0.0  ;;  %2172 = vmatprep.subr.bf16.mxu1 %v2579_v0 }
 0x680   : > { %1572 = vadd.xlane.f32.xlu0 %v1571_v23  ;;  %v2038_v23 = vld [vmem:[%s3274_s4] ss:$0 sm:$0xff] }
 0x682   : > { %2173 = vmatpush3.bf16.msra.mxu1 %v2307_v31 }
 0x683   : > { %2174 = vmatprep.subr.bf16.mxu1 %v2579_v0 }
 0x686   : > { %2175 = vmatpush3.bf16.msra.mxu1 %v2308_v42 }
 0x687   : > { %2176 = vmatprep.subr.bf16.mxu1 %v2579_v0  ;;  %v2029_v0 = vld [vmem:[%s3270_s16] ss:$0 sm:$0xff]  ;;  %s1826_s16 = sshll.u32 %s784_s5, 4  ;;  %s3138_s16 = int_to_ptr.vmem [resolvable:$true] %s1826_s16 }
 0x688   : > { %s2476_s23 = scalar_lea.vmem %s3138_s16, 128  ;;  %p2483_p13 = scmp.lt.s32.totalorder %s3138_s16, %s2481_s8 }
 0x689   : > { %p2477_p2 = scmp.ne.s32.totalorder %s3138_s16, %s2476_s23  ;;  %p2484_p3 = scmp.lt.s32.totalorder %s2482_s0, %s2476_s23 }
 0x68a   : > { %2177 = vmatpush3.bf16.msra.mxu1 %v2309_v43 }
 0x68b   : > { %p2478_p8 = pnand %p2477_p2, %p3277_p4  ;;  %p2485_p5 = por %p2484_p3, %p2483_p13 }
 0x68d   : > { %p2479_p1 = pneg %p2478_p8 }
 0x68f   : > { %p2486_p6 = pnand %p2485_p5, %p2479_p1 }
 0x70d   : > { %v1573_v24 = vpop.xlane.xlu0 %1572 }
 0x70e   : > { %v1575_v25 = vmul.f32 0.03125, %v1573_v24 }
 0x710   : > { %v1576_v26 = vsub.f32 %v1568_v22, %v1575_v25 }
 0x712   : > { %v1577_v27 = vmul.f32 %v1576_v26, %v1576_v26 }
 0x714   : > { %v1578_v28 = vsel %vm821_vm1, %v1577_v27, 0.0 }
 0x715   : > { %1579 = vadd.xlane.f32.xlu1 %v1578_v28 }
 0x7a2   : > { %v1580_v32 = vpop.xlane.xlu1 %1579 }
 0x7a3   : > { %v1581_v33 = vmul.f32 0.03125, %v1580_v32 }
 0x7a5   : > { %v1582_v34 = vadd.f32 1e-05, %v1581_v33 }
 0x7a7   : > { %2326 = vrsqrt.f32 %v1582_v34 }
 0x7b1   : > { %v2327_v35 = vpop.eup %2326 }
 0x7b2   : > { %v1584_v37 = vmul.f32 %v2327_v35, %v1576_v26 }
 0x7b4   : > { %v1591_v39 = vmul.f32 %v2023_v36, %v1584_v37 }
 0x7b6   : > { %v1598_v40 = vadd.f32 %v2024_v38, %v1591_v39 }
 0x7b8   : > { %v1599_v41 = vpack.c.bf16 %v1598_v40, %v1598_v40 }
 0x7ba   : > { %2167 = vmatmul.mubr.msk.bf16.vlgmr.msra.gmra.mrb[24].mxu0 %vm821_vm1, %v1599_v41 }
 0x88d   : > { %v1660_v45 = vpop.f32.mrb[24].mxu0 }
 0x88e   : > { %v1661_v46 = vadd.f32 %v2025_v44, %v1660_v45  ;;  %v2168_v47 = vpop.f32.mrb[25].mxu0 }
 0x88f   : > { %v1663_v48 = vpop.f32.mrb[26].mxu0 }
 0x890   : > { %v1666_v49 = vmax.f32 %v1661_v46, 0.0  ;;  %v2169_v50 = vpop.f32.mrb[27].mxu0 }
 0x892   : > { %v1667_v51 = vpack.c.bf16 %v1666_v49, %v1666_v49 }
 0x894   : > { %2179 = vmatmul.mubr.msk.bf16.vlgmr.msra.gmra.mrb[24].mxu1 %vm1707_vm9, %v1667_v51 }
 0x967   : > { %v1745_v52 = vpop.f32.mrb[24].mxu1 }
 0x968   : > { %v1746_v53 = vadd.f32 %v2029_v0, %v1745_v52  ;;  %v2180_v54 = vpop.f32.mrb[25].mxu1 }
 0x969   : > { %v1748_v55 = vpop.f32.mrb[26].mxu1 }
 0x96a   : > { %v2181_v56 = vpop.f32.mrb[27].mxu1  ;;  %v1751_v57 = vadd.f32 %v1746_v53, %v1598_v40 }
 0x96c   : > { %v1754_v58 = vsel %vm821_vm1, %v1751_v57, 0.0 }
 0x96d   : > { %1755 = vadd.xlane.f32.xlu0 %v1754_v58 }
 0x9fa   : > { %v1756_v59 = vpop.xlane.xlu0 %1755 }
 0x9fb   : > { %v1757_v60 = vmul.f32 0.03125, %v1756_v59 }
 0x9fd   : > { %v1758_v61 = vsub.f32 %v1751_v57, %v1757_v60 }
 0x9ff   : > { %v1759_v62 = vmul.f32 %v1758_v61, %v1758_v61 }
 0xa01   : > { %v1760_v63 = vsel %vm821_vm1, %v1759_v62, 0.0 }
 0xa02   : > { %1761 = vadd.xlane.f32.xlu0 %v1760_v63 }
 0xa8f   : > { %v1762_v1 = vpop.xlane.xlu0 %1761 }
 0xa90   : > { %v1763_v2 = vmul.f32 0.03125, %v1762_v1 }
 0xa92   : > { %v1764_v3 = vadd.f32 1e-05, %v1763_v2 }
 0xa94   : > { %2328 = vrsqrt.f32 %v1764_v3 }
 0xa9e   : > { %v2329_v4 = vpop.eup %2328 }
 0xa9f   : > { %v1766_v7 = vmul.f32 %v2329_v4, %v1758_v61 }
 0xaa1   : > { %v1773_v9 = vmul.f32 %v2035_v5, %v1766_v7 }
 0xaa3   : > { %v1780_v10 = vadd.f32 %v2036_v8, %v1773_v9 }
 0xaa5   : > { %v1783_v11 = vsel %vm821_vm1, %v1780_v10, 0.0 }
 0xaa6   : > { %1784 = vadd.xlane.f32.xlu1 %v1783_v11 }
 0xb33   : > { %v1785_v12 = vpop.xlane.xlu1 %1784 }
 0xb34   : > { %v1786_v13 = vmul.f32 0.03125, %v1785_v12 }
 0xb36   : > { %v1787_v14 = vsub.f32 %v1780_v10, %v1786_v13 }
 0xb38   : > { %v1788_v15 = vmul.f32 %v1787_v14, %v1787_v14 }
 0xb3a   : > { %v1789_v16 = vsel %vm821_vm1, %v1788_v15, 0.0 }
 0xb3b   : > { %1790 = vadd.xlane.f32.xlu0 %v1789_v16 }
 0xbc8   : > { %v1791_v17 = vpop.xlane.xlu0 %1790 }
 0xbc9   : > { %v1792_v18 = vmul.f32 0.03125, %v1791_v17 }
 0xbcb   : > { %v1793_v19 = vadd.f32 1e-05, %v1792_v18 }
 0xbcd   : > { %2330 = vrsqrt.f32 %v1793_v19 }
 0xbd7   : > { %v2331_v20 = vpop.eup %2330 }
 0xbd8   : > { %v1795_v22 = vmul.f32 %v2331_v20, %v1787_v14 }
 0xbda   : > { %v1802_v24 = vmul.f32 %v2037_v21, %v1795_v22 }
 0xbdc   : > { %v1809_v25 = vadd.f32 %v2038_v23, %v1802_v24 }
 0xbde   : > { %1810 = vst.msk [vmem:[%s784_s5] sm:$0xff] %vm821_vm1, %v1809_v25 }
 0xbdf   : > { %2489 = shalt.err (!%p2486_p6)
}
 0xbe0   : > { %s2490_s24 = scalar_lea.hbm %s3136_s2, 128  ;;  %s2494_s14 = scalar_lea.hbm %s3276_s7, 256 }
 0xbe1   : > { %p2491_p12 = scmp.ne.s32.totalorder %s3136_s2, %s2490_s24  ;;  %p2495_p11 = scmp.lt.u32.totalorder %s3136_s2, %s3276_s7 }
 0xbe2   : > { %p2496_p9 = scmp.lt.u32.totalorder %s2494_s14, %s2490_s24  ;;  %p2498_p2 = scmp.lt.u32.totalorder %s2490_s24, %s3136_s2 }
 0xbe3   : > { %p2492_p10 = pnand %p2491_p12, %p3277_p4 }
 0xbe4   : > { %p2497_p0 = por %p2496_p9, %p2495_p11 }
 0xbe5   : > { %p2493_p7 = pneg %p2492_p10 }
 0xbe6   : > { %p2499_p8 = por %p2498_p2, %p2497_p0 }
 0xbe8   : > { %p2500_p1 = pnand %p2499_p8, %p2493_p7 }
 0xbea   : > { %2503 = shalt.err (!%p2500_p1)
}
 0xbeb   : > { %2198 = dma.vmem_to_hbm [thread:$0]  (%p3277_p4), %s3138_s16, 128, %s3136_s2, %s1812_s12  }
 0xbec PF: > { %s3278_s5 = sld [smem:[#allocation20_spill]]  ;;  %s3279_s11 = sld [smem:[#allocation22_spill]] }
 0xbed   : > { %p3281_p3 = scmp.ge.s32.totalorder %s2570_s28, 2 }
 0xbf2   : > { %s1838_s19 = sand.u32 1, %s3278_s5   ;;  %p3280_p13 = scmp.ne.s32.totalorder %s3279_s11, 0 }
 0xbf3   : > { %s1839_s3 = scalar_lea.sflag [#allocation7], %s1838_s19 }
 0xbf4   : > { %p2218_p5 = pnand %p3281_p3, %p3280_p13 }
 0xbf6   : > { %2545 = dma.done.wait (!%p2218_p5), %s1839_s3, 128  }
 0xbf7   : > { %2547 = vsyncadd (!%p2218_p5), %s1839_s3, 4294967168  ;;  %s41_s28 = sadd.s32 1, %s2570_s28   ;;  %s3282_s27 = sld [smem:[#allocation21_spill]] }
 0xbf8   : > { %p38_p6 = scmp.ge.s32.totalorder %s41_s28, 4   ;;  %s3283_s3 = sld [smem:[#allocation23_spill]] }
 0xbf9   : > { %s3284_s2 = smov %s2554_s25  ;;  %s3285_s25 = smov %s2558_s26 }
 0xbfa   : > { %s3286_s26 = smov %s2866_s20  ;;  %40 = sbr.rel (!%p38_p6) target bundleno = 28 (0x1c), region = 181 }
 0xc01   :  { %1844 = vsyncpa [#allocation6], 1 }
 0xc02   :  { %1846 = vsyncpa [#allocation6 + $0x1], 1 }
 0xc03   :  { %1847 = vsyncpa [#allocation9], 1 }
 0xc04   :  { %1849 = vsyncpa [#allocation9 + $0x1], 1 }
 0xc05   :  { %1850 = vsyncpa [#allocation12], 1 }
 0xc06   :  { %1851 = vsyncpa [#allocation7], 1 }
 0xc07   :  { %1853 = vsyncpa [#allocation7 + $0x1], 1 }

</bundles_post_ra>
